<compile_context>
chip_gen: v7x
topology: tpu7x:2x2x1
jax: 0.10.0
libtpu: 0.0.40
codegen_flags: <defaults>
</compile_context>

<pallas_src>
import functools

import jax
import jax.numpy as jnp
from jax.experimental import pallas as pl
from jax.experimental.pallas import tpu as pltpu

NHEAD = 4


# ---------------------------------------------------------------------------
# math used by the pure-JAX reference
# ---------------------------------------------------------------------------
def _layernorm(x, g, b, eps=1e-5):
    mu = jnp.mean(x, axis=-1, keepdims=True)
    var = jnp.mean((x - mu) ** 2, axis=-1, keepdims=True)
    return (x - mu) * jax.lax.rsqrt(var + eps) * g + b


def _mha(q_in, k_in, v_in, wq, bq, wk, bk, wv, bv, wo, bo, nhead):
    # q_in: (Tq, D), k_in/v_in: (Tk, D); weights stored as (in, out) so x @ W.
    d = q_in.shape[-1]
    hd = d // nhead
    scale = hd ** -0.5
    q = jnp.dot(q_in, wq, preferred_element_type=jnp.float32) + bq
    k = jnp.dot(k_in, wk, preferred_element_type=jnp.float32) + bk
    v = jnp.dot(v_in, wv, preferred_element_type=jnp.float32) + bv
    head_outs = []
    for h in range(nhead):
        sl = slice(h * hd, (h + 1) * hd)
        qh = q[:, sl] * scale
        kh = k[:, sl]
        vh = v[:, sl]
        s = jnp.dot(qh, kh.T, preferred_element_type=jnp.float32)
        s = s - jnp.max(s, axis=-1, keepdims=True)
        p = jnp.exp(s)
        p = p / jnp.sum(p, axis=-1, keepdims=True)
        head_outs.append(jnp.dot(p, vh, preferred_element_type=jnp.float32))
    ctx = jnp.concatenate(head_outs, axis=-1)
    return jnp.dot(ctx, wo, preferred_element_type=jnp.float32) + bo


# ---------------------------------------------------------------------------
# fused Pallas kernel: all decoder layers + final LayerNorm
# ---------------------------------------------------------------------------
def _fused_decoder_kernel(nhead, t_valid, s_valid, has_final_norm,
                          tgt_ref, mem_ref, qpos_ref, pos_ref,
                          aw_ref, ab_ref, w1_ref, b1_ref, w2_ref, b2_ref,
                          ng_ref, nb_ref, fnorm_ref,
                          out_ref, ctx_ref):
    # TODO(synk): tgt_mask / memory_mask / key_padding_masks are None in this
    # synthetic setup; only the internally zero-padded keys are masked here.
    bb, Tp, D = tgt_ref.shape
    Sp = mem_ref.shape[1]
    hd = D // nhead
    layer = pl.program_id(1)
    bf16 = jnp.bfloat16

    # layer 0: seed the VMEM-resident residual stream (output block stays
    # resident across the whole "arbitrary" layer axis).
    @pl.when(layer == 0)
    def _():
        out_ref[...] = tgt_ref[...]

    x = out_ref[...].reshape(bb * Tp, D)           # f32 residual stream
    qpos = qpos_ref[...].reshape(bb * Tp, D)
    mem = mem_ref[...].reshape(bb * Sp, D)
    pos = pos_ref[...].reshape(bb * Sp, D)

    ab = ab_ref[0]                                 # (8, D) attention biases (f32)
    ng = ng_ref[0]                                 # (3, D) layernorm gammas
    nb = nb_ref[0]                                 # (3, D) layernorm betas

    def layernorm(v, g, b, eps=1e-5):
        mu = jnp.mean(v, axis=-1, keepdims=True)
        var = jnp.mean((v - mu) ** 2, axis=-1, keepdims=True)
        return (v - mu) * jax.lax.rsqrt(var + eps) * g + b

    def mha(q_rows, k_rows, v_rows, n_k, k_valid, base):
        # q_rows: (bb*Tp, D) f32; k_rows / v_rows: (bb*n_k, D) f32.
        # Q/K/V and output projections: single K=D bf16 matmuls, f32 accumulate.
        # 1/sqrt(head_dim) is folded into Wq / bq at pack time.
        q = jnp.dot(q_rows.astype(bf16), aw_ref[0, base + 0],
                    preferred_element_type=jnp.float32) + ab[base + 0:base + 1]
        k = jnp.dot(k_rows.astype(bf16), aw_ref[0, base + 1],
                    preferred_element_type=jnp.float32) + ab[base + 1:base + 2]
        v = jnp.dot(v_rows.astype(bf16), aw_ref[0, base + 2],
                    preferred_element_type=jnp.float32) + ab[base + 2:base + 3]

        if k_valid < n_k:                          # additive key-padding bias
            kidx = jax.lax.broadcasted_iota(jnp.int32, (1, n_k), 1)
            kbias = jnp.where(kidx < k_valid, jnp.float32(0.0),
                              jnp.float32(-1e30))
        else:
            kbias = None

        # Per-head scores / context (static unroll, nhead=4).  Context goes to
        # lane-contiguous slices of one (bb, Tp, D) VMEM scratch so the output
        # projection below is ONE matmul with K=D.
        for h in range(nhead):
            sl = slice(h * hd, (h + 1) * hd)
            qh = q[:, sl].reshape(bb, Tp, hd).astype(bf16)
            kh = k[:, sl].reshape(bb, n_k, hd).astype(bf16)
            vh = v[:, sl].reshape(bb, n_k, hd).astype(bf16)
            s = jnp.einsum('bqd,bkd->bqk', qh, kh,
                           preferred_element_type=jnp.float32)
            if kbias is not None:
                s = s + kbias
            m = jnp.max(s, axis=-1, keepdims=True)
            p = jnp.exp(s - m)                     # unnormalized probabilities
            row_sum = jnp.sum(p, axis=-1, keepdims=True)
            ctx = jnp.einsum('bqk,bkd->bqd', p.astype(bf16), vh,
                             preferred_element_type=jnp.float32)
            # deferred softmax normalization: divide Tp*hd elems, not Tp*n_k
            ctx_ref[:, :, sl] = ctx * pl.reciprocal(row_sum, approx=True)

        ctx_all = ctx_ref[...].reshape(bb * Tp, D).astype(bf16)
        return jnp.dot(ctx_all, aw_ref[0, base + 3],
                       preferred_element_type=jnp.float32) + ab[base + 3:base + 4]

    # ---- self-attention block (post-norm; dropout = identity in eval) ----
    qk = x + qpos
    x = layernorm(x + mha(qk, qk, x, Tp, t_valid, 0), ng[0:1], nb[0:1])

    # ---- cross-attention block ----
    x = layernorm(x + mha(x + qpos, mem + pos, mem, Sp, s_valid, 4),
                  ng[1:2], nb[1:2])

    # ---- feed-forward block (ReLU) ----
    h1 = jnp.maximum(
        jnp.dot(x.astype(bf16), w1_ref[0],
                preferred_element_type=jnp.float32) + b1_ref[0], 0.0)
    ff = jnp.dot(h1.astype(bf16), w2_ref[0],
                 preferred_element_type=jnp.float32) + b2_ref[0]
    x = layernorm(x + ff, ng[2:3], nb[2:3])

    out_ref[...] = x.reshape(bb, Tp, D)

    # ---- final decoder LayerNorm, fused into the last layer step ----
    if has_final_norm:
        @pl.when(layer == pl.num_programs(1) - 1)
        def _():
            fn = fnorm_ref[...]                    # (2, D): gamma, beta
            y = out_ref[...].reshape(bb * Tp, D)
            out_ref[...] = layernorm(y, fn[0:1], fn[1:2]).reshape(bb, Tp, D)


# ---------------------------------------------------------------------------
# wrappers / tuning helpers
# ---------------------------------------------------------------------------
def _round_up(n, m):
    return ((n + m - 1) // m) * m


def _tpu_tuning():
    """Generation-aware tuning: (vmem_limit_bytes, target_rows, multi_core)."""
    kind = ""
    try:
        kind = jax.devices()[0].device_kind.lower()
    except Exception:
        pass
    vmem_cap = None
    try:
        vmem_cap = getattr(pltpu.get_tpu_info(), "vmem_capacity_bytes", None)
    except Exception:
        vmem_cap = None
    if vmem_cap is None:
        vmem_cap = (64 if "v7" in kind else 128) * 2 ** 20
    if "v7" in kind:                               # 64 MiB VMEM per TC on v7x
        vmem_cap = min(vmem_cap, 64 * 2 ** 20)
    # leave headroom for Mosaic internal scratch / double-buffering
    vmem_limit = max(32 * 2 ** 20,
                     min(int(vmem_cap * 0.8), vmem_cap - 12 * 2 ** 20))
    small_vmem = vmem_cap <= 80 * 2 ** 20
    target_rows = 256 if small_vmem else 512
    multi_core = "v7" in kind                      # 2 TensorCores per chip
    return vmem_limit, target_rows, multi_core


def _vmem_estimate_bytes(bb, Tp, Sp, D, dff):
    f32, b16 = 4, 2
    acts = bb * Tp * D * f32 * 3 + bb * Sp * D * f32 * 2   # tgt,qpos,out + mem,pos
    wts = 8 * D * D * b16 + 2 * D * dff * b16 + 16 * D * f32
    scratch = bb * Tp * D * f32
    inter = (bb * Tp * Sp * f32 * 2 + 3 * bb * max(Tp, Sp) * D * f32
             + bb * Tp * dff * f32)
    return 2 * (acts + wts) + scratch + inter


def _pick_block_batch(B, Tp, Sp, D, dff, target_rows, vmem_budget, multi_core):
    """Largest divisor of B giving ~target_rows query rows per block and fitting
    the VMEM budget; on multi-TensorCore chips keep >= 2 batch blocks."""
    bb = max(1, min(B, max(1, target_rows // max(Tp, 1))))
    while B % bb:
        bb -= 1
    if multi_core and B >= 2 and B // bb < 2:
        bb = B // 2
        while B % bb:
            bb -= 1
    while bb > 1 and _vmem_estimate_bytes(bb, Tp, Sp, D, dff) > vmem_budget:
        bb -= 1
        while B % bb:
            bb -= 1
    return max(bb, 1)


def pack_layer_params(layer_params_list, nhead=NHEAD):
    """Stack the 26 per-layer params into 8 layer-stacked tensors.  Matmul
    weights are stored in bf16 (bf16-native MXU, halved weight DMA); biases and
    norm params stay f32.  Folds 1/sqrt(head_dim) into Wq / bq."""
    aw_l, ab_l, w1_l, b1_l, w2_l, b2_l, ng_l, nb_l = ([] for _ in range(8))
    for p in layer_params_list:
        (sa_wq, sa_bq, sa_wk, sa_bk, sa_wv, sa_bv, sa_wo, sa_bo,
         ca_wq, ca_bq, ca_wk, ca_bk, ca_wv, ca_bv, ca_wo, ca_bo,
         w1, b1, w2, b2, n1g, n1b, n2g, n2b, n3g, n3b) = p
        D = sa_wq.shape[0]
        scale = (D // nhead) ** -0.5
        aw_l.append(jnp.stack([sa_wq * scale, sa_wk, sa_wv, sa_wo,
                               ca_wq * scale, ca_wk, ca_wv, ca_wo]
                              ).astype(jnp.bfloat16))
        ab_l.append(jnp.stack([(sa_bq * scale).reshape(-1), sa_bk.reshape(-1),
                               sa_bv.reshape(-1), sa_bo.reshape(-1),
                               (ca_bq * scale).reshape(-1), ca_bk.reshape(-1),
                               ca_bv.reshape(-1), ca_bo.reshape(-1)]))
        w1_l.append(w1.astype(jnp.bfloat16))
        b1_l.append(b1.reshape(1, -1))
        w2_l.append(w2.astype(jnp.bfloat16))
        b2_l.append(b2.reshape(1, -1))
        ng_l.append(jnp.stack([n1g.reshape(-1), n2g.reshape(-1), n3g.reshape(-1)]))
        nb_l.append(jnp.stack([n1b.reshape(-1), n2b.reshape(-1), n3b.reshape(-1)]))
    return tuple(jnp.stack(t) for t in
                 (aw_l, ab_l, w1_l, b1_l, w2_l, b2_l, ng_l, nb_l))


def transformer_decoder_forward(tgt, memory, layer_params_list, final_norm,
                                query_pos, pos, nhead=NHEAD):
    """Mirrors TransformerDecoder.forward (post-norm DETR layers + final norm)
    as a single fused pallas_call."""
    B, T, D = tgt.shape
    S = memory.shape[1]
    L = len(layer_params_list)
    assert D % nhead == 0

    vmem_limit, target_rows, multi_core = _tpu_tuning()

    # Align T to the sublane (8) and S to the lane (128) granularity so the
    # (bb,T,D)->(bb*T,D) flatten is free and score-tensor lanes are dense;
    # padded keys are masked in-kernel with an additive -1e30 bias.
    Tp = _round_up(T, 8)
    Sp = _round_up(S, 128)
    if Tp != T:
        padt = ((0, 0), (0, Tp - T), (0, 0))
        tgt = jnp.pad(tgt, padt)
        query_pos = jnp.pad(query_pos, padt)
    if Sp != S:
        pads = ((0, 0), (0, Sp - S), (0, 0))
        memory = jnp.pad(memory, pads)
        pos = jnp.pad(pos, pads)

    aw, ab, w1, b1, w2, b2, ng, nb = pack_layer_params(layer_params_list, nhead)
    dff = w1.shape[-1]
    if final_norm is not None:
        fg, fb = final_norm
        fnorm = jnp.stack([fg.reshape(-1), fb.reshape(-1)])     # (2, D)
        has_final_norm = True
    else:
        fnorm = jnp.zeros((2, D), jnp.float32)
        has_final_norm = False

    bb = _pick_block_batch(B, Tp, Sp, D, dff, target_rows,
                           int(vmem_limit * 0.6), multi_core)
    grid = (B // bb, L)

    tgt_spec = pl.BlockSpec((bb, Tp, D), lambda b, l: (b, 0, 0))
    mem_spec = pl.BlockSpec((bb, Sp, D), lambda b, l: (b, 0, 0))

    in_specs = [
        tgt_spec, mem_spec, tgt_spec, mem_spec,
        pl.BlockSpec((1,) + aw.shape[1:], lambda b, l: (l, 0, 0, 0)),
        pl.BlockSpec((1,) + ab.shape[1:], lambda b, l: (l, 0, 0)),
        pl.BlockSpec((1,) + w1.shape[1:], lambda b, l: (l, 0, 0)),
        pl.BlockSpec((1,) + b1.shape[1:], lambda b, l: (l, 0, 0)),
        pl.BlockSpec((1,) + w2.shape[1:], lambda b, l: (l, 0, 0)),
        pl.BlockSpec((1,) + b2.shape[1:], lambda b, l: (l, 0, 0)),
        pl.BlockSpec((1,) + ng.shape[1:], lambda b, l: (l, 0, 0)),
        pl.BlockSpec((1,) + nb.shape[1:], lambda b, l: (l, 0, 0)),
        pl.BlockSpec(fnorm.shape, lambda b, l: (0, 0)),
    ]
    out_spec = pl.BlockSpec((bb, Tp, D), lambda b, l: (b, 0, 0))

    out = pl.pallas_call(
        functools.partial(_fused_decoder_kernel, nhead, T, S, has_final_norm),
        out_shape=jax.ShapeDtypeStruct((B, Tp, D), jnp.float32),
        grid=grid,
        in_specs=in_specs,
        out_specs=out_spec,
        scratch_shapes=[pltpu.VMEM((bb, Tp, D), jnp.float32)],
        compiler_params=pltpu.CompilerParams(
            # batch blocks are independent ("parallel"); the layer axis keeps
            # the output block resident as an accumulator ("arbitrary").
            # TODO(synk): on v7x the batch axis could use CORE_PARALLEL /
            # core_map; kept portable here, but bb is chosen so the batch axis
            # has >= 2 blocks on multi-core chips.
            dimension_semantics=("parallel", "arbitrary"),
            vmem_limit_bytes=vmem_limit),
    )(tgt, memory, query_pos, pos, aw, ab, w1, b1, w2, b2, ng, nb, fnorm)

    return out[:, :T, :] if Tp != T else out


# ---------------------------------------------------------------------------
# deterministic synthetic parameters
# ---------------------------------------------------------------------------
def init_layer_params(key, D, dff):
    keys = jax.random.split(key, 24)

    def w(k, shape):
        return (0.05 * jax.random.normal(k, shape)).astype(jnp.float32)

    def bias(k, n):
        return (0.02 * jax.random.normal(k, (1, n))).astype(jnp.float32)

    params = []
    # self-attention: wq,bq,wk,bk,wv,bv,wo,bo
    params += [w(keys[0], (D, D)), bias(keys[1], D),
               w(keys[2], (D, D)), bias(keys[3], D),
               w(keys[4], (D, D)), bias(keys[5], D),
               w(keys[6], (D, D)), bias(keys[7], D)]
    # cross-attention
    params += [w(keys[8], (D, D)), bias(keys[9], D),
               w(keys[10], (D, D)), bias(keys[11], D),
               w(keys[12], (D, D)), bias(keys[13], D),
               w(keys[14], (D, D)), bias(keys[15], D)]
    # FFN: linear1 (D->dff), linear2 (dff->D)
    params += [w(keys[16], (D, dff)), bias(keys[17], dff),
               w(keys[18], (dff, D)), bias(keys[19], D)]
    # norm1/2/3 gamma, beta
    for _ in range(3):
        params += [jnp.ones((1, D), jnp.float32), jnp.zeros((1, D), jnp.float32)]
    return params


# ---------------------------------------------------------------------------
# pure-JAX reference (f32, same math, no Pallas) for validation
# ---------------------------------------------------------------------------
def reference_decoder_layer(tgt, memory, qpos, pos, p, nhead=NHEAD):
    (sa_wq, sa_bq, sa_wk, sa_bk, sa_wv, sa_bv, sa_wo, sa_bo,
     ca_wq, ca_bq, ca_wk, ca_bk, ca_wv, ca_bv, ca_wo, ca_bo,
     w1, b1, w2, b2, n1_g, n1_b, n2_g, n2_b, n3_g, n3_b) = p

    def one(t, m, qp, ps):
        qk = t + qp
        t2 = _mha(qk, qk, t, sa_wq, sa_bq, sa_wk, sa_bk,
                  sa_wv, sa_bv, sa_wo, sa_bo, nhead)
        t = _layernorm(t + t2, n1_g, n1_b)
        t2 = _mha(t + qp, m + ps, m, ca_wq, ca_bq, ca_wk, ca_bk,
                  ca_wv, ca_bv, ca_wo, ca_bo, nhead)
        t = _layernorm(t + t2, n2_g, n2_b)
        h = jnp.maximum(jnp.dot(t, w1) + b1, 0.0)
        t2 = jnp.dot(h, w2) + b2
        t = _layernorm(t + t2, n3_g, n3_b)
        return t

    return jax.vmap(one)(tgt, memory, qpos, pos)


def reference_decoder(tgt, memory, layer_params_list, final_norm, qpos, pos):
    out = tgt
    for lp in layer_params_list:
        out = reference_decoder_layer(out, memory, qpos, pos, lp)
    if final_norm is not None:
        g, b = final_norm
        out = _layernorm(out, g, b)
    return out


# ---------------------------------------------------------------------------
if __name__ == "__main__":
    B, T, S, D, DFF, NLAYERS = 2, 8, 16, 32, 64, 2

    key = jax.random.PRNGKey(0)
    k_tgt, k_mem, k_qp, k_pos, k_params = jax.random.split(key, 5)

    tgt = jax.random.normal(k_tgt, (B, T, D), jnp.float32)
    memory = jax.random.normal(k_mem, (B, S, D), jnp.float32)
    query_pos = jax.random.normal(k_qp, (B, T, D), jnp.float32)
    pos = jax.random.normal(k_pos, (B, S, D), jnp.float32)

    layer_keys = jax.random.split(k_params, NLAYERS)
    layer_params_list = [init_layer_params(k, D, DFF) for k in layer_keys]
    final_norm = (jnp.ones((1, D), jnp.float32), jnp.zeros((1, D), jnp.float32))

    out = transformer_decoder_forward(tgt, memory, layer_params_list,
                                      final_norm, query_pos, pos)
    out = jax.block_until_ready(out)

    ref = reference_decoder(tgt, memory, layer_params_list, final_norm,
                            query_pos, pos)
    assert out.shape == (B, T, D)
    # bf16 matmul operands + approx-reciprocal softmax vs. the f32 reference.
    assert jnp.allclose(out, ref, atol=3e-2, rtol=3e-2), "Pallas != reference"

    print("KERNEL_OK")
</pallas_src>

<mosaic_0001>
module attributes {stable_mosaic.version = 11 : i64} {
  func.func @_fused_decoder_kernel(%arg0: i32, %arg1: i32, %arg2: memref<2x8x32xf32, #tpu.memory_space<vmem>>, %arg3: memref<2x128x32xf32, #tpu.memory_space<vmem>>, %arg4: memref<2x8x32xf32, #tpu.memory_space<vmem>>, %arg5: memref<2x128x32xf32, #tpu.memory_space<vmem>>, %arg6: memref<1x8x32x32xbf16, #tpu.memory_space<vmem>>, %arg7: memref<1x8x32xf32, #tpu.memory_space<vmem>>, %arg8: memref<1x32x64xbf16, #tpu.memory_space<vmem>>, %arg9: memref<1x1x64xf32, #tpu.memory_space<vmem>>, %arg10: memref<1x64x32xbf16, #tpu.memory_space<vmem>>, %arg11: memref<1x1x32xf32, #tpu.memory_space<vmem>>, %arg12: memref<1x3x32xf32, #tpu.memory_space<vmem>>, %arg13: memref<1x3x32xf32, #tpu.memory_space<vmem>>, %arg14: memref<2x32xf32, #tpu.memory_space<vmem>>, %arg15: memref<2x8x32xf32, #tpu.memory_space<vmem>>, %arg16: memref<2x8x32xf32, #tpu.memory_space<vmem>>) attributes {dimension_semantics = [#tpu.dimension_semantics<parallel>, #tpu.dimension_semantics<arbitrary>], iteration_bounds = array<i64: 1, 2>, scalar_prefetch = 0 : i64, scratch_operands = 1 : i64, tpu.core_type = #tpu.core_type<tc>, window_params = [{transform_indices = @transform_0, window_bounds = array<i64: 2, 8, 32>}, {transform_indices = @transform_1, window_bounds = array<i64: 2, 128, 32>}, {transform_indices = @transform_2, window_bounds = array<i64: 2, 8, 32>}, {transform_indices = @transform_3, window_bounds = array<i64: 2, 128, 32>}, {transform_indices = @transform_4, window_bounds = array<i64: 1, 8, 32, 32>}, {transform_indices = @transform_5, window_bounds = array<i64: 1, 8, 32>}, {transform_indices = @transform_6, window_bounds = array<i64: 1, 32, 64>}, {transform_indices = @transform_7, window_bounds = array<i64: 1, 1, 64>}, {transform_indices = @transform_8, window_bounds = array<i64: 1, 64, 32>}, {transform_indices = @transform_9, window_bounds = array<i64: 1, 1, 32>}, {transform_indices = @transform_10, window_bounds = array<i64: 1, 3, 32>}, {transform_indices = @transform_11, window_bounds = array<i64: 1, 3, 32>}, {pipeline_mode = #tpu.pipeline_mode<synchronous>, transform_indices = @transform_12, window_bounds = array<i64: 2, 32>}, {transform_indices = @transform_13, window_bounds = array<i64: 2, 8, 32>}]} {
    %c0_i32 = arith.constant 0 : i32
    %0 = arith.cmpi eq, %arg1, %c0_i32 : i32
    %1 = arith.extui %0 : i1 to i32
    %c0_i32_0 = arith.constant 0 : i32
    %2 = arith.cmpi ne, %1, %c0_i32_0 : i32
    scf.if %2 {
      %c0_148 = arith.constant 0 : index
      %c0_149 = arith.constant 0 : index
      %c0_150 = arith.constant 0 : index
      %380 = vector.load %arg2[%c0_148, %c0_149, %c0_150] : memref<2x8x32xf32, #tpu.memory_space<vmem>>, vector<2x8x32xf32>
      %c0_151 = arith.constant 0 : index
      %c0_152 = arith.constant 0 : index
      %c0_153 = arith.constant 0 : index
      %381 = vector.load %arg15[%c0_151, %c0_152, %c0_153] : memref<2x8x32xf32, #tpu.memory_space<vmem>>, vector<2x8x32xf32>
      tpu.vector_store %arg15[%c0_151, %c0_152, %c0_153], %380 {strides = array<i32>} : memref<2x8x32xf32, #tpu.memory_space<vmem>>, vector<2x8x32xf32>,
    } else {
    }
    %c0 = arith.constant 0 : index
    %c0_1 = arith.constant 0 : index
    %c0_2 = arith.constant 0 : index
    %3 = vector.load %arg15[%c0, %c0_1, %c0_2] : memref<2x8x32xf32, #tpu.memory_space<vmem>>, vector<2x8x32xf32>
    %4 = vector.shape_cast %3 : vector<2x8x32xf32> to vector<16x32xf32>
    %c0_3 = arith.constant 0 : index
    %c0_4 = arith.constant 0 : index
    %c0_5 = arith.constant 0 : index
    %5 = vector.load %arg4[%c0_3, %c0_4, %c0_5] : memref<2x8x32xf32, #tpu.memory_space<vmem>>, vector<2x8x32xf32>
    %6 = vector.shape_cast %5 : vector<2x8x32xf32> to vector<16x32xf32>
    %c0_6 = arith.constant 0 : index
    %c0_7 = arith.constant 0 : index
    %c0_8 = arith.constant 0 : index
    %7 = vector.load %arg3[%c0_6, %c0_7, %c0_8] : memref<2x128x32xf32, #tpu.memory_space<vmem>>, vector<2x128x32xf32>
    %8 = vector.shape_cast %7 : vector<2x128x32xf32> to vector<256x32xf32>
    %c0_9 = arith.constant 0 : index
    %c0_10 = arith.constant 0 : index
    %c0_11 = arith.constant 0 : index
    %9 = vector.load %arg5[%c0_9, %c0_10, %c0_11] : memref<2x128x32xf32, #tpu.memory_space<vmem>>, vector<2x128x32xf32>
    %10 = vector.shape_cast %9 : vector<2x128x32xf32> to vector<256x32xf32>
    %c0_12 = arith.constant 0 : index
    %c0_13 = arith.constant 0 : index
    %c0_14 = arith.constant 0 : index
    %11 = vector.load %arg7[%c0_12, %c0_13, %c0_14] : memref<1x8x32xf32, #tpu.memory_space<vmem>>, vector<1x8x32xf32>
    %12 = vector.shape_cast %11 : vector<1x8x32xf32> to vector<8x32xf32>
    %c0_15 = arith.constant 0 : index
    %c0_16 = arith.constant 0 : index
    %c0_17 = arith.constant 0 : index
    %13 = vector.load %arg12[%c0_15, %c0_16, %c0_17] : memref<1x3x32xf32, #tpu.memory_space<vmem>>, vector<1x3x32xf32>
    %14 = vector.shape_cast %13 : vector<1x3x32xf32> to vector<3x32xf32>
    %c0_18 = arith.constant 0 : index
    %c0_19 = arith.constant 0 : index
    %c0_20 = arith.constant 0 : index
    %15 = vector.load %arg13[%c0_18, %c0_19, %c0_20] : memref<1x3x32xf32, #tpu.memory_space<vmem>>, vector<1x3x32xf32>
    %16 = vector.shape_cast %15 : vector<1x3x32xf32> to vector<3x32xf32>
    %17 = arith.addf %4, %6 : vector<16x32xf32>
    %18 = arith.truncf %17 : vector<16x32xf32> to vector<16x32xbf16>
    %c0_21 = arith.constant 0 : index
    %c0_22 = arith.constant 0 : index
    %c0_23 = arith.constant 0 : index
    %c0_24 = arith.constant 0 : index
    %19 = vector.load %arg6[%c0_21, %c0_22, %c0_23, %c0_24] : memref<1x8x32x32xbf16, #tpu.memory_space<vmem>>, vector<1x1x32x32xbf16>
    %20 = vector.shape_cast %19 : vector<1x1x32x32xbf16> to vector<32x32xbf16>
    %cst = arith.constant dense<0.000000e+00> : vector<16x32xf32>
    %21 = tpu.matmul %18, %20, %cst {dimension_numbers = #tpu.dot_dimension_numbers<[1], [0], [0], [1], [0, 0, 1, 1], [], []>} : vector<16x32xbf16>, vector<32x32xbf16>, vector<16x32xf32> -> vector<16x32xf32>
    %22 = vector.extract_strided_slice %12 {offsets = [0, 0], sizes = [1, 32], strides = [1, 1]} : vector<8x32xf32> to vector<1x32xf32>
    %23 = vector.broadcast %22 : vector<1x32xf32> to vector<16x32xf32>
    %24 = arith.addf %21, %23 : vector<16x32xf32>
    %25 = arith.truncf %17 : vector<16x32xf32> to vector<16x32xbf16>
    %c0_25 = arith.constant 0 : index
    %c1 = arith.constant 1 : index
    %c0_26 = arith.constant 0 : index
    %c0_27 = arith.constant 0 : index
    %26 = vector.load %arg6[%c0_25, %c1, %c0_26, %c0_27] : memref<1x8x32x32xbf16, #tpu.memory_space<vmem>>, vector<1x1x32x32xbf16>
    %27 = vector.shape_cast %26 : vector<1x1x32x32xbf16> to vector<32x32xbf16>
    %cst_28 = arith.constant dense<0.000000e+00> : vector<16x32xf32>
    %28 = tpu.matmul %25, %27, %cst_28 {dimension_numbers = #tpu.dot_dimension_numbers<[1], [0], [0], [1], [0, 0, 1, 1], [], []>} : vector<16x32xbf16>, vector<32x32xbf16>, vector<16x32xf32> -> vector<16x32xf32>
    %29 = vector.extract_strided_slice %12 {offsets = [1, 0], sizes = [1, 32], strides = [1, 1]} : vector<8x32xf32> to vector<1x32xf32>
    %30 = vector.broadcast %29 : vector<1x32xf32> to vector<16x32xf32>
    %31 = arith.addf %28, %30 : vector<16x32xf32>
    %32 = arith.truncf %4 : vector<16x32xf32> to vector<16x32xbf16>
    %c0_29 = arith.constant 0 : index
    %c2 = arith.constant 2 : index
    %c0_30 = arith.constant 0 : index
    %c0_31 = arith.constant 0 : index
    %33 = vector.load %arg6[%c0_29, %c2, %c0_30, %c0_31] : memref<1x8x32x32xbf16, #tpu.memory_space<vmem>>, vector<1x1x32x32xbf16>
    %34 = vector.shape_cast %33 : vector<1x1x32x32xbf16> to vector<32x32xbf16>
    %cst_32 = arith.constant dense<0.000000e+00> : vector<16x32xf32>
    %35 = tpu.matmul %32, %34, %cst_32 {dimension_numbers = #tpu.dot_dimension_numbers<[1], [0], [0], [1], [0, 0, 1, 1], [], []>} : vector<16x32xbf16>, vector<32x32xbf16>, vector<16x32xf32> -> vector<16x32xf32>
    %36 = vector.extract_strided_slice %12 {offsets = [2, 0], sizes = [1, 32], strides = [1, 1]} : vector<8x32xf32> to vector<1x32xf32>
    %37 = vector.broadcast %36 : vector<1x32xf32> to vector<16x32xf32>
    %38 = arith.addf %35, %37 : vector<16x32xf32>
    %39 = vector.extract_strided_slice %24 {offsets = [0, 0], sizes = [16, 8], strides = [1, 1]} : vector<16x32xf32> to vector<16x8xf32>
    %40 = vector.shape_cast %39 : vector<16x8xf32> to vector<2x8x8xf32>
    %41 = arith.truncf %40 : vector<2x8x8xf32> to vector<2x8x8xbf16>
    %42 = vector.extract_strided_slice %31 {offsets = [0, 0], sizes = [16, 8], strides = [1, 1]} : vector<16x32xf32> to vector<16x8xf32>
    %43 = vector.shape_cast %42 : vector<16x8xf32> to vector<2x8x8xf32>
    %44 = arith.truncf %43 : vector<2x8x8xf32> to vector<2x8x8xbf16>
    %45 = vector.extract_strided_slice %38 {offsets = [0, 0], sizes = [16, 8], strides = [1, 1]} : vector<16x32xf32> to vector<16x8xf32>
    %46 = vector.shape_cast %45 : vector<16x8xf32> to vector<2x8x8xf32>
    %47 = arith.truncf %46 : vector<2x8x8xf32> to vector<2x8x8xbf16>
    "tpu.trace_start"() <{level = 10 : i32, message = "bqd,bkd->bqk"}> : () -> ()
    %cst_33 = arith.constant dense<0.000000e+00> : vector<2x8x8xf32>
    %48 = tpu.matmul %41, %44, %cst_33 {dimension_numbers = #tpu.dot_dimension_numbers<[2], [2], [1], [1], [0, 0, 0, 1, 1, 1], [0], [0]>} : vector<2x8x8xbf16>, vector<2x8x8xbf16>, vector<2x8x8xf32> -> vector<2x8x8xf32>
    "tpu.trace_stop"() : () -> ()
    %cst_34 = arith.constant dense<0xFF800000> : vector<2x8xf32>
    %49 = vector.multi_reduction <maximumf>, %48, %cst_34 [2] : vector<2x8x8xf32> to vector<2x8xf32>
    %50 = vector.shape_cast %49 : vector<2x8xf32> to vector<2x8x1xf32>
    %51 = vector.broadcast %50 : vector<2x8x1xf32> to vector<2x8x8xf32>
    %52 = arith.subf %48, %51 : vector<2x8x8xf32>
    %53 = math.exp %52 : vector<2x8x8xf32>
    %cst_35 = arith.constant dense<0.000000e+00> : vector<2x8xf32>
    %54 = vector.multi_reduction <add>, %53, %cst_35 [2] : vector<2x8x8xf32> to vector<2x8xf32>
    %55 = vector.shape_cast %54 : vector<2x8xf32> to vector<2x8x1xf32>
    %56 = arith.truncf %53 : vector<2x8x8xf32> to vector<2x8x8xbf16>
    "tpu.trace_start"() <{level = 10 : i32, message = "bqk,bkd->bqd"}> : () -> ()
    %cst_36 = arith.constant dense<0.000000e+00> : vector<2x8x8xf32>
    %57 = tpu.matmul %56, %47, %cst_36 {dimension_numbers = #tpu.dot_dimension_numbers<[2], [1], [1], [2], [0, 0, 0, 1, 1, 2], [0], [0]>} : vector<2x8x8xbf16>, vector<2x8x8xbf16>, vector<2x8x8xf32> -> vector<2x8x8xf32>
    "tpu.trace_stop"() : () -> ()
    %58 = tpu.reciprocal %55 {approx = true} : vector<2x8x1xf32> -> vector<2x8x1xf32>
    %59 = vector.broadcast %58 : vector<2x8x1xf32> to vector<2x8x8xf32>
    %60 = arith.mulf %57, %59 : vector<2x8x8xf32>
    %c0_37 = arith.constant 0 : index
    %c0_38 = arith.constant 0 : index
    %c0_39 = arith.constant 0 : index
    %61 = vector.load %arg16[%c0_37, %c0_38, %c0_39] : memref<2x8x32xf32, #tpu.memory_space<vmem>>, vector<2x8x8xf32>
    tpu.vector_store %arg16[%c0_37, %c0_38, %c0_39], %60 {strides = array<i32>} : memref<2x8x32xf32, #tpu.memory_space<vmem>>, vector<2x8x8xf32>,
    %62 = vector.extract_strided_slice %24 {offsets = [0, 8], sizes = [16, 8], strides = [1, 1]} : vector<16x32xf32> to vector<16x8xf32>
    %63 = vector.shape_cast %62 : vector<16x8xf32> to vector<2x8x8xf32>
    %64 = arith.truncf %63 : vector<2x8x8xf32> to vector<2x8x8xbf16>
    %65 = vector.extract_strided_slice %31 {offsets = [0, 8], sizes = [16, 8], strides = [1, 1]} : vector<16x32xf32> to vector<16x8xf32>
    %66 = vector.shape_cast %65 : vector<16x8xf32> to vector<2x8x8xf32>
    %67 = arith.truncf %66 : vector<2x8x8xf32> to vector<2x8x8xbf16>
    %68 = vector.extract_strided_slice %38 {offsets = [0, 8], sizes = [16, 8], strides = [1, 1]} : vector<16x32xf32> to vector<16x8xf32>
    %69 = vector.shape_cast %68 : vector<16x8xf32> to vector<2x8x8xf32>
    %70 = arith.truncf %69 : vector<2x8x8xf32> to vector<2x8x8xbf16>
    "tpu.trace_start"() <{level = 10 : i32, message = "bqd,bkd->bqk"}> : () -> ()
    %cst_40 = arith.constant dense<0.000000e+00> : vector<2x8x8xf32>
    %71 = tpu.matmul %64, %67, %cst_40 {dimension_numbers = #tpu.dot_dimension_numbers<[2], [2], [1], [1], [0, 0, 0, 1, 1, 1], [0], [0]>} : vector<2x8x8xbf16>, vector<2x8x8xbf16>, vector<2x8x8xf32> -> vector<2x8x8xf32>
    "tpu.trace_stop"() : () -> ()
    %cst_41 = arith.constant dense<0xFF800000> : vector<2x8xf32>
    %72 = vector.multi_reduction <maximumf>, %71, %cst_41 [2] : vector<2x8x8xf32> to vector<2x8xf32>
    %73 = vector.shape_cast %72 : vector<2x8xf32> to vector<2x8x1xf32>
    %74 = vector.broadcast %73 : vector<2x8x1xf32> to vector<2x8x8xf32>
    %75 = arith.subf %71, %74 : vector<2x8x8xf32>
    %76 = math.exp %75 : vector<2x8x8xf32>
    %cst_42 = arith.constant dense<0.000000e+00> : vector<2x8xf32>
    %77 = vector.multi_reduction <add>, %76, %cst_42 [2] : vector<2x8x8xf32> to vector<2x8xf32>
    %78 = vector.shape_cast %77 : vector<2x8xf32> to vector<2x8x1xf32>
    %79 = arith.truncf %76 : vector<2x8x8xf32> to vector<2x8x8xbf16>
    "tpu.trace_start"() <{level = 10 : i32, message = "bqk,bkd->bqd"}> : () -> ()
    %cst_43 = arith.constant dense<0.000000e+00> : vector<2x8x8xf32>
    %80 = tpu.matmul %79, %70, %cst_43 {dimension_numbers = #tpu.dot_dimension_numbers<[2], [1], [1], [2], [0, 0, 0, 1, 1, 2], [0], [0]>} : vector<2x8x8xbf16>, vector<2x8x8xbf16>, vector<2x8x8xf32> -> vector<2x8x8xf32>
    "tpu.trace_stop"() : () -> ()
    %81 = tpu.reciprocal %78 {approx = true} : vector<2x8x1xf32> -> vector<2x8x1xf32>
    %82 = vector.broadcast %81 : vector<2x8x1xf32> to vector<2x8x8xf32>
    %83 = arith.mulf %80, %82 : vector<2x8x8xf32>
    %c0_44 = arith.constant 0 : index
    %c0_45 = arith.constant 0 : index
    %c8 = arith.constant 8 : index
    %84 = vector.load %arg16[%c0_44, %c0_45, %c8] : memref<2x8x32xf32, #tpu.memory_space<vmem>>, vector<2x8x8xf32>
    tpu.vector_store %arg16[%c0_44, %c0_45, %c8], %83 {strides = array<i32>} : memref<2x8x32xf32, #tpu.memory_space<vmem>>, vector<2x8x8xf32>,
    %85 = vector.extract_strided_slice %24 {offsets = [0, 16], sizes = [16, 8], strides = [1, 1]} : vector<16x32xf32> to vector<16x8xf32>
    %86 = vector.shape_cast %85 : vector<16x8xf32> to vector<2x8x8xf32>
    %87 = arith.truncf %86 : vector<2x8x8xf32> to vector<2x8x8xbf16>
    %88 = vector.extract_strided_slice %31 {offsets = [0, 16], sizes = [16, 8], strides = [1, 1]} : vector<16x32xf32> to vector<16x8xf32>
    %89 = vector.shape_cast %88 : vector<16x8xf32> to vector<2x8x8xf32>
    %90 = arith.truncf %89 : vector<2x8x8xf32> to vector<2x8x8xbf16>
    %91 = vector.extract_strided_slice %38 {offsets = [0, 16], sizes = [16, 8], strides = [1, 1]} : vector<16x32xf32> to vector<16x8xf32>
    %92 = vector.shape_cast %91 : vector<16x8xf32> to vector<2x8x8xf32>
    %93 = arith.truncf %92 : vector<2x8x8xf32> to vector<2x8x8xbf16>
    "tpu.trace_start"() <{level = 10 : i32, message = "bqd,bkd->bqk"}> : () -> ()
    %cst_46 = arith.constant dense<0.000000e+00> : vector<2x8x8xf32>
    %94 = tpu.matmul %87, %90, %cst_46 {dimension_numbers = #tpu.dot_dimension_numbers<[2], [2], [1], [1], [0, 0, 0, 1, 1, 1], [0], [0]>} : vector<2x8x8xbf16>, vector<2x8x8xbf16>, vector<2x8x8xf32> -> vector<2x8x8xf32>
    "tpu.trace_stop"() : () -> ()
    %cst_47 = arith.constant dense<0xFF800000> : vector<2x8xf32>
    %95 = vector.multi_reduction <maximumf>, %94, %cst_47 [2] : vector<2x8x8xf32> to vector<2x8xf32>
    %96 = vector.shape_cast %95 : vector<2x8xf32> to vector<2x8x1xf32>
    %97 = vector.broadcast %96 : vector<2x8x1xf32> to vector<2x8x8xf32>
    %98 = arith.subf %94, %97 : vector<2x8x8xf32>
    %99 = math.exp %98 : vector<2x8x8xf32>
    %cst_48 = arith.constant dense<0.000000e+00> : vector<2x8xf32>
    %100 = vector.multi_reduction <add>, %99, %cst_48 [2] : vector<2x8x8xf32> to vector<2x8xf32>
    %101 = vector.shape_cast %100 : vector<2x8xf32> to vector<2x8x1xf32>
    %102 = arith.truncf %99 : vector<2x8x8xf32> to vector<2x8x8xbf16>
    "tpu.trace_start"() <{level = 10 : i32, message = "bqk,bkd->bqd"}> : () -> ()
    %cst_49 = arith.constant dense<0.000000e+00> : vector<2x8x8xf32>
    %103 = tpu.matmul %102, %93, %cst_49 {dimension_numbers = #tpu.dot_dimension_numbers<[2], [1], [1], [2], [0, 0, 0, 1, 1, 2], [0], [0]>} : vector<2x8x8xbf16>, vector<2x8x8xbf16>, vector<2x8x8xf32> -> vector<2x8x8xf32>
    "tpu.trace_stop"() : () -> ()
    %104 = tpu.reciprocal %101 {approx = true} : vector<2x8x1xf32> -> vector<2x8x1xf32>
    %105 = vector.broadcast %104 : vector<2x8x1xf32> to vector<2x8x8xf32>
    %106 = arith.mulf %103, %105 : vector<2x8x8xf32>
    %c0_50 = arith.constant 0 : index
    %c0_51 = arith.constant 0 : index
    %c16 = arith.constant 16 : index
    %107 = vector.load %arg16[%c0_50, %c0_51, %c16] : memref<2x8x32xf32, #tpu.memory_space<vmem>>, vector<2x8x8xf32>
    tpu.vector_store %arg16[%c0_50, %c0_51, %c16], %106 {strides = array<i32>} : memref<2x8x32xf32, #tpu.memory_space<vmem>>, vector<2x8x8xf32>,
    %108 = vector.extract_strided_slice %24 {offsets = [0, 24], sizes = [16, 8], strides = [1, 1]} : vector<16x32xf32> to vector<16x8xf32>
    %109 = vector.shape_cast %108 : vector<16x8xf32> to vector<2x8x8xf32>
    %110 = arith.truncf %109 : vector<2x8x8xf32> to vector<2x8x8xbf16>
    %111 = vector.extract_strided_slice %31 {offsets = [0, 24], sizes = [16, 8], strides = [1, 1]} : vector<16x32xf32> to vector<16x8xf32>
    %112 = vector.shape_cast %111 : vector<16x8xf32> to vector<2x8x8xf32>
    %113 = arith.truncf %112 : vector<2x8x8xf32> to vector<2x8x8xbf16>
    %114 = vector.extract_strided_slice %38 {offsets = [0, 24], sizes = [16, 8], strides = [1, 1]} : vector<16x32xf32> to vector<16x8xf32>
    %115 = vector.shape_cast %114 : vector<16x8xf32> to vector<2x8x8xf32>
    %116 = arith.truncf %115 : vector<2x8x8xf32> to vector<2x8x8xbf16>
    "tpu.trace_start"() <{level = 10 : i32, message = "bqd,bkd->bqk"}> : () -> ()
    %cst_52 = arith.constant dense<0.000000e+00> : vector<2x8x8xf32>
    %117 = tpu.matmul %110, %113, %cst_52 {dimension_numbers = #tpu.dot_dimension_numbers<[2], [2], [1], [1], [0, 0, 0, 1, 1, 1], [0], [0]>} : vector<2x8x8xbf16>, vector<2x8x8xbf16>, vector<2x8x8xf32> -> vector<2x8x8xf32>
    "tpu.trace_stop"() : () -> ()
    %cst_53 = arith.constant dense<0xFF800000> : vector<2x8xf32>
    %118 = vector.multi_reduction <maximumf>, %117, %cst_53 [2] : vector<2x8x8xf32> to vector<2x8xf32>
    %119 = vector.shape_cast %118 : vector<2x8xf32> to vector<2x8x1xf32>
    %120 = vector.broadcast %119 : vector<2x8x1xf32> to vector<2x8x8xf32>
    %121 = arith.subf %117, %120 : vector<2x8x8xf32>
    %122 = math.exp %121 : vector<2x8x8xf32>
    %cst_54 = arith.constant dense<0.000000e+00> : vector<2x8xf32>
    %123 = vector.multi_reduction <add>, %122, %cst_54 [2] : vector<2x8x8xf32> to vector<2x8xf32>
    %124 = vector.shape_cast %123 : vector<2x8xf32> to vector<2x8x1xf32>
    %125 = arith.truncf %122 : vector<2x8x8xf32> to vector<2x8x8xbf16>
    "tpu.trace_start"() <{level = 10 : i32, message = "bqk,bkd->bqd"}> : () -> ()
    %cst_55 = arith.constant dense<0.000000e+00> : vector<2x8x8xf32>
    %126 = tpu.matmul %125, %116, %cst_55 {dimension_numbers = #tpu.dot_dimension_numbers<[2], [1], [1], [2], [0, 0, 0, 1, 1, 2], [0], [0]>} : vector<2x8x8xbf16>, vector<2x8x8xbf16>, vector<2x8x8xf32> -> vector<2x8x8xf32>
    "tpu.trace_stop"() : () -> ()
    %127 = tpu.reciprocal %124 {approx = true} : vector<2x8x1xf32> -> vector<2x8x1xf32>
    %128 = vector.broadcast %127 : vector<2x8x1xf32> to vector<2x8x8xf32>
    %129 = arith.mulf %126, %128 : vector<2x8x8xf32>
    %c0_56 = arith.constant 0 : index
    %c0_57 = arith.constant 0 : index
    %c24 = arith.constant 24 : index
    %130 = vector.load %arg16[%c0_56, %c0_57, %c24] : memref<2x8x32xf32, #tpu.memory_space<vmem>>, vector<2x8x8xf32>
    tpu.vector_store %arg16[%c0_56, %c0_57, %c24], %129 {strides = array<i32>} : memref<2x8x32xf32, #tpu.memory_space<vmem>>, vector<2x8x8xf32>,
    %c0_58 = arith.constant 0 : index
    %c0_59 = arith.constant 0 : index
    %c0_60 = arith.constant 0 : index
    %131 = vector.load %arg16[%c0_58, %c0_59, %c0_60] : memref<2x8x32xf32, #tpu.memory_space<vmem>>, vector<2x8x32xf32>
    %132 = vector.shape_cast %131 : vector<2x8x32xf32> to vector<16x32xf32>
    %133 = arith.truncf %132 : vector<16x32xf32> to vector<16x32xbf16>
    %c0_61 = arith.constant 0 : index
    %c3 = arith.constant 3 : index
    %c0_62 = arith.constant 0 : index
    %c0_63 = arith.constant 0 : index
    %134 = vector.load %arg6[%c0_61, %c3, %c0_62, %c0_63] : memref<1x8x32x32xbf16, #tpu.memory_space<vmem>>, vector<1x1x32x32xbf16>
    %135 = vector.shape_cast %134 : vector<1x1x32x32xbf16> to vector<32x32xbf16>
    %cst_64 = arith.constant dense<0.000000e+00> : vector<16x32xf32>
    %136 = tpu.matmul %133, %135, %cst_64 {dimension_numbers = #tpu.dot_dimension_numbers<[1], [0], [0], [1], [0, 0, 1, 1], [], []>} : vector<16x32xbf16>, vector<32x32xbf16>, vector<16x32xf32> -> vector<16x32xf32>
    %137 = vector.extract_strided_slice %12 {offsets = [3, 0], sizes = [1, 32], strides = [1, 1]} : vector<8x32xf32> to vector<1x32xf32>
    %138 = vector.broadcast %137 : vector<1x32xf32> to vector<16x32xf32>
    %139 = arith.addf %136, %138 : vector<16x32xf32>
    %140 = arith.addf %4, %139 : vector<16x32xf32>
    %141 = vector.extract_strided_slice %14 {offsets = [0, 0], sizes = [1, 32], strides = [1, 1]} : vector<3x32xf32> to vector<1x32xf32>
    %142 = vector.extract_strided_slice %16 {offsets = [0, 0], sizes = [1, 32], strides = [1, 1]} : vector<3x32xf32> to vector<1x32xf32>
    %cst_65 = arith.constant dense<0.000000e+00> : vector<16xf32>
    %143 = vector.multi_reduction <add>, %140, %cst_65 [1] : vector<16x32xf32> to vector<16xf32>
    %144 = vector.shape_cast %143 : vector<16xf32> to vector<16x1xf32>
    %cst_66 = arith.constant 3.200000e+01 : f32
    %145 = vector.broadcast %cst_66 : f32 to vector<16x1xf32>
    %146 = arith.divf %144, %145 : vector<16x1xf32>
    %147 = vector.broadcast %146 : vector<16x1xf32> to vector<16x32xf32>
    %148 = arith.subf %140, %147 : vector<16x32xf32>
    %149 = arith.mulf %148, %148 : vector<16x32xf32>
    %cst_67 = arith.constant dense<0.000000e+00> : vector<16xf32>
    %150 = vector.multi_reduction <add>, %149, %cst_67 [1] : vector<16x32xf32> to vector<16xf32>
    %151 = vector.shape_cast %150 : vector<16xf32> to vector<16x1xf32>
    %cst_68 = arith.constant 3.200000e+01 : f32
    %152 = vector.broadcast %cst_68 : f32 to vector<16x1xf32>
    %153 = arith.divf %151, %152 : vector<16x1xf32>
    %154 = vector.broadcast %146 : vector<16x1xf32> to vector<16x32xf32>
    %155 = arith.subf %140, %154 : vector<16x32xf32>
    %cst_69 = arith.constant 9.99999974E-6 : f32
    %156 = vector.broadcast %cst_69 : f32 to vector<16x1xf32>
    %157 = arith.addf %153, %156 : vector<16x1xf32>
    %158 = math.rsqrt %157 : vector<16x1xf32>
    %159 = vector.broadcast %158 : vector<16x1xf32> to vector<16x32xf32>
    %160 = arith.mulf %155, %159 : vector<16x32xf32>
    %161 = vector.broadcast %141 : vector<1x32xf32> to vector<16x32xf32>
    %162 = arith.mulf %160, %161 : vector<16x32xf32>
    %163 = vector.broadcast %142 : vector<1x32xf32> to vector<16x32xf32>
    %164 = arith.addf %162, %163 : vector<16x32xf32>
    %165 = arith.addf %164, %6 : vector<16x32xf32>
    %166 = arith.addf %8, %10 : vector<256x32xf32>
    %167 = arith.truncf %165 : vector<16x32xf32> to vector<16x32xbf16>
    %c0_70 = arith.constant 0 : index
    %c4 = arith.constant 4 : index
    %c0_71 = arith.constant 0 : index
    %c0_72 = arith.constant 0 : index
    %168 = vector.load %arg6[%c0_70, %c4, %c0_71, %c0_72] : memref<1x8x32x32xbf16, #tpu.memory_space<vmem>>, vector<1x1x32x32xbf16>
    %169 = vector.shape_cast %168 : vector<1x1x32x32xbf16> to vector<32x32xbf16>
    %cst_73 = arith.constant dense<0.000000e+00> : vector<16x32xf32>
    %170 = tpu.matmul %167, %169, %cst_73 {dimension_numbers = #tpu.dot_dimension_numbers<[1], [0], [0], [1], [0, 0, 1, 1], [], []>} : vector<16x32xbf16>, vector<32x32xbf16>, vector<16x32xf32> -> vector<16x32xf32>
    %171 = vector.extract_strided_slice %12 {offsets = [4, 0], sizes = [1, 32], strides = [1, 1]} : vector<8x32xf32> to vector<1x32xf32>
    %172 = vector.broadcast %171 : vector<1x32xf32> to vector<16x32xf32>
    %173 = arith.addf %170, %172 : vector<16x32xf32>
    %174 = arith.truncf %166 : vector<256x32xf32> to vector<256x32xbf16>
    %c0_74 = arith.constant 0 : index
    %c5 = arith.constant 5 : index
    %c0_75 = arith.constant 0 : index
    %c0_76 = arith.constant 0 : index
    %175 = vector.load %arg6[%c0_74, %c5, %c0_75, %c0_76] : memref<1x8x32x32xbf16, #tpu.memory_space<vmem>>, vector<1x1x32x32xbf16>
    %176 = vector.shape_cast %175 : vector<1x1x32x32xbf16> to vector<32x32xbf16>
    %cst_77 = arith.constant dense<0.000000e+00> : vector<256x32xf32>
    %177 = tpu.matmul %174, %176, %cst_77 {dimension_numbers = #tpu.dot_dimension_numbers<[1], [0], [0], [1], [0, 0, 1, 1], [], []>} : vector<256x32xbf16>, vector<32x32xbf16>, vector<256x32xf32> -> vector<256x32xf32>
    %178 = vector.extract_strided_slice %12 {offsets = [5, 0], sizes = [1, 32], strides = [1, 1]} : vector<8x32xf32> to vector<1x32xf32>
    %179 = vector.broadcast %178 : vector<1x32xf32> to vector<256x32xf32>
    %180 = arith.addf %177, %179 : vector<256x32xf32>
    %181 = arith.truncf %8 : vector<256x32xf32> to vector<256x32xbf16>
    %c0_78 = arith.constant 0 : index
    %c6 = arith.constant 6 : index
    %c0_79 = arith.constant 0 : index
    %c0_80 = arith.constant 0 : index
    %182 = vector.load %arg6[%c0_78, %c6, %c0_79, %c0_80] : memref<1x8x32x32xbf16, #tpu.memory_space<vmem>>, vector<1x1x32x32xbf16>
    %183 = vector.shape_cast %182 : vector<1x1x32x32xbf16> to vector<32x32xbf16>
    %cst_81 = arith.constant dense<0.000000e+00> : vector<256x32xf32>
    %184 = tpu.matmul %181, %183, %cst_81 {dimension_numbers = #tpu.dot_dimension_numbers<[1], [0], [0], [1], [0, 0, 1, 1], [], []>} : vector<256x32xbf16>, vector<32x32xbf16>, vector<256x32xf32> -> vector<256x32xf32>
    %185 = vector.extract_strided_slice %12 {offsets = [6, 0], sizes = [1, 32], strides = [1, 1]} : vector<8x32xf32> to vector<1x32xf32>
    %186 = vector.broadcast %185 : vector<1x32xf32> to vector<256x32xf32>
    %187 = arith.addf %184, %186 : vector<256x32xf32>
    %188 = tpu.iota {dimensions = array<i32: 1>} : vector<1x128xi32>
    %c16_i32 = arith.constant 16 : i32
    %189 = vector.broadcast %c16_i32 : i32 to vector<1x128xi32>
    %190 = arith.cmpi slt, %188, %189 : vector<1x128xi32>
    %cst_82 = arith.constant 0.000000e+00 : f32
    %cst_83 = arith.constant -1.000000e+30 : f32
    %191 = vector.broadcast %cst_82 : f32 to vector<1x128xf32>
    %192 = vector.broadcast %cst_83 : f32 to vector<1x128xf32>
    %193 = arith.select %190, %191, %192 : vector<1x128xi1>, vector<1x128xf32>
    %194 = vector.extract_strided_slice %173 {offsets = [0, 0], sizes = [16, 8], strides = [1, 1]} : vector<16x32xf32> to vector<16x8xf32>
    %195 = vector.shape_cast %194 : vector<16x8xf32> to vector<2x8x8xf32>
    %196 = arith.truncf %195 : vector<2x8x8xf32> to vector<2x8x8xbf16>
    %197 = vector.extract_strided_slice %180 {offsets = [0, 0], sizes = [256, 8], strides = [1, 1]} : vector<256x32xf32> to vector<256x8xf32>
    %198 = vector.shape_cast %197 : vector<256x8xf32> to vector<2x128x8xf32>
    %199 = arith.truncf %198 : vector<2x128x8xf32> to vector<2x128x8xbf16>
    %200 = vector.extract_strided_slice %187 {offsets = [0, 0], sizes = [256, 8], strides = [1, 1]} : vector<256x32xf32> to vector<256x8xf32>
    %201 = vector.shape_cast %200 : vector<256x8xf32> to vector<2x128x8xf32>
    %202 = arith.truncf %201 : vector<2x128x8xf32> to vector<2x128x8xbf16>
    "tpu.trace_start"() <{level = 10 : i32, message = "bqd,bkd->bqk"}> : () -> ()
    %cst_84 = arith.constant dense<0.000000e+00> : vector<2x8x128xf32>
    %203 = tpu.matmul %196, %199, %cst_84 {dimension_numbers = #tpu.dot_dimension_numbers<[2], [2], [1], [1], [0, 0, 0, 1, 1, 1], [0], [0]>} : vector<2x8x8xbf16>, vector<2x128x8xbf16>, vector<2x8x128xf32> -> vector<2x8x128xf32>
    "tpu.trace_stop"() : () -> ()
    %204 = vector.shape_cast %193 : vector<1x128xf32> to vector<1x1x128xf32>
    %205 = vector.broadcast %204 : vector<1x1x128xf32> to vector<2x8x128xf32>
    %206 = arith.addf %203, %205 : vector<2x8x128xf32>
    %cst_85 = arith.constant dense<0xFF800000> : vector<2x8xf32>
    %207 = vector.multi_reduction <maximumf>, %206, %cst_85 [2] : vector<2x8x128xf32> to vector<2x8xf32>
    %208 = vector.shape_cast %207 : vector<2x8xf32> to vector<2x8x1xf32>
    %209 = vector.broadcast %208 : vector<2x8x1xf32> to vector<2x8x128xf32>
    %210 = arith.subf %206, %209 : vector<2x8x128xf32>
    %211 = math.exp %210 : vector<2x8x128xf32>
    %cst_86 = arith.constant dense<0.000000e+00> : vector<2x8xf32>
    %212 = vector.multi_reduction <add>, %211, %cst_86 [2] : vector<2x8x128xf32> to vector<2x8xf32>
    %213 = vector.shape_cast %212 : vector<2x8xf32> to vector<2x8x1xf32>
    %214 = arith.truncf %211 : vector<2x8x128xf32> to vector<2x8x128xbf16>
    "tpu.trace_start"() <{level = 10 : i32, message = "bqk,bkd->bqd"}> : () -> ()
    %cst_87 = arith.constant dense<0.000000e+00> : vector<2x8x8xf32>
    %215 = tpu.matmul %214, %202, %cst_87 {dimension_numbers = #tpu.dot_dimension_numbers<[2], [1], [1], [2], [0, 0, 0, 1, 1, 2], [0], [0]>} : vector<2x8x128xbf16>, vector<2x128x8xbf16>, vector<2x8x8xf32> -> vector<2x8x8xf32>
    "tpu.trace_stop"() : () -> ()
    %216 = tpu.reciprocal %213 {approx = true} : vector<2x8x1xf32> -> vector<2x8x1xf32>
    %217 = vector.broadcast %216 : vector<2x8x1xf32> to vector<2x8x8xf32>
    %218 = arith.mulf %215, %217 : vector<2x8x8xf32>
    %c0_88 = arith.constant 0 : index
    %c0_89 = arith.constant 0 : index
    %c0_90 = arith.constant 0 : index
    %219 = vector.load %arg16[%c0_88, %c0_89, %c0_90] : memref<2x8x32xf32, #tpu.memory_space<vmem>>, vector<2x8x8xf32>
    tpu.vector_store %arg16[%c0_88, %c0_89, %c0_90], %218 {strides = array<i32>} : memref<2x8x32xf32, #tpu.memory_space<vmem>>, vector<2x8x8xf32>,
    %220 = vector.extract_strided_slice %173 {offsets = [0, 8], sizes = [16, 8], strides = [1, 1]} : vector<16x32xf32> to vector<16x8xf32>
    %221 = vector.shape_cast %220 : vector<16x8xf32> to vector<2x8x8xf32>
    %222 = arith.truncf %221 : vector<2x8x8xf32> to vector<2x8x8xbf16>
    %223 = vector.extract_strided_slice %180 {offsets = [0, 8], sizes = [256, 8], strides = [1, 1]} : vector<256x32xf32> to vector<256x8xf32>
    %224 = vector.shape_cast %223 : vector<256x8xf32> to vector<2x128x8xf32>
    %225 = arith.truncf %224 : vector<2x128x8xf32> to vector<2x128x8xbf16>
    %226 = vector.extract_strided_slice %187 {offsets = [0, 8], sizes = [256, 8], strides = [1, 1]} : vector<256x32xf32> to vector<256x8xf32>
    %227 = vector.shape_cast %226 : vector<256x8xf32> to vector<2x128x8xf32>
    %228 = arith.truncf %227 : vector<2x128x8xf32> to vector<2x128x8xbf16>
    "tpu.trace_start"() <{level = 10 : i32, message = "bqd,bkd->bqk"}> : () -> ()
    %cst_91 = arith.constant dense<0.000000e+00> : vector<2x8x128xf32>
    %229 = tpu.matmul %222, %225, %cst_91 {dimension_numbers = #tpu.dot_dimension_numbers<[2], [2], [1], [1], [0, 0, 0, 1, 1, 1], [0], [0]>} : vector<2x8x8xbf16>, vector<2x128x8xbf16>, vector<2x8x128xf32> -> vector<2x8x128xf32>
    "tpu.trace_stop"() : () -> ()
    %230 = vector.shape_cast %193 : vector<1x128xf32> to vector<1x1x128xf32>
    %231 = vector.broadcast %230 : vector<1x1x128xf32> to vector<2x8x128xf32>
    %232 = arith.addf %229, %231 : vector<2x8x128xf32>
    %cst_92 = arith.constant dense<0xFF800000> : vector<2x8xf32>
    %233 = vector.multi_reduction <maximumf>, %232, %cst_92 [2] : vector<2x8x128xf32> to vector<2x8xf32>
    %234 = vector.shape_cast %233 : vector<2x8xf32> to vector<2x8x1xf32>
    %235 = vector.broadcast %234 : vector<2x8x1xf32> to vector<2x8x128xf32>
    %236 = arith.subf %232, %235 : vector<2x8x128xf32>
    %237 = math.exp %236 : vector<2x8x128xf32>
    %cst_93 = arith.constant dense<0.000000e+00> : vector<2x8xf32>
    %238 = vector.multi_reduction <add>, %237, %cst_93 [2] : vector<2x8x128xf32> to vector<2x8xf32>
    %239 = vector.shape_cast %238 : vector<2x8xf32> to vector<2x8x1xf32>
    %240 = arith.truncf %237 : vector<2x8x128xf32> to vector<2x8x128xbf16>
    "tpu.trace_start"() <{level = 10 : i32, message = "bqk,bkd->bqd"}> : () -> ()
    %cst_94 = arith.constant dense<0.000000e+00> : vector<2x8x8xf32>
    %241 = tpu.matmul %240, %228, %cst_94 {dimension_numbers = #tpu.dot_dimension_numbers<[2], [1], [1], [2], [0, 0, 0, 1, 1, 2], [0], [0]>} : vector<2x8x128xbf16>, vector<2x128x8xbf16>, vector<2x8x8xf32> -> vector<2x8x8xf32>
    "tpu.trace_stop"() : () -> ()
    %242 = tpu.reciprocal %239 {approx = true} : vector<2x8x1xf32> -> vector<2x8x1xf32>
    %243 = vector.broadcast %242 : vector<2x8x1xf32> to vector<2x8x8xf32>
    %244 = arith.mulf %241, %243 : vector<2x8x8xf32>
    %c0_95 = arith.constant 0 : index
    %c0_96 = arith.constant 0 : index
    %c8_97 = arith.constant 8 : index
    %245 = vector.load %arg16[%c0_95, %c0_96, %c8_97] : memref<2x8x32xf32, #tpu.memory_space<vmem>>, vector<2x8x8xf32>
    tpu.vector_store %arg16[%c0_95, %c0_96, %c8_97], %244 {strides = array<i32>} : memref<2x8x32xf32, #tpu.memory_space<vmem>>, vector<2x8x8xf32>,
    %246 = vector.extract_strided_slice %173 {offsets = [0, 16], sizes = [16, 8], strides = [1, 1]} : vector<16x32xf32> to vector<16x8xf32>
    %247 = vector.shape_cast %246 : vector<16x8xf32> to vector<2x8x8xf32>
    %248 = arith.truncf %247 : vector<2x8x8xf32> to vector<2x8x8xbf16>
    %249 = vector.extract_strided_slice %180 {offsets = [0, 16], sizes = [256, 8], strides = [1, 1]} : vector<256x32xf32> to vector<256x8xf32>
    %250 = vector.shape_cast %249 : vector<256x8xf32> to vector<2x128x8xf32>
    %251 = arith.truncf %250 : vector<2x128x8xf32> to vector<2x128x8xbf16>
    %252 = vector.extract_strided_slice %187 {offsets = [0, 16], sizes = [256, 8], strides = [1, 1]} : vector<256x32xf32> to vector<256x8xf32>
    %253 = vector.shape_cast %252 : vector<256x8xf32> to vector<2x128x8xf32>
    %254 = arith.truncf %253 : vector<2x128x8xf32> to vector<2x128x8xbf16>
    "tpu.trace_start"() <{level = 10 : i32, message = "bqd,bkd->bqk"}> : () -> ()
    %cst_98 = arith.constant dense<0.000000e+00> : vector<2x8x128xf32>
    %255 = tpu.matmul %248, %251, %cst_98 {dimension_numbers = #tpu.dot_dimension_numbers<[2], [2], [1], [1], [0, 0, 0, 1, 1, 1], [0], [0]>} : vector<2x8x8xbf16>, vector<2x128x8xbf16>, vector<2x8x128xf32> -> vector<2x8x128xf32>
    "tpu.trace_stop"() : () -> ()
    %256 = vector.shape_cast %193 : vector<1x128xf32> to vector<1x1x128xf32>
    %257 = vector.broadcast %256 : vector<1x1x128xf32> to vector<2x8x128xf32>
    %258 = arith.addf %255, %257 : vector<2x8x128xf32>
    %cst_99 = arith.constant dense<0xFF800000> : vector<2x8xf32>
    %259 = vector.multi_reduction <maximumf>, %258, %cst_99 [2] : vector<2x8x128xf32> to vector<2x8xf32>
    %260 = vector.shape_cast %259 : vector<2x8xf32> to vector<2x8x1xf32>
    %261 = vector.broadcast %260 : vector<2x8x1xf32> to vector<2x8x128xf32>
    %262 = arith.subf %258, %261 : vector<2x8x128xf32>
    %263 = math.exp %262 : vector<2x8x128xf32>
    %cst_100 = arith.constant dense<0.000000e+00> : vector<2x8xf32>
    %264 = vector.multi_reduction <add>, %263, %cst_100 [2] : vector<2x8x128xf32> to vector<2x8xf32>
    %265 = vector.shape_cast %264 : vector<2x8xf32> to vector<2x8x1xf32>
    %266 = arith.truncf %263 : vector<2x8x128xf32> to vector<2x8x128xbf16>
    "tpu.trace_start"() <{level = 10 : i32, message = "bqk,bkd->bqd"}> : () -> ()
    %cst_101 = arith.constant dense<0.000000e+00> : vector<2x8x8xf32>
    %267 = tpu.matmul %266, %254, %cst_101 {dimension_numbers = #tpu.dot_dimension_numbers<[2], [1], [1], [2], [0, 0, 0, 1, 1, 2], [0], [0]>} : vector<2x8x128xbf16>, vector<2x128x8xbf16>, vector<2x8x8xf32> -> vector<2x8x8xf32>
    "tpu.trace_stop"() : () -> ()
    %268 = tpu.reciprocal %265 {approx = true} : vector<2x8x1xf32> -> vector<2x8x1xf32>
    %269 = vector.broadcast %268 : vector<2x8x1xf32> to vector<2x8x8xf32>
    %270 = arith.mulf %267, %269 : vector<2x8x8xf32>
    %c0_102 = arith.constant 0 : index
    %c0_103 = arith.constant 0 : index
    %c16_104 = arith.constant 16 : index
    %271 = vector.load %arg16[%c0_102, %c0_103, %c16_104] : memref<2x8x32xf32, #tpu.memory_space<vmem>>, vector<2x8x8xf32>
    tpu.vector_store %arg16[%c0_102, %c0_103, %c16_104], %270 {strides = array<i32>} : memref<2x8x32xf32, #tpu.memory_space<vmem>>, vector<2x8x8xf32>,
    %272 = vector.extract_strided_slice %173 {offsets = [0, 24], sizes = [16, 8], strides = [1, 1]} : vector<16x32xf32> to vector<16x8xf32>
    %273 = vector.shape_cast %272 : vector<16x8xf32> to vector<2x8x8xf32>
    %274 = arith.truncf %273 : vector<2x8x8xf32> to vector<2x8x8xbf16>
    %275 = vector.extract_strided_slice %180 {offsets = [0, 24], sizes = [256, 8], strides = [1, 1]} : vector<256x32xf32> to vector<256x8xf32>
    %276 = vector.shape_cast %275 : vector<256x8xf32> to vector<2x128x8xf32>
    %277 = arith.truncf %276 : vector<2x128x8xf32> to vector<2x128x8xbf16>
    %278 = vector.extract_strided_slice %187 {offsets = [0, 24], sizes = [256, 8], strides = [1, 1]} : vector<256x32xf32> to vector<256x8xf32>
    %279 = vector.shape_cast %278 : vector<256x8xf32> to vector<2x128x8xf32>
    %280 = arith.truncf %279 : vector<2x128x8xf32> to vector<2x128x8xbf16>
    "tpu.trace_start"() <{level = 10 : i32, message = "bqd,bkd->bqk"}> : () -> ()
    %cst_105 = arith.constant dense<0.000000e+00> : vector<2x8x128xf32>
    %281 = tpu.matmul %274, %277, %cst_105 {dimension_numbers = #tpu.dot_dimension_numbers<[2], [2], [1], [1], [0, 0, 0, 1, 1, 1], [0], [0]>} : vector<2x8x8xbf16>, vector<2x128x8xbf16>, vector<2x8x128xf32> -> vector<2x8x128xf32>
    "tpu.trace_stop"() : () -> ()
    %282 = vector.shape_cast %193 : vector<1x128xf32> to vector<1x1x128xf32>
    %283 = vector.broadcast %282 : vector<1x1x128xf32> to vector<2x8x128xf32>
    %284 = arith.addf %281, %283 : vector<2x8x128xf32>
    %cst_106 = arith.constant dense<0xFF800000> : vector<2x8xf32>
    %285 = vector.multi_reduction <maximumf>, %284, %cst_106 [2] : vector<2x8x128xf32> to vector<2x8xf32>
    %286 = vector.shape_cast %285 : vector<2x8xf32> to vector<2x8x1xf32>
    %287 = vector.broadcast %286 : vector<2x8x1xf32> to vector<2x8x128xf32>
    %288 = arith.subf %284, %287 : vector<2x8x128xf32>
    %289 = math.exp %288 : vector<2x8x128xf32>
    %cst_107 = arith.constant dense<0.000000e+00> : vector<2x8xf32>
    %290 = vector.multi_reduction <add>, %289, %cst_107 [2] : vector<2x8x128xf32> to vector<2x8xf32>
    %291 = vector.shape_cast %290 : vector<2x8xf32> to vector<2x8x1xf32>
    %292 = arith.truncf %289 : vector<2x8x128xf32> to vector<2x8x128xbf16>
    "tpu.trace_start"() <{level = 10 : i32, message = "bqk,bkd->bqd"}> : () -> ()
    %cst_108 = arith.constant dense<0.000000e+00> : vector<2x8x8xf32>
    %293 = tpu.matmul %292, %280, %cst_108 {dimension_numbers = #tpu.dot_dimension_numbers<[2], [1], [1], [2], [0, 0, 0, 1, 1, 2], [0], [0]>} : vector<2x8x128xbf16>, vector<2x128x8xbf16>, vector<2x8x8xf32> -> vector<2x8x8xf32>
    "tpu.trace_stop"() : () -> ()
    %294 = tpu.reciprocal %291 {approx = true} : vector<2x8x1xf32> -> vector<2x8x1xf32>
    %295 = vector.broadcast %294 : vector<2x8x1xf32> to vector<2x8x8xf32>
    %296 = arith.mulf %293, %295 : vector<2x8x8xf32>
    %c0_109 = arith.constant 0 : index
    %c0_110 = arith.constant 0 : index
    %c24_111 = arith.constant 24 : index
    %297 = vector.load %arg16[%c0_109, %c0_110, %c24_111] : memref<2x8x32xf32, #tpu.memory_space<vmem>>, vector<2x8x8xf32>
    tpu.vector_store %arg16[%c0_109, %c0_110, %c24_111], %296 {strides = array<i32>} : memref<2x8x32xf32, #tpu.memory_space<vmem>>, vector<2x8x8xf32>,
    %c0_112 = arith.constant 0 : index
    %c0_113 = arith.constant 0 : index
    %c0_114 = arith.constant 0 : index
    %298 = vector.load %arg16[%c0_112, %c0_113, %c0_114] : memref<2x8x32xf32, #tpu.memory_space<vmem>>, vector<2x8x32xf32>
    %299 = vector.shape_cast %298 : vector<2x8x32xf32> to vector<16x32xf32>
    %300 = arith.truncf %299 : vector<16x32xf32> to vector<16x32xbf16>
    %c0_115 = arith.constant 0 : index
    %c7 = arith.constant 7 : index
    %c0_116 = arith.constant 0 : index
    %c0_117 = arith.constant 0 : index
    %301 = vector.load %arg6[%c0_115, %c7, %c0_116, %c0_117] : memref<1x8x32x32xbf16, #tpu.memory_space<vmem>>, vector<1x1x32x32xbf16>
    %302 = vector.shape_cast %301 : vector<1x1x32x32xbf16> to vector<32x32xbf16>
    %cst_118 = arith.constant dense<0.000000e+00> : vector<16x32xf32>
    %303 = tpu.matmul %300, %302, %cst_118 {dimension_numbers = #tpu.dot_dimension_numbers<[1], [0], [0], [1], [0, 0, 1, 1], [], []>} : vector<16x32xbf16>, vector<32x32xbf16>, vector<16x32xf32> -> vector<16x32xf32>
    %304 = vector.extract_strided_slice %12 {offsets = [7, 0], sizes = [1, 32], strides = [1, 1]} : vector<8x32xf32> to vector<1x32xf32>
    %305 = vector.broadcast %304 : vector<1x32xf32> to vector<16x32xf32>
    %306 = arith.addf %303, %305 : vector<16x32xf32>
    %307 = arith.addf %164, %306 : vector<16x32xf32>
    %308 = vector.extract_strided_slice %14 {offsets = [1, 0], sizes = [1, 32], strides = [1, 1]} : vector<3x32xf32> to vector<1x32xf32>
    %309 = vector.extract_strided_slice %16 {offsets = [1, 0], sizes = [1, 32], strides = [1, 1]} : vector<3x32xf32> to vector<1x32xf32>
    %cst_119 = arith.constant dense<0.000000e+00> : vector<16xf32>
    %310 = vector.multi_reduction <add>, %307, %cst_119 [1] : vector<16x32xf32> to vector<16xf32>
    %311 = vector.shape_cast %310 : vector<16xf32> to vector<16x1xf32>
    %cst_120 = arith.constant 3.200000e+01 : f32
    %312 = vector.broadcast %cst_120 : f32 to vector<16x1xf32>
    %313 = arith.divf %311, %312 : vector<16x1xf32>
    %314 = vector.broadcast %313 : vector<16x1xf32> to vector<16x32xf32>
    %315 = arith.subf %307, %314 : vector<16x32xf32>
    %316 = arith.mulf %315, %315 : vector<16x32xf32>
    %cst_121 = arith.constant dense<0.000000e+00> : vector<16xf32>
    %317 = vector.multi_reduction <add>, %316, %cst_121 [1] : vector<16x32xf32> to vector<16xf32>
    %318 = vector.shape_cast %317 : vector<16xf32> to vector<16x1xf32>
    %cst_122 = arith.constant 3.200000e+01 : f32
    %319 = vector.broadcast %cst_122 : f32 to vector<16x1xf32>
    %320 = arith.divf %318, %319 : vector<16x1xf32>
    %321 = vector.broadcast %313 : vector<16x1xf32> to vector<16x32xf32>
    %322 = arith.subf %307, %321 : vector<16x32xf32>
    %cst_123 = arith.constant 9.99999974E-6 : f32
    %323 = vector.broadcast %cst_123 : f32 to vector<16x1xf32>
    %324 = arith.addf %320, %323 : vector<16x1xf32>
    %325 = math.rsqrt %324 : vector<16x1xf32>
    %326 = vector.broadcast %325 : vector<16x1xf32> to vector<16x32xf32>
    %327 = arith.mulf %322, %326 : vector<16x32xf32>
    %328 = vector.broadcast %308 : vector<1x32xf32> to vector<16x32xf32>
    %329 = arith.mulf %327, %328 : vector<16x32xf32>
    %330 = vector.broadcast %309 : vector<1x32xf32> to vector<16x32xf32>
    %331 = arith.addf %329, %330 : vector<16x32xf32>
    %332 = arith.truncf %331 : vector<16x32xf32> to vector<16x32xbf16>
    %c0_124 = arith.constant 0 : index
    %c0_125 = arith.constant 0 : index
    %c0_126 = arith.constant 0 : index
    %333 = vector.load %arg8[%c0_124, %c0_125, %c0_126] : memref<1x32x64xbf16, #tpu.memory_space<vmem>>, vector<1x32x64xbf16>
    %334 = vector.shape_cast %333 : vector<1x32x64xbf16> to vector<32x64xbf16>
    %cst_127 = arith.constant dense<0.000000e+00> : vector<16x64xf32>
    %335 = tpu.matmul %332, %334, %cst_127 {dimension_numbers = #tpu.dot_dimension_numbers<[1], [0], [0], [1], [0, 0, 1, 1], [], []>} : vector<16x32xbf16>, vector<32x64xbf16>, vector<16x64xf32> -> vector<16x64xf32>
    %c0_128 = arith.constant 0 : index
    %c0_129 = arith.constant 0 : index
    %c0_130 = arith.constant 0 : index
    %336 = vector.load %arg9[%c0_128, %c0_129, %c0_130] : memref<1x1x64xf32, #tpu.memory_space<vmem>>, vector<1x1x64xf32>
    %337 = vector.shape_cast %336 : vector<1x1x64xf32> to vector<1x64xf32>
    %338 = vector.broadcast %337 : vector<1x64xf32> to vector<16x64xf32>
    %339 = arith.addf %335, %338 : vector<16x64xf32>
    %cst_131 = arith.constant 0.000000e+00 : f32
    %340 = vector.broadcast %cst_131 : f32 to vector<16x64xf32>
    %341 = arith.maximumf %339, %340 : vector<16x64xf32>
    %342 = arith.truncf %341 : vector<16x64xf32> to vector<16x64xbf16>
    %c0_132 = arith.constant 0 : index
    %c0_133 = arith.constant 0 : index
    %c0_134 = arith.constant 0 : index
    %343 = vector.load %arg10[%c0_132, %c0_133, %c0_134] : memref<1x64x32xbf16, #tpu.memory_space<vmem>>, vector<1x64x32xbf16>
    %344 = vector.shape_cast %343 : vector<1x64x32xbf16> to vector<64x32xbf16>
    %cst_135 = arith.constant dense<0.000000e+00> : vector<16x32xf32>
    %345 = tpu.matmul %342, %344, %cst_135 {dimension_numbers = #tpu.dot_dimension_numbers<[1], [0], [0], [1], [0, 0, 1, 1], [], []>} : vector<16x64xbf16>, vector<64x32xbf16>, vector<16x32xf32> -> vector<16x32xf32>
    %c0_136 = arith.constant 0 : index
    %c0_137 = arith.constant 0 : index
    %c0_138 = arith.constant 0 : index
    %346 = vector.load %arg11[%c0_136, %c0_137, %c0_138] : memref<1x1x32xf32, #tpu.memory_space<vmem>>, vector<1x1x32xf32>
    %347 = vector.shape_cast %346 : vector<1x1x32xf32> to vector<1x32xf32>
    %348 = vector.broadcast %347 : vector<1x32xf32> to vector<16x32xf32>
    %349 = arith.addf %345, %348 : vector<16x32xf32>
    %350 = arith.addf %331, %349 : vector<16x32xf32>
    %351 = vector.extract_strided_slice %14 {offsets = [2, 0], sizes = [1, 32], strides = [1, 1]} : vector<3x32xf32> to vector<1x32xf32>
    %352 = vector.extract_strided_slice %16 {offsets = [2, 0], sizes = [1, 32], strides = [1, 1]} : vector<3x32xf32> to vector<1x32xf32>
    %cst_139 = arith.constant dense<0.000000e+00> : vector<16xf32>
    %353 = vector.multi_reduction <add>, %350, %cst_139 [1] : vector<16x32xf32> to vector<16xf32>
    %354 = vector.shape_cast %353 : vector<16xf32> to vector<16x1xf32>
    %cst_140 = arith.constant 3.200000e+01 : f32
    %355 = vector.broadcast %cst_140 : f32 to vector<16x1xf32>
    %356 = arith.divf %354, %355 : vector<16x1xf32>
    %357 = vector.broadcast %356 : vector<16x1xf32> to vector<16x32xf32>
    %358 = arith.subf %350, %357 : vector<16x32xf32>
    %359 = arith.mulf %358, %358 : vector<16x32xf32>
    %cst_141 = arith.constant dense<0.000000e+00> : vector<16xf32>
    %360 = vector.multi_reduction <add>, %359, %cst_141 [1] : vector<16x32xf32> to vector<16xf32>
    %361 = vector.shape_cast %360 : vector<16xf32> to vector<16x1xf32>
    %cst_142 = arith.constant 3.200000e+01 : f32
    %362 = vector.broadcast %cst_142 : f32 to vector<16x1xf32>
    %363 = arith.divf %361, %362 : vector<16x1xf32>
    %364 = vector.broadcast %356 : vector<16x1xf32> to vector<16x32xf32>
    %365 = arith.subf %350, %364 : vector<16x32xf32>
    %cst_143 = arith.constant 9.99999974E-6 : f32
    %366 = vector.broadcast %cst_143 : f32 to vector<16x1xf32>
    %367 = arith.addf %363, %366 : vector<16x1xf32>
    %368 = math.rsqrt %367 : vector<16x1xf32>
    %369 = vector.broadcast %368 : vector<16x1xf32> to vector<16x32xf32>
    %370 = arith.mulf %365, %369 : vector<16x32xf32>
    %371 = vector.broadcast %351 : vector<1x32xf32> to vector<16x32xf32>
    %372 = arith.mulf %370, %371 : vector<16x32xf32>
    %373 = vector.broadcast %352 : vector<1x32xf32> to vector<16x32xf32>
    %374 = arith.addf %372, %373 : vector<16x32xf32>
    %375 = vector.shape_cast %374 : vector<16x32xf32> to vector<2x8x32xf32>
    %c0_144 = arith.constant 0 : index
    %c0_145 = arith.constant 0 : index
    %c0_146 = arith.constant 0 : index
    %376 = vector.load %arg15[%c0_144, %c0_145, %c0_146] : memref<2x8x32xf32, #tpu.memory_space<vmem>>, vector<2x8x32xf32>
    tpu.vector_store %arg15[%c0_144, %c0_145, %c0_146], %375 {strides = array<i32>} : memref<2x8x32xf32, #tpu.memory_space<vmem>>, vector<2x8x32xf32>,
    %c1_i32 = arith.constant 1 : i32
    %377 = arith.cmpi eq, %arg1, %c1_i32 : i32
    %378 = arith.extui %377 : i1 to i32
    %c0_i32_147 = arith.constant 0 : i32
    %379 = arith.cmpi ne, %378, %c0_i32_147 : i32
    scf.if %379 {
      %c0_148 = arith.constant 0 : index
      %c0_149 = arith.constant 0 : index
      %380 = vector.load %arg14[%c0_148, %c0_149] : memref<2x32xf32, #tpu.memory_space<vmem>>, vector<2x32xf32>
      %c0_150 = arith.constant 0 : index
      %c0_151 = arith.constant 0 : index
      %c0_152 = arith.constant 0 : index
      %381 = vector.load %arg15[%c0_150, %c0_151, %c0_152] : memref<2x8x32xf32, #tpu.memory_space<vmem>>, vector<2x8x32xf32>
      %382 = vector.shape_cast %381 : vector<2x8x32xf32> to vector<16x32xf32>
      %383 = vector.extract_strided_slice %380 {offsets = [0, 0], sizes = [1, 32], strides = [1, 1]} : vector<2x32xf32> to vector<1x32xf32>
      %384 = vector.extract_strided_slice %380 {offsets = [1, 0], sizes = [1, 32], strides = [1, 1]} : vector<2x32xf32> to vector<1x32xf32>
      %cst_153 = arith.constant dense<0.000000e+00> : vector<16xf32>
      %385 = vector.multi_reduction <add>, %382, %cst_153 [1] : vector<16x32xf32> to vector<16xf32>
      %386 = vector.shape_cast %385 : vector<16xf32> to vector<16x1xf32>
      %cst_154 = arith.constant 3.200000e+01 : f32
      %387 = vector.broadcast %cst_154 : f32 to vector<16x1xf32>
      %388 = arith.divf %386, %387 : vector<16x1xf32>
      %389 = vector.broadcast %388 : vector<16x1xf32> to vector<16x32xf32>
      %390 = arith.subf %382, %389 : vector<16x32xf32>
      %391 = arith.mulf %390, %390 : vector<16x32xf32>
      %cst_155 = arith.constant dense<0.000000e+00> : vector<16xf32>
      %392 = vector.multi_reduction <add>, %391, %cst_155 [1] : vector<16x32xf32> to vector<16xf32>
      %393 = vector.shape_cast %392 : vector<16xf32> to vector<16x1xf32>
      %cst_156 = arith.constant 3.200000e+01 : f32
      %394 = vector.broadcast %cst_156 : f32 to vector<16x1xf32>
      %395 = arith.divf %393, %394 : vector<16x1xf32>
      %396 = vector.broadcast %388 : vector<16x1xf32> to vector<16x32xf32>
      %397 = arith.subf %382, %396 : vector<16x32xf32>
      %cst_157 = arith.constant 9.99999974E-6 : f32
      %398 = vector.broadcast %cst_157 : f32 to vector<16x1xf32>
      %399 = arith.addf %395, %398 : vector<16x1xf32>
      %400 = math.rsqrt %399 : vector<16x1xf32>
      %401 = vector.broadcast %400 : vector<16x1xf32> to vector<16x32xf32>
      %402 = arith.mulf %397, %401 : vector<16x32xf32>
      %403 = vector.broadcast %383 : vector<1x32xf32> to vector<16x32xf32>
      %404 = arith.mulf %402, %403 : vector<16x32xf32>
      %405 = vector.broadcast %384 : vector<1x32xf32> to vector<16x32xf32>
      %406 = arith.addf %404, %405 : vector<16x32xf32>
      %407 = vector.shape_cast %406 : vector<16x32xf32> to vector<2x8x32xf32>
      %c0_158 = arith.constant 0 : index
      %c0_159 = arith.constant 0 : index
      %c0_160 = arith.constant 0 : index
      %408 = vector.load %arg15[%c0_158, %c0_159, %c0_160] : memref<2x8x32xf32, #tpu.memory_space<vmem>>, vector<2x8x32xf32>
      tpu.vector_store %arg15[%c0_158, %c0_159, %c0_160], %407 {strides = array<i32>} : memref<2x8x32xf32, #tpu.memory_space<vmem>>, vector<2x8x32xf32>,
    } else {
    }
    return
  }
  func.func @transform_0(%arg0: i32, %arg1: i32) -> (i32, i32, i32) {
    %c0_i32 = arith.constant 0 : i32
    %c0_i32_0 = arith.constant 0 : i32
    %c0_i32_1 = arith.constant 0 : i32
    return %arg0, %c0_i32, %c0_i32_0 : i32, i32, i32
  }
  func.func @transform_1(%arg0: i32, %arg1: i32) -> (i32, i32, i32) {
    %c0_i32 = arith.constant 0 : i32
    %c0_i32_0 = arith.constant 0 : i32
    %c0_i32_1 = arith.constant 0 : i32
    return %arg0, %c0_i32, %c0_i32_0 : i32, i32, i32
  }
  func.func @transform_2(%arg0: i32, %arg1: i32) -> (i32, i32, i32) {
    %c0_i32 = arith.constant 0 : i32
    %c0_i32_0 = arith.constant 0 : i32
    %c0_i32_1 = arith.constant 0 : i32
    return %arg0, %c0_i32, %c0_i32_0 : i32, i32, i32
  }
  func.func @transform_3(%arg0: i32, %arg1: i32) -> (i32, i32, i32) {
    %c0_i32 = arith.constant 0 : i32
    %c0_i32_0 = arith.constant 0 : i32
    %c0_i32_1 = arith.constant 0 : i32
    return %arg0, %c0_i32, %c0_i32_0 : i32, i32, i32
  }
  func.func @transform_4(%arg0: i32, %arg1: i32) -> (i32, i32, i32, i32) {
    %c0_i32 = arith.constant 0 : i32
    %c0_i32_0 = arith.constant 0 : i32
    %c0_i32_1 = arith.constant 0 : i32
    %c0_i32_2 = arith.constant 0 : i32
    return %arg1, %c0_i32, %c0_i32_0, %c0_i32_1 : i32, i32, i32, i32
  }
  func.func @transform_5(%arg0: i32, %arg1: i32) -> (i32, i32, i32) {
    %c0_i32 = arith.constant 0 : i32
    %c0_i32_0 = arith.constant 0 : i32
    %c0_i32_1 = arith.constant 0 : i32
    return %arg1, %c0_i32, %c0_i32_0 : i32, i32, i32
  }
  func.func @transform_6(%arg0: i32, %arg1: i32) -> (i32, i32, i32) {
    %c0_i32 = arith.constant 0 : i32
    %c0_i32_0 = arith.constant 0 : i32
    %c0_i32_1 = arith.constant 0 : i32
    return %arg1, %c0_i32, %c0_i32_0 : i32, i32, i32
  }
  func.func @transform_7(%arg0: i32, %arg1: i32) -> (i32, i32, i32) {
    %c0_i32 = arith.constant 0 : i32
    %c0_i32_0 = arith.constant 0 : i32
    %c0_i32_1 = arith.constant 0 : i32
    return %arg1, %c0_i32, %c0_i32_0 : i32, i32, i32
  }
  func.func @transform_8(%arg0: i32, %arg1: i32) -> (i32, i32, i32) {
    %c0_i32 = arith.constant 0 : i32
    %c0_i32_0 = arith.constant 0 : i32
    %c0_i32_1 = arith.constant 0 : i32
    return %arg1, %c0_i32, %c0_i32_0 : i32, i32, i32
  }
  func.func @transform_9(%arg0: i32, %arg1: i32) -> (i32, i32, i32) {
    %c0_i32 = arith.constant 0 : i32
    %c0_i32_0 = arith.constant 0 : i32
    %c0_i32_1 = arith.constant 0 : i32
    return %arg1, %c0_i32, %c0_i32_0 : i32, i32, i32
  }
  func.func @transform_10(%arg0: i32, %arg1: i32) -> (i32, i32, i32) {
    %c0_i32 = arith.constant 0 : i32
    %c0_i32_0 = arith.constant 0 : i32
    %c0_i32_1 = arith.constant 0 : i32
    return %arg1, %c0_i32, %c0_i32_0 : i32, i32, i32
  }
  func.func @transform_11(%arg0: i32, %arg1: i32) -> (i32, i32, i32) {
    %c0_i32 = arith.constant 0 : i32
    %c0_i32_0 = arith.constant 0 : i32
    %c0_i32_1 = arith.constant 0 : i32
    return %arg1, %c0_i32, %c0_i32_0 : i32, i32, i32
  }
  func.func @transform_12(%arg0: i32, %arg1: i32) -> (i32, i32) {
    %c0_i32 = arith.constant 0 : i32
    %c0_i32_0 = arith.constant 0 : i32
    %c0_i32_1 = arith.constant 0 : i32
    return %c0_i32, %c0_i32_0 : i32, i32
  }
  func.func @transform_13(%arg0: i32, %arg1: i32) -> (i32, i32, i32) {
    %c0_i32 = arith.constant 0 : i32
    %c0_i32_0 = arith.constant 0 : i32
    %c0_i32_1 = arith.constant 0 : i32
    return %arg0, %c0_i32, %c0_i32_0 : i32, i32, i32
  }
}

</mosaic_0001>

<bundles_post_ra>
// kernel: tpu_custom_call.1
= control target key start
LH: loop header
LB: loop body
LE: loop exit
PB: predicated region body
PF: predicated region fallthrough
CT: control target
= control target key end

     0   :  { %s8147_s0 = inlined_call_operand.hbm [shape: f32[2,8,32], index: 0, kind: input, shape index: {}]   ;;  %s8148_s1 = inlined_call_operand.hbm [shape: f32[2,128,32], index: 1, kind: input, shape index: {}]   ;;  %s8149_s2 = inlined_call_operand.hbm [shape: f32[2,8,32], index: 2, kind: input, shape index: {}]   ;;  %s8150_s3 = inlined_call_operand.hbm [shape: f32[2,128,32], index: 3, kind: input, shape index: {}]   ;;  %s8151_s4 = inlined_call_operand.hbm [shape: bf16[2,8,32,32], index: 4, kind: input, shape index: {}]   ;;  %s8152_s5 = inlined_call_operand.hbm [shape: f32[2,8,32], index: 5, kind: input, shape index: {}]   ;;  %s8153_s6 = inlined_call_operand.hbm [shape: bf16[2,32,64], index: 6, kind: input, shape index: {}]   ;;  %s8154_s7 = inlined_call_operand.hbm [shape: f32[2,1,64], index: 7, kind: input, shape index: {}]   ;;  %s8155_s8 = inlined_call_operand.hbm [shape: bf16[2,64,32], index: 8, kind: input, shape index: {}]   ;;  %s8156_s9 = inlined_call_operand.hbm [shape: f32[2,1,32], index: 9, kind: input, shape index: {}]   ;;  %s8157_s10 = inlined_call_operand.hbm [shape: f32[2,3,32], index: 10, kind: input, shape index: {}]   ;;  %s8158_s11 = inlined_call_operand.hbm [shape: f32[2,3,32], index: 11, kind: input, shape index: {}]   ;;  %s8159_s12 = inlined_call_operand.hbm [shape: f32[2,32], index: 12, kind: input, shape index: {}]   ;;  %s8160_s13 = inlined_call_operand.hbm [shape: f32[2,8,32], index: 13, kind: output, shape index: {}]  }
   0x1   :  { %8213 = sst [smem:[#allocation43_spill]] %s8147_s0 }
   0x2   :  { %8214 = sst [smem:[#allocation44_spill]] %s8151_s4 }
   0x3   :  { %8215 = sst [smem:[#allocation45_spill]] %s8152_s5 }
   0x4   :  { %8216 = sst [smem:[#allocation46_spill]] %s8153_s6 }
   0x5   :  { %8217 = sst [smem:[#allocation47_spill]] %s8158_s11 }
   0x6   :  { %8218 = sst [smem:[#allocation48_spill]] %s8159_s12 }
   0x7   :  { %8219 = sst [smem:[#allocation49_spill]] %s8160_s13 }
   0x8   :  { %18 = vsyncpa [#allocation4], 0 }
   0x9   :  { %19 = vsyncpa [#allocation7], 0 }
   0xa   :  { %20 = vsyncpa [#allocation10], 0 }
   0xb   :  { %21 = vsyncpa [#allocation5], 0  ;;  %s6412_s25 = smov 0   ;;  %s6414_s26 = smov 0  }
   0xc   :  { %s6416_s27 = smov 0   ;;  %s6418_s28 = smov 0  }
   0xd   :  { %s6420_s29 = smov 0   ;;  %s6422_s30 = smov 0  }
   0xe LB: > { %8220 = sst [smem:[#allocation27_spill]] %s6296_s26  ;;  %s6441_s14 = sadd.s32 4294967295, %s6312_s30   ;;  %s6312_s30 = sphi %s6422_s30, %s27_s30   ;;  %s6308_s29 = sphi %s6420_s29, %s8301_s29   ;;  %s6304_s28 = sphi %s6418_s28, %s8300_s28   ;;  %s6300_s27 = sphi %s6416_s27, %s8299_s27   ;;  %s6296_s26 = sphi %s6414_s26, %s8298_s26   ;;  %s6292_s25 = sphi %s6412_s25, %s8295_s25  }
   0xf   : > { %8221 = sst [smem:[#allocation28_spill]] %s6304_s28  ;;  %p157_p0 = scmp.ne.s32.totalorder %s6300_s27, %s6296_s26 }
  0x10   : > { %8222 = sst [smem:[#allocation29_spill]] %s6441_s14  ;;  %p158_p1 = scmp.eq.s32.totalorder %s6312_s30, 0 }
  0x11   : > { %p163_p2 = scmp.ne.s32.totalorder %s6296_s26, %s6292_s25  ;;  %p8164_p3 = scmp.eq.s32.totalorder %s6441_s14, 0 }
  0x12   : > { %p159_p4 = por %p158_p1, %p157_p0  ;;  %p4611_p5 = scmp.ge.s32.totalorder %s6312_s30, 1 }
  0x13   : > { %p6452_p6 = por %p8164_p3, %p163_p2  ;;  %p403_p7 = scmp.lt.s32.totalorder %s6312_s30, 3 }
  0x14   : > { %s6314_s18 = smov [#allocation3]   ;;  %p5652_p10 = scmp.lt.s32.totalorder %s6312_s30, 2 }
  0x15   : > { %s8223_s16 = scalar_select %p6452_p6, 1, 0 }
  0x16   : > { %p6457_p8 = pnand %p4611_p5, %p403_p7  ;;  %s418_s19 = sshll.u32 %s6314_s18, 4  ;;  %s419_s19 = int_to_ptr.vmem [resolvable:$true] %s418_s19 }
  0x17   : > { %8224 = sst [smem:[#allocation30_spill]] %s8223_s16  ;;  %p6470_p12 = pnand %p5652_p10, %p159_p4 }
  0x18   : > { %s8225_s17 = scalar_select %p6457_p8, 1, 0 }
  0x19   : > { %p5606_p9 = pneg %p6457_p8  ;;  %s36_s22 = sadd.s32 1, %s6308_s29 }
  0x1a   : > { %8226 = sst [smem:[#allocation31_spill]] %s8225_s17  ;;  %s8229_s0 = sld [smem:[#allocation43_spill]] }
  0x1b   : > { %p6466_p11 = pnand %p5606_p9, %p8164_p3 }
  0x1c   : > { %s8228_s21 = scalar_select %p6470_p12, 1, 0 }
  0x1d   : > { %s8227_s20 = scalar_select %p6466_p11, 1, 0 }
  0x1e   : > { %p6483_p0 = pneg %p6466_p11 }
  0x20   : > { %s5836_s25 = scalar_lea.hbm %s8229_s0, 256 }
  0x21   : > { %p5837_p13 = scmp.ne.s32.totalorder %s8229_s0, %s5836_s25  ;;  %p5843_p4 = scmp.lt.u32.totalorder %s5836_s25, %s8229_s0 }
  0x22   : > { %s8230_s13 = scalar_select %p6483_p0, 1, 0 }
  0x23   : > { %p5839_p1 = pnand %p6483_p0, %p5837_p13 }
  0x25   : > { %p5840_p2 = pneg %p5839_p1 }
  0x27   : > { %p5845_p5 = pnand %p5843_p4, %p5840_p2 }
  0x29   : > { %5848 = shalt.err (!%p5845_p5)
}
  0x2a   : > { %s5849_s23 = scalar_lea.vmem %s419_s19, 256  ;;  %p5857_p3 = scmp.lt.s32.totalorder %s419_s19, %s419_s19 }
  0x2b   : > { %p5850_p7 = scmp.ne.s32.totalorder %s419_s19, %s5849_s23  ;;  %p5858_p6 = scmp.lt.s32.totalorder %s5849_s23, %s5849_s23 }
  0x2d   : > { %p5852_p9 = pnand %p5850_p7, %p6483_p0  ;;  %p5859_p8 = por %p5858_p6, %p5857_p3 }
  0x2f   : > { %p5853_p10 = pneg %p5852_p9 }
  0x31   : > { %p5860_p12 = pnand %p5859_p8, %p5853_p10 }
  0x33   : > { %5863 = shalt.err (!%p5860_p12)
}
  0x34   : > { %s8175_s15 = smov 128   ;;  %s8177_s28 = smov 8  }
  0x35   : > { %5609 = dma.hbm_to_vmem [thread:$0]  (!%p6466_p11), %s8229_s0, 256, %s419_s19, [#allocation4], %s8175_s15, %s8175_s15, %s8177_s28  }
  0x36   : > { %p37_p3 = scmp.ge.s32.totalorder %s36_s22, 2  ;;  %s493_s25 = sand.u32 1, %s6312_s30  }
  0x37   : > { %s6504_s18 = sand.u32 1, %s6300_s27   ;;  %s4769_s14 = sshll.u32 %s6308_s29, 11 }
  0x38   : > { %s8303_s22 = smov (%p37_p3, %s36_s22), 0  ;;  %s4618_s23 = sshll.u32 %s6504_s18, 7 }
  0x39   : > { %8231 = sst [smem:[#allocation32_spill]] %s8303_s22  ;;  %s147_s26 = ssub.s32 %s6308_s29, %s8303_s22 }
  0x3a   : > { %p148_p6 = scmp.eq.s32.totalorder %s147_s26, 0  ;;  %s8232_s4 = sld [smem:[#allocation44_spill]] }
  0x3b   : > { %s497_s19 = scalar_lea.vmem [#allocation11], %s4618_s23  ;;  %s8233_s24 = sadd.s32 1, %s6300_s27 }
  0x3c   : > { %s504_s16 = sshll.u32 %s497_s19, 4  ;;  %s4621_s28 = sshll.u32 %s6504_s18, 3  ;;  %s6522_s16 = int_to_ptr.vmem [resolvable:$true] %s504_s16 }
  0x3d   : > { %s6520_s15 = scalar_select %p148_p6, %s6300_s27, %s8233_s24  }
  0x3e   : > { %s6525_s0 = scalar_lea.sflag [#allocation4], %s493_s25  ;;  %p8235_p12 = scmp.ne.s32.totalorder %s8228_s21, 0 }
  0x3f   : > { %8234 = sst [smem:[#allocation33_spill]] %s6520_s15 }
  0x40   : > { %s6515_s12 = scalar_lea.hbm %s8232_s4, %s4769_s14  ;;  %p6531_p13 = pneg %p8235_p12 }
  0x41   : > { %s5864_s26 = scalar_lea.hbm %s6515_s12, 2048  ;;  %s5869_s23 = scalar_lea.hbm %s8232_s4, 4096 }
  0x42   : > { %p5865_p8 = scmp.ne.s32.totalorder %s6515_s12, %s5864_s26  ;;  %p5870_p4 = scmp.lt.u32.totalorder %s6515_s12, %s8232_s4 }
  0x43   : > { %p5871_p5 = scmp.lt.u32.totalorder %s5869_s23, %s5864_s26  ;;  %p5873_p9 = scmp.lt.u32.totalorder %s5864_s26, %s6515_s12 }
  0x44   : > { %p5867_p1 = pnand %p6531_p13, %p5865_p8 }
  0x45   : > { %p5872_p7 = por %p5871_p5, %p5870_p4 }
  0x46   : > { %p5868_p2 = pneg %p5867_p1 }
  0x47   : > { %p5874_p10 = por %p5873_p9, %p5872_p7 }
  0x49   : > { %p5875_p3 = pnand %p5874_p10, %p5868_p2 }
  0x4b   : > { %5878 = shalt.err (!%p5875_p3)
}
  0x4c   : > { %s5879_s25 = scalar_lea.vmem %s6522_s16, 2048  ;;  %s6317_s14 = smov [#allocation11]  }
  0x4d   : > { %p5880_p6 = scmp.ne.s32.totalorder %s6522_s16, %s5879_s25  ;;  %s5884_s17 = sshll.u32 %s6317_s14, 4  ;;  %s5885_s17 = int_to_ptr.vmem [resolvable:$false] %s5884_s17 }
  0x4e   : > { %s5886_s19 = scalar_lea.vmem %s5885_s17, 4096  ;;  %p5887_p11 = scmp.lt.s32.totalorder %s6522_s16, %s5885_s17 }
  0x4f   : > { %p5882_p8 = pnand %p5880_p6, %p6531_p13  ;;  %p5888_p0 = scmp.lt.s32.totalorder %s5886_s19, %s5879_s25 }
  0x51   : > { %p5883_p1 = pneg %p5882_p8  ;;  %p5889_p4 = por %p5888_p0, %p5887_p11 }
  0x53   : > { %p5890_p5 = pnand %p5889_p4, %p5883_p1 }
  0x55   : > { %5893 = shalt.err (!%p5890_p5)
}
  0x56   : > { %s8184_s26 = smov 64   ;;  %s6319_s23 = smov 4  }
  0x57   : > { %5625 = dma.hbm_to_vmem [thread:$0]  (!%p8235_p12), %s6515_s12, 2048, %s6522_s16, %s6525_s0, %s8184_s26, %s8184_s26, %s6319_s23  }
  0x58   : > { %s4622_s24 = sshll.u32 %s6308_s29, 7  ;;  %s8237_s5 = sld [smem:[#allocation45_spill]] }
  0x59   : > { %s518_s19 = scalar_lea.vmem [#allocation12], %s4621_s28  ;;  %s4623_s22 = sshll.u32 %s6504_s18, 4 }
  0x5a   : > { %s525_s4 = sshll.u32 %s518_s19, 4  ;;  %s526_s4 = int_to_ptr.vmem [resolvable:$true] %s525_s4 }
  0x5e   : > { %s6562_s17 = scalar_lea.hbm %s8237_s5, %s4622_s24  ;;  %s5899_s25 = scalar_lea.hbm %s8237_s5, 256 }
  0x5f   : > { %s5894_s15 = scalar_lea.hbm %s6562_s17, 128  ;;  %p5900_p7 = scmp.lt.u32.totalorder %s6562_s17, %s8237_s5 }
  0x60   : > { %p5895_p11 = scmp.ne.s32.totalorder %s6562_s17, %s5894_s15  ;;  %p5901_p9 = scmp.lt.u32.totalorder %s5899_s25, %s5894_s15 }
  0x61   : > { %p5903_p3 = scmp.lt.u32.totalorder %s5894_s15, %s6562_s17 }
  0x62   : > { %p5897_p0 = pnand %p5895_p11, %p6531_p13  ;;  %p5902_p10 = por %p5901_p9, %p5900_p7 }
  0x64   : > { %p5898_p2 = pneg %p5897_p0  ;;  %p5904_p6 = por %p5903_p3, %p5902_p10 }
  0x66   : > { %p5905_p8 = pnand %p5904_p6, %p5898_p2 }
  0x68   : > { %5908 = shalt.err (!%p5905_p8)
}
  0x69   : > { %s5909_s28 = scalar_lea.vmem %s526_s4, 128  ;;  %s6320_s19 = smov [#allocation12]  }
  0x6a   : > { %p5910_p1 = scmp.ne.s32.totalorder %s526_s4, %s5909_s28  ;;  %s5914_s26 = sshll.u32 %s6320_s19, 4  ;;  %s5915_s26 = int_to_ptr.vmem [resolvable:$false] %s5914_s26 }
  0x6b   : > { %s5916_s12 = scalar_lea.vmem %s5915_s26, 256  ;;  %p5917_p11 = scmp.lt.s32.totalorder %s526_s4, %s5915_s26 }
  0x6c   : > { %p5912_p4 = pnand %p5910_p1, %p6531_p13  ;;  %p5918_p0 = scmp.lt.s32.totalorder %s5916_s12, %s5909_s28 }
  0x6e   : > { %p5913_p5 = pneg %p5912_p4  ;;  %p5919_p12 = por %p5918_p0, %p5917_p11 }
  0x70   : > { %p5920_p7 = pnand %p5919_p12, %p5913_p5 }
  0x72   : > { %5923 = shalt.err (!%p5920_p7)
}
  0x73   : > { %p8238_p9 = scmp.ne.s32.totalorder %s8228_s21, 0  ;;  %s4770_s15 = sshll.u32 %s6308_s29, 8 }
  0x74   : > { %s8239_s6 = sld [smem:[#allocation46_spill]]  ;;  %s536_s26 = scalar_lea.vmem [#allocation13], %s4623_s22 }
  0x75   : > { %5628 = dma.hbm_to_vmem [thread:$0]  (!%p8238_p9), %s6562_s17, 128, %s526_s4, %s6525_s0  }
  0x76   : > { %s543_s14 = sshll.u32 %s536_s26, 4  ;;  %s6593_s14 = int_to_ptr.vmem [resolvable:$true] %s543_s14 }
  0x7a   : > { %s6589_s24 = scalar_lea.hbm %s8239_s6, %s4770_s15  ;;  %s5929_s19 = scalar_lea.hbm %s8239_s6, 512 }
  0x7b   : > { %s5924_s28 = scalar_lea.hbm %s6589_s24, 256  ;;  %p5930_p3 = scmp.lt.u32.totalorder %s6589_s24, %s8239_s6 }
  0x7c   : > { %p5925_p12 = scmp.ne.s32.totalorder %s6589_s24, %s5924_s28  ;;  %p5931_p6 = scmp.lt.u32.totalorder %s5929_s19, %s5924_s28 }
  0x7d   : > { %p5933_p1 = scmp.lt.u32.totalorder %s5924_s28, %s6589_s24 }
  0x7e   : > { %p5927_p2 = pnand %p5925_p12, %p6531_p13  ;;  %p5932_p8 = por %p5931_p6, %p5930_p3 }
  0x80   : > { %p5928_p10 = pneg %p5927_p2  ;;  %p5934_p4 = por %p5933_p1, %p5932_p8 }
  0x82   : > { %p5935_p5 = pnand %p5934_p4, %p5928_p10 }
  0x84   : > { %5938 = shalt.err (!%p5935_p5)
}
  0x85   : > { %s5939_s22 = scalar_lea.vmem %s6593_s14, 256  ;;  %s6321_s16 = smov [#allocation13]  }
  0x86   : > { %p5940_p11 = scmp.ne.s32.totalorder %s6593_s14, %s5939_s22  ;;  %s5944_s25 = sshll.u32 %s6321_s16, 4  ;;  %s5945_s25 = int_to_ptr.vmem [resolvable:$false] %s5944_s25 }
  0x87   : > { %s5946_s26 = scalar_lea.vmem %s5945_s25, 512  ;;  %p5947_p12 = scmp.lt.s32.totalorder %s6593_s14, %s5945_s25 }
  0x88   : > { %p5942_p0 = pnand %p5940_p11, %p6531_p13  ;;  %p5948_p2 = scmp.lt.s32.totalorder %s5946_s26, %s5939_s22 }
  0x8a   : > { %p5943_p7 = pneg %p5942_p0  ;;  %p5949_p3 = por %p5948_p2, %p5947_p12 }
  0x8c   : > { %p5950_p6 = pnand %p5949_p3, %p5943_p7 }
  0x8e   : > { %5953 = shalt.err (!%p5950_p6)
}
  0x8f   : > { %s8240_s28 = smov 64   ;;  %s4626_s4 = sshll.u32 %s6308_s29, 4 }
  0x90   : > { %5631 = dma.hbm_to_vmem [thread:$0]  (!%p8238_p9), %s6589_s24, 256, %s6593_s14, %s6525_s0, %s8240_s28, %s8240_s28, %s6319_s23  }
  0x91   : > { %s556_s17 = scalar_lea.vmem [#allocation14], %s6504_s18  ;;  %s561_s22 = scalar_lea.hbm %s8154_s7, %s4626_s4 }
  0x92   : > { %s563_s19 = sshll.u32 %s556_s17, 4  ;;  %s5954_s16 = scalar_lea.hbm %s561_s22, 16  ;;  %s564_s19 = int_to_ptr.vmem [resolvable:$true] %s563_s19 }
  0x93   : > { %p5955_p10 = scmp.ne.s32.totalorder %s561_s22, %s5954_s16  ;;  %s5959_s5 = scalar_lea.hbm %s8154_s7, 32 }
  0x94   : > { %p5960_p4 = scmp.lt.u32.totalorder %s561_s22, %s8154_s7  ;;  %p5961_p5 = scmp.lt.u32.totalorder %s5959_s5, %s5954_s16 }
  0x95   : > { %p5957_p8 = pnand %p5955_p10, %p6531_p13  ;;  %p5963_p0 = scmp.lt.u32.totalorder %s5954_s16, %s561_s22 }
  0x96   : > { %p5962_p11 = por %p5961_p5, %p5960_p4 }
  0x97   : > { %p5958_p1 = pneg %p5957_p8 }
  0x98   : > { %p5964_p7 = por %p5963_p0, %p5962_p11 }
  0x9a   : > { %p5965_p12 = pnand %p5964_p7, %p5958_p1 }
  0x9c   : > { %5968 = shalt.err (!%p5965_p12)
}
  0x9d   : > { %s5969_s14 = scalar_lea.vmem %s564_s19, 16  ;;  %s6322_s17 = smov [#allocation14]  }
  0x9e   : > { %p5970_p2 = scmp.ne.s32.totalorder %s564_s19, %s5969_s14  ;;  %s5974_s12 = sshll.u32 %s6322_s17, 4  ;;  %s5975_s12 = int_to_ptr.vmem [resolvable:$false] %s5974_s12 }
  0x9f   : > { %s5976_s15 = scalar_lea.vmem %s5975_s12, 32  ;;  %p5977_p10 = scmp.lt.s32.totalorder %s564_s19, %s5975_s12 }
  0xa0   : > { %p5972_p3 = pnand %p5970_p2, %p6531_p13  ;;  %p5978_p8 = scmp.lt.s32.totalorder %s5976_s15, %s5969_s14 }
  0xa2   : > { %p5973_p6 = pneg %p5972_p3  ;;  %p5979_p9 = por %p5978_p8, %p5977_p10 }
  0xa4   : > { %p5980_p4 = pnand %p5979_p9, %p5973_p6 }
  0xa6   : > { %5983 = shalt.err (!%p5980_p4)
}
  0xa7   : > { %p8241_p5 = scmp.ne.s32.totalorder %s8228_s21, 0  ;;  %s4627_s5 = sshll.u32 %s6504_s18, 5 }
  0xa8   : > { %s4771_s6 = sshll.u32 %s6308_s29, 9  ;;  %s574_s24 = scalar_lea.vmem [#allocation15], %s4627_s5 }
  0xa9   : > { %5634 = dma.hbm_to_vmem [thread:$0]  (!%p8241_p5), %s561_s22, 16, %s564_s19, %s6525_s0  }
  0xaa   : > { %s6645_s26 = scalar_lea.hbm %s8155_s8, %s4771_s6  ;;  %s581_s14 = sshll.u32 %s574_s24, 4  ;;  %s6647_s14 = int_to_ptr.vmem [resolvable:$true] %s581_s14 }
  0xab   : > { %s6323_s17 = smov [#allocation6]   ;;  %s5984_s15 = scalar_lea.hbm %s6645_s26, 512 }
  0xac   : > { %s6649_s12 = sshll.u32 %s6323_s17, 4  ;;  %p5985_p9 = scmp.ne.s32.totalorder %s6645_s26, %s5984_s15  ;;  %s436_s12 = int_to_ptr.vmem [resolvable:$true] %s6649_s12 }
  0xad   : > { %s5989_s6 = scalar_lea.hbm %s8155_s8, 1024  ;;  %p5990_p0 = scmp.lt.u32.totalorder %s6645_s26, %s8155_s8 }
  0xae   : > { %p5987_p1 = pnand %p5985_p9, %p6531_p13  ;;  %p5991_p7 = scmp.lt.u32.totalorder %s5989_s6, %s5984_s15 }
  0xaf   : > { %p5993_p2 = scmp.lt.u32.totalorder %s5984_s15, %s6645_s26 }
  0xb0   : > { %p5988_p11 = pneg %p5987_p1  ;;  %p5992_p12 = por %p5991_p7, %p5990_p0 }
  0xb2   : > { %p5994_p3 = por %p5993_p2, %p5992_p12 }
  0xb4   : > { %p5995_p6 = pnand %p5994_p3, %p5988_p11 }
  0xb6   : > { %5998 = shalt.err (!%p5995_p6)
}
  0xb7   : > { %s5999_s5 = scalar_lea.vmem %s6647_s14, 512  ;;  %s6324_s24 = smov [#allocation15]  }
  0xb8   : > { %p6000_p10 = scmp.ne.s32.totalorder %s6647_s14, %s5999_s5  ;;  %s6004_s17 = sshll.u32 %s6324_s24, 4  ;;  %s6005_s17 = int_to_ptr.vmem [resolvable:$false] %s6004_s17 }
  0xb9   : > { %s6006_s19 = scalar_lea.vmem %s6005_s17, 1024  ;;  %p6007_p9 = scmp.lt.s32.totalorder %s6647_s14, %s6005_s17 }
  0xba   : > { %p6002_p8 = pnand %p6000_p10, %p6531_p13  ;;  %p6008_p1 = scmp.lt.s32.totalorder %s6006_s19, %s5999_s5 }
  0xbc   : > { %p6003_p4 = pneg %p6002_p8  ;;  %p6009_p0 = por %p6008_p1, %p6007_p9 }
  0xbe   : > { %p6010_p7 = pnand %p6009_p0, %p6003_p4 }
  0xc0   : > { %6013 = shalt.err (!%p6010_p7)
}
  0xc1   : > { %5637 = dma.hbm_to_vmem [thread:$0]  (!%p8241_p5), %s6645_s26, 512, %s6647_s14, %s6525_s0, %s8240_s28, %s8240_s28, %s6319_s23  }
  0xc2   : > { %s6014_s6 = scalar_lea.hbm %s8148_s1, 4096  ;;  %p8242_p12 = scmp.ne.s32.totalorder %s8230_s13, 0 }
  0xc3   : > { %p6015_p11 = scmp.ne.s32.totalorder %s8148_s1, %s6014_s6  ;;  %p6021_p6 = scmp.lt.u32.totalorder %s6014_s6, %s8148_s1 }
  0xc5   : > { %p6017_p2 = pnand %p6015_p11, %p8242_p12 }
  0xc7   : > { %p6018_p3 = pneg %p6017_p2 }
  0xc9   : > { %p6023_p10 = pnand %p6021_p6, %p6018_p3 }
  0xcb   : > { %6026 = shalt.err (!%p6023_p10)
}
  0xcc   : > { %s6027_s17 = scalar_lea.vmem %s436_s12, 4096  ;;  %p6035_p1 = scmp.lt.s32.totalorder %s436_s12, %s436_s12 }
  0xcd   : > { %p6028_p8 = scmp.ne.s32.totalorder %s436_s12, %s6027_s17  ;;  %p6036_p0 = scmp.lt.s32.totalorder %s6027_s17, %s6027_s17 }
  0xcf   : > { %p6030_p4 = pnand %p6028_p8, %p8242_p12  ;;  %p6037_p7 = por %p6036_p0, %p6035_p1 }
  0xd1   : > { %p6031_p9 = pneg %p6030_p4 }
  0xd3   : > { %p6038_p5 = pnand %p6037_p7, %p6031_p9 }
  0xd5   : > { %6041 = shalt.err (!%p6038_p5)
}
  0xd6   : > { %p8243_p11 = scmp.ne.s32.totalorder %s8227_s20, 0  ;;  %s8244_s23 = smov 8  }
  0xd7   : > { %s8245_s28 = smov 128   ;;  %s6703_s22 = scalar_lea.hbm %s8156_s9, %s4626_s4 }
  0xd8   : > { %5612 = dma.hbm_to_vmem [thread:$0]  (!%p8243_p11), %s8148_s1, 4096, %s436_s12, [#allocation7], %s8245_s28, %s8245_s28, %s8244_s23  }
  0xd9   : > { %s594_s6 = scalar_lea.vmem [#allocation16], %s6504_s18  ;;  %s6042_s25 = scalar_lea.hbm %s6703_s22, 16 }
  0xda   : > { %s601_s16 = sshll.u32 %s594_s6, 4  ;;  %p6043_p5 = scmp.ne.s32.totalorder %s6703_s22, %s6042_s25  ;;  %s602_s16 = int_to_ptr.vmem [resolvable:$true] %s601_s16 }
  0xdb   : > { %s6047_s24 = scalar_lea.hbm %s8156_s9, 32  ;;  %p6048_p6 = scmp.lt.u32.totalorder %s6703_s22, %s8156_s9 }
  0xdc   : > { %p6045_p2 = pnand %p6043_p5, %p6531_p13  ;;  %p6049_p10 = scmp.lt.u32.totalorder %s6047_s24, %s6042_s25 }
  0xdd   : > { %p6051_p4 = scmp.lt.u32.totalorder %s6042_s25, %s6703_s22 }
  0xde   : > { %p6046_p3 = pneg %p6045_p2  ;;  %p6050_p8 = por %p6049_p10, %p6048_p6 }
  0xe0   : > { %p6052_p9 = por %p6051_p4, %p6050_p8 }
  0xe2   : > { %p6053_p1 = pnand %p6052_p9, %p6046_p3 }
  0xe4   : > { %6056 = shalt.err (!%p6053_p1)
}
  0xe5   : > { %s6057_s4 = scalar_lea.vmem %s602_s16, 16  ;;  %s6325_s14 = smov [#allocation16]  }
  0xe6   : > { %p6058_p0 = scmp.ne.s32.totalorder %s602_s16, %s6057_s4  ;;  %s6062_s19 = sshll.u32 %s6325_s14, 4  ;;  %s6063_s19 = int_to_ptr.vmem [resolvable:$false] %s6062_s19 }
  0xe7   : > { %s6064_s15 = scalar_lea.vmem %s6063_s19, 32  ;;  %p6065_p2 = scmp.lt.s32.totalorder %s602_s16, %s6063_s19 }
  0xe8   : > { %p6060_p7 = pnand %p6058_p0, %p6531_p13  ;;  %p6066_p11 = scmp.lt.s32.totalorder %s6064_s15, %s6057_s4 }
  0xea   : > { %p6061_p5 = pneg %p6060_p7  ;;  %p6067_p12 = por %p6066_p11, %p6065_p2 }
  0xec   : > { %p6068_p6 = pnand %p6067_p12, %p6061_p5 }
  0xee   : > { %6071 = shalt.err (!%p6068_p6)
}
  0xef   : > { %p8246_p10 = scmp.ne.s32.totalorder %s8228_s21, 0  ;;  %s6326_s6 = smov [#allocation8]  }
  0xf0   : > { %s451_s25 = sshll.u32 %s6326_s6, 4  ;;  %s8191_s5 = sshll.u32 %s6504_s18, 2  ;;  %s452_s25 = int_to_ptr.vmem [resolvable:$true] %s451_s25 }
  0xf1   : > { %5640 = dma.hbm_to_vmem [thread:$0]  (!%p8246_p10), %s6703_s22, 16, %s602_s16, %s6525_s0  }
  0xf2   : > { %s6072_s17 = scalar_lea.hbm %s8149_s2, 256  ;;  %p8247_p11 = scmp.ne.s32.totalorder %s8230_s13, 0 }
  0xf3   : > { %p6073_p12 = scmp.ne.s32.totalorder %s8149_s2, %s6072_s17  ;;  %p6079_p4 = scmp.lt.u32.totalorder %s6072_s17, %s8149_s2 }
  0xf5   : > { %p6075_p3 = pnand %p6073_p12, %p8247_p11 }
  0xf7   : > { %p6076_p8 = pneg %p6075_p3 }
  0xf9   : > { %p6081_p9 = pnand %p6079_p4, %p6076_p8 }
  0xfb   : > { %6084 = shalt.err (!%p6081_p9)
}
  0xfc   : > { %s6085_s22 = scalar_lea.vmem %s452_s25, 256  ;;  %p6093_p5 = scmp.lt.s32.totalorder %s452_s25, %s452_s25 }
  0xfd   : > { %p6086_p1 = scmp.ne.s32.totalorder %s452_s25, %s6085_s22  ;;  %p6094_p2 = scmp.lt.s32.totalorder %s6085_s22, %s6085_s22 }
  0xff   : > { %p6088_p0 = pnand %p6086_p1, %p8247_p11  ;;  %p6095_p6 = por %p6094_p2, %p6093_p5 }
 0x101   : > { %p6089_p7 = pneg %p6088_p0 }
 0x103   : > { %p6096_p10 = pnand %p6095_p6, %p6089_p7 }
 0x105   : > { %6099 = shalt.err (!%p6096_p10)
}
 0x106   : > { %p8248_p12 = scmp.ne.s32.totalorder %s8227_s20, 0  ;;  %s4632_s6 = sshll.u32 %s6308_s29, 6 }
 0x107   : > { %s612_s12 = scalar_lea.vmem [#allocation17], %s8191_s5  ;;  %s617_s4 = scalar_lea.hbm %s8157_s10, %s4632_s6 }
 0x108   : > { %5615 = dma.hbm_to_vmem [thread:$0]  (!%p8248_p12), %s8149_s2, 256, %s452_s25, [#allocation7], %s8245_s28, %s8245_s28, %s8244_s23  }
 0x109   : > { %s619_s24 = sshll.u32 %s612_s12, 4  ;;  %s6100_s14 = scalar_lea.hbm %s617_s4, 64  ;;  %s620_s24 = int_to_ptr.vmem [resolvable:$true] %s619_s24 }
 0x10a   : > { %p6101_p10 = scmp.ne.s32.totalorder %s617_s4, %s6100_s14  ;;  %s6105_s16 = scalar_lea.hbm %s8157_s10, 128 }
 0x10b   : > { %p6106_p4 = scmp.lt.u32.totalorder %s617_s4, %s8157_s10  ;;  %p6107_p9 = scmp.lt.u32.totalorder %s6105_s16, %s6100_s14 }
 0x10c   : > { %p6103_p3 = pnand %p6101_p10, %p6531_p13  ;;  %p6109_p0 = scmp.lt.u32.totalorder %s6100_s14, %s617_s4 }
 0x10d   : > { %p6108_p1 = por %p6107_p9, %p6106_p4 }
 0x10e   : > { %p6104_p8 = pneg %p6103_p3 }
 0x10f   : > { %p6110_p7 = por %p6109_p0, %p6108_p1 }
 0x111   : > { %p6111_p5 = pnand %p6110_p7, %p6104_p8 }
 0x113   : > { %6114 = shalt.err (!%p6111_p5)
}
 0x114   : > { %s6115_s12 = scalar_lea.vmem %s620_s24, 64  ;;  %s6327_s17 = smov [#allocation17]  }
 0x115   : > { %p6116_p2 = scmp.ne.s32.totalorder %s620_s24, %s6115_s12  ;;  %s6120_s26 = sshll.u32 %s6327_s17, 4  ;;  %s6121_s26 = int_to_ptr.vmem [resolvable:$false] %s6120_s26 }
 0x116   : > { %s6122_s19 = scalar_lea.vmem %s6121_s26, 128  ;;  %p6123_p3 = scmp.lt.s32.totalorder %s620_s24, %s6121_s26 }
 0x117   : > { %p6118_p6 = pnand %p6116_p2, %p6531_p13  ;;  %p6124_p12 = scmp.lt.s32.totalorder %s6122_s19, %s6115_s12 }
 0x119   : > { %p6119_p10 = pneg %p6118_p6  ;;  %p6125_p11 = por %p6124_p12, %p6123_p3 }
 0x11b   : > { %p6126_p4 = pnand %p6125_p11, %p6119_p10 }
 0x11d   : > { %6129 = shalt.err (!%p6126_p4)
}
 0x11e   : > { %p8249_p9 = scmp.ne.s32.totalorder %s8228_s21, 0  ;;  %s6328_s14 = smov [#allocation9]  }
 0x11f   : > { %s468_s22 = sshll.u32 %s6328_s14, 4  ;;  %s6329_s16 = smov [#allocation19]   ;;  %s469_s22 = int_to_ptr.vmem [resolvable:$true] %s468_s22 }
 0x120   : > { %5643 = dma.hbm_to_vmem [thread:$0]  (!%p8249_p9), %s617_s4, 64, %s620_s24, %s6525_s0  }
 0x121   : > { %s482_s25 = sshll.u32 %s6329_s16, 4  ;;  %s6130_s26 = scalar_lea.hbm %s8150_s3, 4096  ;;  %s6767_s25 = int_to_ptr.vmem [resolvable:$true] %s482_s25 }
 0x122   : > { %p6131_p11 = scmp.ne.s32.totalorder %s8150_s3, %s6130_s26  ;;  %p8250_p12 = scmp.ne.s32.totalorder %s8230_s13, 0 }
 0x123   : > { %p6137_p0 = scmp.lt.u32.totalorder %s6130_s26, %s8150_s3 }
 0x124   : > { %p6133_p8 = pnand %p6131_p11, %p8250_p12 }
 0x126   : > { %p6134_p1 = pneg %p6133_p8 }
 0x128   : > { %p6139_p7 = pnand %p6137_p0, %p6134_p1 }
 0x12a   : > { %6142 = shalt.err (!%p6139_p7)
}
 0x12b   : > { %s6143_s4 = scalar_lea.vmem %s469_s22, 4096  ;;  %p6151_p10 = scmp.lt.s32.totalorder %s469_s22, %s469_s22 }
 0x12c   : > { %p6144_p5 = scmp.ne.s32.totalorder %s469_s22, %s6143_s4  ;;  %p6152_p3 = scmp.lt.s32.totalorder %s6143_s4, %s6143_s4 }
 0x12e   : > { %p6146_p2 = pnand %p6144_p5, %p8250_p12  ;;  %p6153_p4 = por %p6152_p3, %p6151_p10 }
 0x130   : > { %p6147_p6 = pneg %p6146_p2 }
 0x132   : > { %p6154_p9 = pnand %p6153_p4, %p6147_p6 }
 0x134   : > { %6157 = shalt.err (!%p6154_p9)
}
 0x135   : > { %p8251_p11 = scmp.ne.s32.totalorder %s8227_s20, 0  ;;  %s8252_s17 = sld [smem:[#allocation48_spill]] }
 0x137   : > { %5618 = dma.hbm_to_vmem [thread:$0]  (!%p8251_p11), %s8150_s3, 4096, %s469_s22, [#allocation10], %s8245_s28, %s8245_s28, %s8244_s23  }
 0x13b   : > { %s6158_s26 = scalar_lea.hbm %s8252_s17, 32 }
 0x13c   : > { %p6159_p8 = scmp.ne.s32.totalorder %s8252_s17, %s6158_s26  ;;  %p6165_p0 = scmp.lt.u32.totalorder %s6158_s26, %s8252_s17 }
 0x13e   : > { %p6161_p9 = pnand %p6159_p8, %p8250_p12 }
 0x140   : > { %p6162_p1 = pneg %p6161_p9 }
 0x142   : > { %p6167_p7 = pnand %p6165_p0, %p6162_p1 }
 0x144   : > { %6170 = shalt.err (!%p6167_p7)
}
 0x145   : > { %s6171_s23 = scalar_lea.vmem %s6767_s25, 32  ;;  %p6179_p10 = scmp.lt.s32.totalorder %s6767_s25, %s6767_s25 }
 0x146   : > { %p6172_p5 = scmp.ne.s32.totalorder %s6767_s25, %s6171_s23  ;;  %p6180_p3 = scmp.lt.s32.totalorder %s6171_s23, %s6171_s23 }
 0x148   : > { %p6174_p2 = pnand %p6172_p5, %p8250_p12  ;;  %p6181_p4 = por %p6180_p3, %p6179_p10 }
 0x14a   : > { %p6175_p6 = pneg %p6174_p2 }
 0x14c   : > { %p6182_p8 = pnand %p6181_p4, %p6175_p6 }
 0x14e   : > { %6185 = shalt.err (!%p6182_p8)
}
 0x14f   : > { %5621 = dma.hbm_to_vmem [thread:$0]  (!%p8251_p11), %s8252_s17, 32, %s6767_s25, [#allocation7]  }
 0x150   : > { %s8253_s14 = sld [smem:[#allocation47_spill]]  ;;  %s8254_s15 = sshll.u32 %s6504_s18, 2 }
 0x151   : > { %s630_s20 = scalar_lea.vmem [#allocation18], %s8254_s15 }
 0x152   : > { %s637_s26 = sshll.u32 %s630_s20, 4  ;;  %s638_s26 = int_to_ptr.vmem [resolvable:$true] %s637_s26 }
 0x156   : > { %s6818_s16 = scalar_lea.hbm %s8253_s14, %s4632_s6  ;;  %s6191_s24 = scalar_lea.hbm %s8253_s14, 128 }
 0x157   : > { %s6186_s12 = scalar_lea.hbm %s6818_s16, 64  ;;  %p6192_p11 = scmp.lt.u32.totalorder %s6818_s16, %s8253_s14 }
 0x158   : > { %p6187_p12 = scmp.ne.s32.totalorder %s6818_s16, %s6186_s12  ;;  %p6193_p0 = scmp.lt.u32.totalorder %s6191_s24, %s6186_s12 }
 0x159   : > { %p6195_p5 = scmp.lt.u32.totalorder %s6186_s12, %s6818_s16 }
 0x15a   : > { %p6189_p9 = pnand %p6187_p12, %p6531_p13  ;;  %p6194_p7 = por %p6193_p0, %p6192_p11 }
 0x15c   : > { %p6190_p1 = pneg %p6189_p9  ;;  %p6196_p2 = por %p6195_p5, %p6194_p7 }
 0x15e   : > { %p6197_p6 = pnand %p6196_p2, %p6190_p1 }
 0x160   : > { %6200 = shalt.err (!%p6197_p6)
}
 0x161   : > { %s6201_s18 = scalar_lea.vmem %s638_s26, 64  ;;  %s6330_s23 = smov [#allocation18]  }
 0x162   : > { %p6202_p10 = scmp.ne.s32.totalorder %s638_s26, %s6201_s18  ;;  %s6206_s28 = sshll.u32 %s6330_s23, 4  ;;  %s6207_s28 = int_to_ptr.vmem [resolvable:$false] %s6206_s28 }
 0x163   : > { %s6208_s22 = scalar_lea.vmem %s6207_s28, 128  ;;  %p6209_p8 = scmp.lt.s32.totalorder %s638_s26, %s6207_s28 }
 0x164   : > { %p6204_p3 = pnand %p6202_p10, %p6531_p13  ;;  %p6210_p12 = scmp.lt.s32.totalorder %s6208_s22, %s6201_s18 }
 0x166   : > { %p6205_p4 = pneg %p6204_p3  ;;  %p6211_p9 = por %p6210_p12, %p6209_p8 }
 0x168   : > { %p6212_p0 = pnand %p6211_p9, %p6205_p4 }
 0x16a   : > { %6215 = shalt.err (!%p6212_p0)
}
 0x16b   : > { %p8255_p11 = scmp.ne.s32.totalorder %s8228_s21, 0  ;;  %s8256_s13 = sld [smem:[#allocation31_spill]] }
 0x16d   : > { %5646 = dma.hbm_to_vmem [thread:$0]  (!%p8255_p11), %s6818_s16, 64, %s638_s26, %s6525_s0  }
 0x171   : > { %p8257_p1 = scmp.ne.s32.totalorder %s8256_s13, 0 }
 0x173   : > { %646 = sbr.rel (%p8257_p1) target bundleno = 6935 (0x1b17), region = 72 }
 0x17a   : > { %s8258_s11 = sld [smem:[#allocation29_spill]] }
 0x180   : > { %p8259_p13 = scmp.eq.s32.totalorder %s8258_s11, 0 }
 0x182   : > { %6267 = dma.done.wait (%p8259_p13), [#allocation4], 256   ;;  %p8260_p7 = pmov %p8259_p13 }
 0x184   : > { %6269 = vsyncadd (%p8260_p7), [#allocation4], 4294967040  ;;  %p8261_p5 = pmov %p8260_p7 }
 0x186   : > { %6271 = dma.done.wait (%p8261_p5), [#allocation7], 4352   ;;  %p8262_p2 = pmov %p8261_p5 }
 0x188   : > { %6273 = vsyncadd (%p8262_p2), [#allocation7], 4294962944  ;;  %p8263_p6 = pmov %p8262_p2 }
 0x189   : > { %p8264_p10 = pmov %p8262_p2 }
 0x18a   : > { %6275 = dma.done.wait (%p8263_p6), [#allocation10], 4096  }
 0x18b   : > { %6277 = vsyncadd (%p8264_p10), [#allocation10], 4294963200  ;;  %s8265_s0 = sld [smem:[#allocation27_spill]]  ;;  %s8266_s21 = sld [smem:[#allocation30_spill]] }
 0x18c   : > { %s664_s5 = sand.u32 1, %s8258_s11  }
 0x18d   : > { %s665_s20 = scalar_lea.sflag [#allocation4], %s664_s5 }
 0x191   : > { %s6856_s16 = sand.u32 1, %s8265_s0   ;;  %p8267_p3 = scmp.ne.s32.totalorder %s8266_s21, 0 }
 0x192   : > { %s4640_s15 = sshll.u32 %s6856_s16, 7 }
 0x193   : > { %s6859_s26 = scalar_lea.vmem [#allocation11], %s4640_s15 }
 0x194   : > { %6279 = dma.done.wait (%p8267_p3), %s665_s20, 3104  }
 0x195   : > { %6281 = vsyncadd (%p8267_p3), %s665_s20, 4294964192  ;;  %s4641_s12 = sshll.u32 %s6856_s16, 3  ;;  %s4642_s25 = sshll.u32 %s6856_s16, 4 }
 0x196   : > { %s4643_s19 = sshll.u32 %s6856_s16, 5  ;;  %s4644_s24 = sshll.u32 %s6856_s16, 2 }
 0x197   : > { %s6869_s4 = scalar_lea.vmem [#allocation12], %s4641_s12  ;;  %s6871_s6 = scalar_lea.vmem [#allocation13], %s4642_s25 }
 0x198   : > { %s694_s18 = scalar_lea.vmem [#allocation14], %s6856_s16  ;;  %s6874_s23 = scalar_lea.vmem [#allocation15], %s4643_s19 }
 0x199   : > { %s711_s28 = scalar_lea.vmem [#allocation16], %s6856_s16  ;;  %s6877_s22 = scalar_lea.vmem [#allocation17], %s4644_s24 }
 0x19a   : > { %s6879_s13 = scalar_lea.vmem [#allocation18], %s4644_s24  ;;  %p8268_p4 = pmov %p8262_p2 }
 0x19b   : > { %p8269_p8 = pmov %p8262_p2 }
 0x19c   : > { %6283 = dma.done.wait (%p8268_p4), [#allocation7], 32  }
 0x19d   : > { %6285 = vsyncadd (%p8269_p8), [#allocation7], 4294967264  ;;  %s8270_s0 = sld [smem:[#allocation28_spill]] }
 0x1a3   : > { %p4647_p12 = scmp.ne.s32.totalorder %s8270_s0, 0 }
 0x1a4   : > { %v814_v0 = vld [vmem:[#allocation3] sm:$0xff] (!%p4647_p12)  ;;  %vm816_vm0 = vcmask (!%p4647_p12), 261120   ;;  %v815_v1 = vld [vmem:[#allocation3 + $0x8] sm:$0xff] (!%p4647_p12) }
 0x1a5   : > { %813 = sbr.rel (%p4647_p12) target bundleno = 428 (0x1ac), region = 128  ;;  %817 = vst.msk [vmem:[#allocation20] sm:$0xff] (!%p4647_p12), %vm816_vm0, %v814_v0  ;;  %818 = vst.msk [vmem:[#allocation20 + $0x8] sm:$0xff] (!%p4647_p12), %vm816_vm0, %v815_v1 }
 0x1ac PF: > { %v5728_v2 = vld [vmem:[%s6859_s26 + $0x10] sm:$0xff]   ;;  %v8197_v3 = vmov 0.0   ;;  %v5729_v4 = vld [vmem:[%s6859_s26 + $0x18] sm:$0xff]   ;;  %v5730_v5 = vld [vmem:[%s6859_s26] sm:$0xff]   ;;  %vm6332_vm1 = vmmov 0   ;;  %vm913_vm2 = vcmask 261120   ;;  %v8192_v17 = vlaneseq }
 0x1ad   : > { %5018 = vmatprep.subr.bf16.mxu1 %v8197_v3  ;;  %5010 = vmatprep.subr.bf16.mxu0 %v8197_v3  ;;  %v6894_v6 = vld [vmem:[#allocation20] sm:$0xff]  ;;  %v6896_v7 = vld [vmem:[#allocation20 + $0x8] sm:$0xff]  ;;  %v822_v9 = vld [vmem:[#allocation8 + $0x8] sm:$0xff]  ;;  %vm1092_vm3 = vcmask 64512   ;;  %s6333_s11 = smov 120   ;;  %vm1208_vm4 = vcmask 1043456  }
 0x1ae   : > { %5019 = vmatpush3.bf16.msra.mxu1 %v5728_v2  ;;  %5022 = vmatprep.mubr.msk.bf16.mxu1 %vm6332_vm1, %v8197_v3  ;;  %v821_v8 = vld [vmem:[#allocation8] sm:$0xff]  ;;  %v891_v11 = vadd.f32 %v822_v9, %v6896_v7  ;;  %v5731_v12 = vld [vmem:[%s6859_s26 + $0x8] sm:$0xff]   ;;  %v5732_v14 = vld [vmem:[%s6859_s26 + $0x20] sm:$0xff]   ;;  %v1020_v16 = vpack.c.bf16 %v6896_v7, %v6894_v6  ;;  %v6922_v18 = vshrl.u32 %v8192_v17, 7  ;;  %s6334_s21 = smov 112   ;;  %s6335_s5 = smov 104  }
 0x1af   : > { %5020 = vmatprep.subr.bf16.mxu1 %v8197_v3  ;;  %5014 = vmatprep.mubr.msk.bf16.mxu0 %vm6332_vm1, %v8197_v3  ;;  %v890_v10 = vadd.f32 %v821_v8, %v6894_v6  ;;  %v5733_v15 = vld [vmem:[%s6859_s26 + $0x28] sm:$0xff]   ;;  %s6336_s15 = smov 8   ;;  %s6337_s20 = smov 16   ;;  %vm1538_vm5 = vcmask 130112   ;;  %vm1769_vm6 = vcmask 195712   ;;  %vm2000_vm7 = vcmask 261312  }
 0x1b0   : > { %5011 = vmatpush3.bf16.msra.mxu0 %v5730_v5  ;;  %v6925_v19 = vsub.s32 1, %v6922_v18  ;;  %v6928_v20 = vld [vmem:[%s6869_s4] sm:$0xff]  ;;  %v6933_v22 = vsub.s32 0, %v6922_v18  ;;  %v6966_v42 = vsub.s32 2, %v6922_v18  ;;  %s6338_s12 = smov 24   ;;  %vm4214_vm9 = vcmask 523264  }
 0x1b1   : > { %5012 = vmatprep.subr.bf16.mxu0 %v8197_v3  ;;  %v892_v13 = vpack.c.bf16 %v891_v11, %v890_v10  ;;  %s8291_s16 = sld [smem:[#allocation28_spill]] }
 0x1b2   : > { %5021 = vmatpush3.bf16.msra.mxu1 %v5729_v4  ;;  %8271 = vst [vmem:[#allocation34_spill] sm:$0xff] %v6925_v19  ;;  %v966_v21 = vrot.slane %v6928_v20, %v6925_v19  ;;  %v900_v26 = vrot.slane %v6928_v20, %v6933_v22  ;;  %8272 = vst [vmem:[#allocation35_spill] sm:$0xff] %v6966_v42  ;;  %v1029_v43 = vrot.slane %v6928_v20, %v6966_v42 }
 0x1b3   : > { %5034 = vmatprep.subr.bf16.mxu1 %v8197_v3 }
 0x1b4   : > { %5013 = vmatpush3.bf16.msra.mxu0 %v5731_v12 }
 0x1b5   : > { %5023 = vmatmul.mubr.msk.bf16.vlgmr.msra.gmra.mrb[0].mxu1 %vm913_vm2, %v892_v13  ;;  %5026 = vmatprep.subr.bf16.mxu0 %v8197_v3 }
 0x1b6   : > { %5036 = vmatprep.mubr.msk.bf16.mxu1 %vm6332_vm1, %v8197_v3 }
 0x1b7   : > { %5015 = vmatmul.mubr.msk.bf16.vlgmr.msra.gmra.mrb[0].mxu0 %vm913_vm2, %v892_v13  ;;  %p4764_p9 = scmp.ne.s32.totalorder %s8291_s16, 1 }
 0x1b8   : > { %5027 = vmatpush3.bf16.msra.mxu0 %v5732_v14  ;;  %5030 = vmatprep.mubr.msk.bf16.mxu0 %vm6332_vm1, %v8197_v3 }
 0x1b9   : > { %5028 = vmatprep.subr.bf16.mxu0 %v8197_v3 }
 0x1bc   : > { %5029 = vmatpush3.bf16.msra.mxu0 %v5733_v15 }
 0x1bd   : > { %5040 = vmatprep.subr.bf16.mxu0 %v8197_v3 }
 0x1bf   : > { %5031 = vmatmul.mubr.msk.bf16.vlgmr.msra.gmra.mrb[4].mxu0 %vm913_vm2, %v1020_v16 }
 0x1c0   : > { %5042 = vmatprep.mubr.msk.bf16.mxu0 %vm6332_vm1, %v8197_v3 }
 0x288   : > { %v1013_v23 = vpop.f32.mrb[0].mxu1 }
 0x289   : > { %v1014_v24 = vadd.f32 %v1013_v23, %v966_v21  ;;  %v5024_v25 = vpop.f32.mrb[1].mxu1 }
 0x28a   : > { %v1016_v27 = vpop.f32.mrb[2].mxu1  ;;  %v951_v28 = vpop.f32.mrb[0].mxu0 }
 0x28b   : > { %v6937_v29 = vpack.c.bf16 %v1014_v24, %v1014_v24  ;;  %v1017_v30 = vadd.f32 %v1016_v27, %v966_v21  ;;  %v5025_v31 = vpop.f32.mrb[3].mxu1  ;;  %v5016_v32 = vpop.f32.mrb[1].mxu0  ;;  %v952_v35 = vadd.f32 %v951_v28, %v900_v26 }
 0x28c   : > { %v954_v33 = vpop.f32.mrb[2].mxu0 }
 0x28d   : > { %v6939_v34 = vpack.c.bf16 %v1017_v30, %v1017_v30  ;;  %1308 = vrot.lane.b32.xlu1 %v6937_v29, %s6333_s11  ;;  %v1097_v36 = vsel %vm1092_vm3, %v6937_v29, 0  ;;  %v955_v37 = vadd.f32 %v954_v33, %v900_v26  ;;  %v5017_v38 = vpop.f32.mrb[3].mxu0  ;;  %v6948_v40 = vpack.c.bf16 %v952_v35, %v952_v35 }
 0x28e   : > { %5035 = vmatpush3.bf16.xpose.msra.mxu1 %v1097_v36 }
 0x28f   : > { %v1143_v39 = vsel %vm1092_vm3, %v6939_v34, 0  ;;  %5046 = vmatprep.subr.bf16.mxu1 %v8197_v3  ;;  %v6950_v41 = vpack.c.bf16 %v955_v37, %v955_v37 }
 0x290   : > { %5041 = vmatpush3.bf16.xpose.msra.mxu0 %v1143_v39 }
 0x291   : > { %1360 = vrot.lane.b32.xlu1 %v6939_v34, %s6333_s11  ;;  %5052 = vmatprep.subr.bf16.mxu0 %v8197_v3 }
 0x292   : > { %v1079_v44 = vpop.f32.mrb[4].mxu0 }
 0x293   : > { %v1080_v45 = vadd.f32 %v1079_v44, %v1029_v43  ;;  %v5032_v46 = vpop.f32.mrb[5].mxu0 }
 0x294   : > { %v1082_v47 = vpop.f32.mrb[6].mxu0 }
 0x295   : > { %5037 = vmatmul.mubr.msk.bf16.vlgmr.msra.gmra.mrb[4].mxu1 %vm1092_vm3, %v6948_v40  ;;  %1357 = vrot.lane.b32.xlu1 %v6950_v41, %s6333_s11  ;;  %v6970_v48 = vpack.c.bf16 %v1080_v45, %v1080_v45  ;;  %v1083_v49 = vadd.f32 %v1082_v47, %v1029_v43  ;;  %v5033_v50 = vpop.f32.mrb[7].mxu0 }
 0x296   : > { %5048 = vmatprep.mubr.msk.bf16.mxu1 %vm6332_vm1, %v8197_v3 }
 0x297   : > { %5043 = vmatmul.mubr.msk.bf16.vlgmr.msra.gmra.mrb[8].mxu0 %vm1092_vm3, %v6950_v41  ;;  %v6972_v51 = vpack.c.bf16 %v1083_v49, %v1083_v49  ;;  %v1210_v52 = vsel %vm1208_vm4, %v6970_v48, 0 }
 0x298   : > { %5054 = vmatprep.mubr.msk.bf16.mxu0 %vm6332_vm1, %v8197_v3  ;;  %5047 = vmatpush3.bf16.msra.mxu1 %v1210_v52 }
 0x299   : > { %1429 = vrot.lane.b32.xlu1 %v6970_v48, %s6333_s11  ;;  %v1256_v53 = vsel %vm1208_vm4, %v6972_v51, 0  ;;  %5058 = vmatprep.subr.bf16.mxu1 %v8197_v3 }
 0x29a   : > { %5053 = vmatpush3.bf16.msra.mxu0 %v1256_v53 }
 0x29b   : > { %5064 = vmatprep.subr.bf16.mxu0 %v8197_v3 }
 0x2ff   : > { %v1309_v8 = vpop.permute.xlu1 %1308 }
 0x300   : > { %v1314_v13 = vsel %vm1092_vm3, %v1309_v8, 0 }
 0x303   : > { %v1361_v10 = vpop.permute.xlu1 %1360 }
 0x304   : > { %v1366_v21 = vsel %vm1092_vm3, %v1361_v10, 0 }
 0x307   : > { %v1358_v15 = vpop.permute.xlu1 %1357 }
 0x30b   : > { %v1430_v23 = vpop.permute.xlu1 %1429 }
 0x30c   : > { %v1435_v25 = vsel %vm1208_vm4, %v1430_v23, 0 }
 0x368   : > { %v1133_v54 = vpop.f32.mrb[4].mxu1 }
 0x369   : > { %v5038_v55 = vpop.f32.mrb[5].mxu1  ;;  %v1185_v56 = vsel %vm1092_vm3, %v1133_v54, -inf }
 0x36a   : > { %1186 = vmax.xlane.f32.xlu0 %v1185_v56  ;;  %v1136_v57 = vpop.f32.mrb[6].mxu1  ;;  %v1179_v58 = vpop.f32.mrb[8].mxu0 }
 0x36b   : > { %v5039_v59 = vpop.f32.mrb[7].mxu1  ;;  %v5044_v60 = vpop.f32.mrb[9].mxu0  ;;  %v1188_v63 = vsel %vm1092_vm3, %v1179_v58, -inf }
 0x36c   : > { %v1182_v61 = vpop.f32.mrb[10].mxu0 }
 0x36d   : > { %v5045_v62 = vpop.f32.mrb[11].mxu0 }
 0x36e   : > { %1189 = vmax.xlane.f32.xlu0 %v1188_v63 }
 0x384   : > { %1305 = vrot.lane.b32.xlu0 %v6948_v40, %s6333_s11 }
 0x3f7   : > { %v1187_v0 = vpop.xlane.xlu0 %1186 }
 0x3f8   : > { %v1191_v1 = vsub.f32 %v1133_v54, %v1187_v0 }
 0x3fa   : > { %v1193_v2 = vmul.f32 1.442695, %v1191_v1 }
 0x3fb   : > { %v1190_v4 = vpop.xlane.xlu0 %1189 }
 0x3fc   : > { %5750 = vpow2.f32 %v1193_v2  ;;  %v1192_v5 = vsub.f32 %v1179_v58, %v1190_v4 }
 0x3fe   : > { %v1195_v9 = vmul.f32 1.442695, %v1192_v5 }
 0x3ff   : > { %v1306_v24 = vpop.permute.xlu0 %1305 }
 0x400   : > { %5752 = vpow2.f32 %v1195_v9 }
 0x406   : > { %v6986_v11 = vpop.eup %5750 }
 0x407   : > { %v1203_v12 = vpack.c.bf16 %v6986_v11, %v6986_v11 }
 0x409   : > { %5049 = vmatmul.mubr.msk.bf16.vlgmr.msra.gmra.mrb[8].mxu1 %vm1092_vm3, %v1203_v12 }
 0x40a   : > { %v6992_v14 = vpop.eup %5752  ;;  %5059 = vmatpush3.bf16.xpose.msra.mxu1 %v1314_v13  ;;  %5060 = vmatprep.mubr.msk.bf16.mxu1 %vm6332_vm1, %v8197_v3 }
 0x40b   : > { %v1204_v16 = vpack.c.bf16 %v6992_v14, %v6992_v14  ;;  %5070 = vmatprep.subr.bf16.mxu1 %v8197_v3 }
 0x40d   : > { %5055 = vmatmul.mubr.msk.bf16.vlgmr.msra.gmra.mrb[12].mxu0 %vm1092_vm3, %v1204_v16 }
 0x40e   : > { %5065 = vmatpush3.bf16.xpose.msra.mxu0 %v1366_v21  ;;  %5066 = vmatprep.mubr.msk.bf16.mxu0 %vm6332_vm1, %v8197_v3 }
 0x40f   : > { %5076 = vmatprep.subr.bf16.mxu0 %v8197_v3 }
 0x411   : > { %5061 = vmatmul.mubr.msk.bf16.vlgmr.msra.gmra.mrb[12].mxu1 %vm1092_vm3, %v1306_v24 }
 0x412   : > { %5071 = vmatpush3.bf16.msra.mxu1 %v1435_v25  ;;  %5072 = vmatprep.mubr.msk.bf16.mxu1 %vm6332_vm1, %v8197_v3 }
 0x413   : > { %5082 = vmatprep.subr.bf16.mxu1 %v8197_v3 }
 0x415   : > { %5067 = vmatmul.mubr.msk.bf16.vlgmr.msra.gmra.mrb[16].mxu0 %vm1092_vm3, %v1358_v15 }
 0x416   : > { %5078 = vmatprep.mubr.msk.bf16.mxu0 %vm6332_vm1, %v8197_v3 }
 0x4dc   : > { %v7012_v26 = vpop.f32.mrb[8].mxu1 }
 0x4dd   : > { %v5050_v27 = vpop.f32.mrb[9].mxu1 }
 0x4de   : > { %v1249_v28 = vpop.f32.mrb[10].mxu1 }
 0x4df   : > { %v5051_v30 = vpop.f32.mrb[11].mxu1 }
 0x4e0   : > { %v7014_v31 = vpop.f32.mrb[12].mxu0 }
 0x4e1   : > { %v5056_v32 = vpop.f32.mrb[13].mxu0 }
 0x4e2   : > { %v1295_v33 = vpop.f32.mrb[14].mxu0 }
 0x4e3   : > { %v5057_v35 = vpop.f32.mrb[15].mxu0 }
 0x4e4   : > { %v1350_v36 = vpop.f32.mrb[12].mxu1 }
 0x4e5   : > { %v5062_v37 = vpop.f32.mrb[13].mxu1  ;;  %v1408_v38 = vsel %vm1092_vm3, %v1350_v36, -inf }
 0x4e6   : > { %1409 = vmax.xlane.f32.xlu1 %v1408_v38  ;;  %v1353_v39 = vpop.f32.mrb[14].mxu1 }
 0x4e7   : > { %v5063_v43 = vpop.f32.mrb[15].mxu1 }
 0x4e8   : > { %v1402_v44 = vpop.f32.mrb[16].mxu0 }
 0x4e9   : > { %v5068_v45 = vpop.f32.mrb[17].mxu0  ;;  %v1411_v46 = vsel %vm1092_vm3, %v1402_v44, -inf }
 0x4ea   : > { %1412 = vmax.xlane.f32.xlu0 %v1411_v46  ;;  %v1405_v47 = vpop.f32.mrb[18].mxu0 }
 0x4eb   : > { %v5069_v49 = vpop.f32.mrb[19].mxu0 }
 0x4f7   : > { %1543 = vrot.lane.b32.xlu1 %v6937_v29, %s6334_s21 }
 0x4fb   : > { %1593 = vrot.lane.b32.xlu1 %v6939_v34, %s6334_s21 }
 0x4ff   : > { %1541 = vrot.lane.b32.xlu1 %v6948_v40, %s6334_s21 }
 0x500   : > { %1478 = vrot.lane.b32.xlu0 %v6972_v51, %s6333_s11 }
 0x503   : > { %1591 = vrot.lane.b32.xlu1 %v6950_v41, %s6334_s21 }
 0x504   : > { %1661 = vrot.lane.b32.xlu0 %v6970_v48, %s6334_s21 }
 0x507   : > { %1709 = vrot.lane.b32.xlu1 %v6972_v51, %s6334_s21 }
 0x573   : > { %v1410_v50 = vpop.xlane.xlu1 %1409 }
 0x574   : > { %v1414_v52 = vsub.f32 %v1350_v36, %v1410_v50 }
 0x576   : > { %v1416_v53 = vmul.f32 1.442695, %v1414_v52 }
 0x577   : > { %v1544_v54 = vpop.permute.xlu1 %1543  ;;  %v1413_v55 = vpop.xlane.xlu0 %1412 }
 0x578   : > { %5754 = vpow2.f32 %v1416_v53  ;;  %v1415_v56 = vsub.f32 %v1402_v44, %v1413_v55  ;;  %v1549_v0 = vsel %vm1092_vm3, %v1544_v54, 0 }
 0x57a   : > { %v1418_v57 = vmul.f32 1.442695, %v1415_v56 }
 0x57b   : > { %v1479_v58 = vpop.permute.xlu0 %1478  ;;  %v1594_v59 = vpop.permute.xlu1 %1593 }
 0x57c   : > { %5756 = vpow2.f32 %v1418_v57  ;;  %v1484_v60 = vsel %vm1208_vm4, %v1479_v58, 0  ;;  %v1599_v5 = vsel %vm1092_vm3, %v1594_v59, 0 }
 0x57d   : > { %5077 = vmatpush3.bf16.msra.mxu0 %v1484_v60 }
 0x57e   : > { %5088 = vmatprep.subr.bf16.mxu0 %v8197_v3 }
 0x57f   : > { %v1542_v62 = vpop.permute.xlu1 %1541  ;;  %v1662_v8 = vpop.permute.xlu0 %1661 }
 0x580   : > { %v1667_v9 = vsel %vm1208_vm4, %v1662_v8, 0 }
 0x582   : > { %v7034_v61 = vpop.eup %5754 }
 0x583   : > { %v1426_v63 = vpack.c.bf16 %v7034_v61, %v7034_v61  ;;  %v1592_v4 = vpop.permute.xlu1 %1591 }
 0x585   : > { %5073 = vmatmul.mubr.msk.bf16.vlgmr.msra.gmra.mrb[16].mxu1 %vm1092_vm3, %v1426_v63 }
 0x586   : > { %v7040_v1 = vpop.eup %5756  ;;  %5083 = vmatpush3.bf16.xpose.msra.mxu1 %v1549_v0  ;;  %5084 = vmatprep.mubr.msk.bf16.mxu1 %vm6332_vm1, %v8197_v3 }
 0x587   : > { %v1427_v2 = vpack.c.bf16 %v7040_v1, %v7040_v1  ;;  %5094 = vmatprep.subr.bf16.mxu1 %v8197_v3  ;;  %v1710_v10 = vpop.permute.xlu1 %1709 }
 0x588   : > { %v1715_v12 = vsel %vm1208_vm4, %v1710_v10, 0 }
 0x589   : > { %5079 = vmatmul.mubr.msk.bf16.vlgmr.msra.gmra.mrb[20].mxu0 %vm1092_vm3, %v1427_v2 }
 0x58a   : > { %5089 = vmatpush3.bf16.xpose.msra.mxu0 %v1599_v5  ;;  %5090 = vmatprep.mubr.msk.bf16.mxu0 %vm6332_vm1, %v8197_v3 }
 0x58b   : > { %5100 = vmatprep.subr.bf16.mxu0 %v8197_v3 }
 0x58d   : > { %5085 = vmatmul.mubr.msk.bf16.vlgmr.msra.gmra.mrb[20].mxu1 %vm1092_vm3, %v1542_v62 }
 0x58e   : > { %5095 = vmatpush3.bf16.msra.mxu1 %v1667_v9  ;;  %5096 = vmatprep.mubr.msk.bf16.mxu1 %vm6332_vm1, %v8197_v3 }
 0x58f   : > { %5106 = vmatprep.subr.bf16.mxu1 %v8197_v3 }
 0x591   : > { %5091 = vmatmul.mubr.msk.bf16.vlgmr.msra.gmra.mrb[24].mxu0 %vm1092_vm3, %v1592_v4 }
 0x592   : > { %5101 = vmatpush3.bf16.msra.mxu0 %v1715_v12  ;;  %5102 = vmatprep.mubr.msk.bf16.mxu0 %vm6332_vm1, %v8197_v3 }
 0x593   : > { %5112 = vmatprep.subr.bf16.mxu0 %v8197_v3 }
 0x658   : > { %v7062_v13 = vpop.f32.mrb[16].mxu1 }
 0x659   : > { %v5074_v15 = vpop.f32.mrb[17].mxu1 }
 0x65a   : > { %v1474_v16 = vpop.f32.mrb[18].mxu1 }
 0x65b   : > { %v5075_v21 = vpop.f32.mrb[19].mxu1 }
 0x65c   : > { %v7064_v23 = vpop.f32.mrb[20].mxu0 }
 0x65d   : > { %v5080_v24 = vpop.f32.mrb[21].mxu0 }
 0x65e   : > { %v1523_v25 = vpop.f32.mrb[22].mxu0 }
 0x65f   : > { %v5081_v27 = vpop.f32.mrb[23].mxu0 }
 0x660   : > { %v1585_v28 = vpop.f32.mrb[20].mxu1  ;;  %v1420_v27 = vsel %vm1092_vm3, %v7034_v61, 0.0 }
 0x661   : > { %v5086_v30 = vpop.f32.mrb[21].mxu1  ;;  %v1641_v32 = vsel %vm1092_vm3, %v1585_v28, -inf }
 0x662   : > { %1642 = vmax.xlane.f32.xlu1 %v1641_v32  ;;  %v1588_v33 = vpop.f32.mrb[22].mxu1  ;;  %v1423_v30 = vsel %vm1092_vm3, %v7040_v1, 0.0 }
 0x663   : > { %v5087_v35 = vpop.f32.mrb[23].mxu1 }
 0x664   : > { %v1635_v36 = vpop.f32.mrb[24].mxu0 }
 0x665   : > { %v5092_v37 = vpop.f32.mrb[25].mxu0  ;;  %v1644_v38 = vsel %vm1092_vm3, %v1635_v36, -inf }
 0x666   : > { %1645 = vmax.xlane.f32.xlu0 %v1644_v38  ;;  %v1638_v39 = vpop.f32.mrb[26].mxu0 }
 0x667   : > { %v5093_v43 = vpop.f32.mrb[27].mxu0 }
 0x673   : > { %1774 = vrot.lane.b32.xlu1 %v6937_v29, %s6335_s5 }
 0x677   : > { %1772 = vrot.lane.b32.xlu1 %v6948_v40, %s6335_s5 }
 0x67c   : > { %1824 = vrot.lane.b32.xlu0 %v6939_v34, %s6335_s5 }
 0x680   : > { %1822 = vrot.lane.b32.xlu0 %v6950_v41, %s6335_s5 }
 0x6ef   : > { %v1643_v44 = vpop.xlane.xlu1 %1642 }
 0x6f0   : > { %v1647_v45 = vsub.f32 %v1585_v28, %v1643_v44 }
 0x6f2   : > { %v1649_v46 = vmul.f32 1.442695, %v1647_v45 }
 0x6f3   : > { %v1646_v47 = vpop.xlane.xlu0 %1645  ;;  %v1775_v53 = vpop.permute.xlu1 %1774 }
 0x6f4   : > { %5758 = vpow2.f32 %v1649_v46  ;;  %v1648_v49 = vsub.f32 %v1635_v36, %v1646_v47  ;;  %v1780_v54 = vsel %vm1092_vm3, %v1775_v53, 0  ;;  %v1197_v47 = vsel %vm1092_vm3, %v6986_v11, 0.0 }
 0x6f6   : > { %v1651_v50 = vmul.f32 1.442695, %v1648_v49 }
 0x6f7   : > { %v1825_v34 = vpop.permute.xlu0 %1824  ;;  %v1773_v56 = vpop.permute.xlu1 %1772 }
 0x6f8   : > { %5760 = vpow2.f32 %v1651_v50  ;;  %v1830_v55 = vsel %vm1092_vm3, %v1825_v34, 0 }
 0x6fb   : > { %v1823_v57 = vpop.permute.xlu0 %1822 }
 0x6fe   : > { %v5759_v52 = vpop.eup %5758 }
 0x6ff   : > { %v1659_v29 = vpack.c.bf16 %v5759_v52, %v5759_v52  ;;  %v1653_v32 = vsel %vm1092_vm3, %v5759_v52, 0.0  ;;  %v1200_v52 = vsel %vm1092_vm3, %v6992_v14, 0.0 }
 0x701   : > { %5097 = vmatmul.mubr.msk.bf16.vlgmr.msra.gmra.mrb[24].mxu1 %vm1092_vm3, %v1659_v29 }
 0x702   : > { %v5761_v40 = vpop.eup %5760  ;;  %5107 = vmatpush3.bf16.xpose.msra.mxu1 %v1780_v54  ;;  %5108 = vmatprep.mubr.msk.bf16.mxu1 %vm6332_vm1, %v8197_v3 }
 0x703   : > { %v1660_v41 = vpack.c.bf16 %v5761_v40, %v5761_v40  ;;  %5118 = vmatprep.subr.bf16.mxu1 %v8197_v3  ;;  %v1656_v28 = vsel %vm1092_vm3, %v5761_v40, 0.0 }
 0x705   : > { %5103 = vmatmul.mubr.msk.bf16.vlgmr.msra.gmra.mrb[28].mxu0 %vm1092_vm3, %v1660_v41 }
 0x706   : > { %5113 = vmatpush3.bf16.xpose.msra.mxu0 %v1830_v55  ;;  %5114 = vmatprep.mubr.msk.bf16.mxu0 %vm6332_vm1, %v8197_v3 }
 0x707   : > { %5124 = vmatprep.subr.bf16.mxu0 %v8197_v3 }
 0x709   : > { %5109 = vmatmul.mubr.msk.bf16.vlgmr.msra.gmra.mrb[28].mxu1 %vm1092_vm3, %v1773_v56 }
 0x70a   : > { %5120 = vmatprep.mubr.msk.bf16.mxu1 %vm6332_vm1, %v8197_v3 }
 0x70d   : > { %5115 = vmatmul.mubr.msk.bf16.vlgmr.msra.gmra.mrb[32].mxu0 %vm1092_vm3, %v1823_v57 }
 0x70e   : > { %5126 = vmatprep.mubr.msk.bf16.mxu0 %vm6332_vm1, %v8197_v3 }
 0x7d4   : > { %v7092_v58 = vpop.f32.mrb[24].mxu1 }
 0x7d5   : > { %v5098_v59 = vpop.f32.mrb[25].mxu1 }
 0x7d6   : > { %v1706_v60 = vpop.f32.mrb[26].mxu1 }
 0x7d7   : > { %v5099_v62 = vpop.f32.mrb[27].mxu1 }
 0x7d8   : > { %v7094_v63 = vpop.f32.mrb[28].mxu0 }
 0x7d9   : > { %v5104_v0 = vpop.f32.mrb[29].mxu0 }
 0x7da   : > { %v1754_v2 = vpop.f32.mrb[30].mxu0 }
 0x7db   : > { %v5105_v4 = vpop.f32.mrb[31].mxu0 }
 0x7dc   : > { %v1816_v5 = vpop.f32.mrb[28].mxu1 }
 0x7dd   : > { %v5110_v8 = vpop.f32.mrb[29].mxu1  ;;  %v1872_v9 = vsel %vm1092_vm3, %v1816_v5, -inf }
 0x7de   : > { %1873 = vmax.xlane.f32.xlu1 %v1872_v9  ;;  %v1819_v10 = vpop.f32.mrb[30].mxu1  ;;  %v5735_v9 = vld [vmem:[%s6859_s26 + $0x38] sm:$0xff]  }
 0x7df   : > { %v5111_v12 = vpop.f32.mrb[31].mxu1 }
 0x7e0   : > { %v1866_v15 = vpop.f32.mrb[32].mxu0 }
 0x7e1   : > { %v5116_v16 = vpop.f32.mrb[33].mxu0  ;;  %v1875_v21 = vsel %vm1092_vm3, %v1866_v15, -inf }
 0x7e2   : > { %1876 = vmax.xlane.f32.xlu0 %v1875_v21  ;;  %v1869_v24 = vpop.f32.mrb[34].mxu0 }
 0x7e3   : > { %v5117_v25 = vpop.f32.mrb[35].mxu0 }
 0x7ef   : > { %1940 = vrot.lane.b32.xlu1 %v6972_v51, %s6335_s5 }
 0x7f8   : > { %1892 = vrot.lane.b32.xlu0 %v6970_v48, %s6335_s5 }
 0x813   : > { %1421 = vadd.xlane.f32.xlu1 %v1420_v27 }
 0x817   : > { %1657 = vadd.xlane.f32.xlu1 %v1656_v28  ;;  %1424 = vadd.xlane.f32.xlu0 %v1423_v30 }
 0x81b   : > { %1654 = vadd.xlane.f32.xlu0 %v1653_v32 }
 0x86b   : > { %v1874_v33 = vpop.xlane.xlu1 %1873 }
 0x86c   : > { %v1878_v35 = vsub.f32 %v1816_v5, %v1874_v33 }
 0x86e   : > { %v1880_v51 = vmul.f32 1.442695, %v1878_v35 }
 0x86f   : > { %v1941_v36 = vpop.permute.xlu1 %1940  ;;  %v1877_v37 = vpop.xlane.xlu0 %1876 }
 0x870   : > { %5762 = vpow2.f32 %v1880_v51  ;;  %v1946_v48 = vsel %vm1208_vm4, %v1941_v36, 0  ;;  %v1879_v61 = vsub.f32 %v1866_v15, %v1877_v37 }
 0x871   : > { %5125 = vmatpush3.bf16.msra.mxu0 %v1946_v48 }
 0x872   : > { %v1882_v38 = vmul.f32 1.442695, %v1879_v61  ;;  %5138 = vmatprep.subr.bf16.mxu0 %v8197_v3  ;;  %v2013_v61 = vsub.s32 3, %v6922_v18 }
 0x873   : > { %v1893_v39 = vpop.permute.xlu0 %1892 }
 0x874   : > { %5764 = vpow2.f32 %v1882_v38  ;;  %v1898_v1 = vsel %vm1208_vm4, %v1893_v39, 0  ;;  %v2014_v38 = vrot.slane %v6928_v20, %v2013_v61  ;;  %v5736_v20 = vld [vmem:[%s6859_s26 + $0x50] sm:$0xff]  }
 0x875   : > { %5119 = vmatpush3.bf16.msra.mxu1 %v1898_v1 }
 0x876   : > { %5130 = vmatprep.subr.bf16.mxu1 %v8197_v3 }
 0x87a   : > { %v5763_v43 = vpop.eup %5762 }
 0x87b   : > { %v1884_v44 = vsel %vm1092_vm3, %v5763_v43, 0.0  ;;  %v1890_v45 = vpack.c.bf16 %v5763_v43, %v5763_v43 }
 0x87c   : > { %1885 = vadd.xlane.f32.xlu0 %v1884_v44 }
 0x87d   : > { %5121 = vmatmul.mubr.msk.bf16.vlgmr.msra.gmra.mrb[32].mxu1 %vm1092_vm3, %v1890_v45 }
 0x87e   : > { %v5765_v46 = vpop.eup %5764  ;;  %5134 = vmatprep.mubr.msk.bf16.mxu1 %vm6332_vm1, %v8197_v3 }
 0x87f   : > { %v1887_v49 = vsel %vm1092_vm3, %v5765_v46, 0.0  ;;  %v1891_v50 = vpack.c.bf16 %v5765_v46, %v5765_v46 }
 0x880   : > { %1198 = vadd.xlane.f32.xlu0 %v1197_v47  ;;  %1888 = vadd.xlane.f32.xlu1 %v1887_v49 }
 0x881   : > { %5127 = vmatmul.mubr.msk.bf16.vlgmr.msra.gmra.mrb[36].mxu0 %vm1092_vm3, %v1891_v50 }
 0x882   : > { %5142 = vmatprep.mubr.msk.bf16.mxu0 %vm6332_vm1, %v8197_v3 }
 0x884   : > { %1201 = vadd.xlane.f32.xlu1 %v1200_v52 }
 0x8a0   : > { %v1422_v53 = vpop.xlane.xlu1 %1421 }
 0x8a1   : > { %5766 = vrcp.f32 %v1422_v53  ;;  %v5737_v53 = vld [vmem:[%s6859_s26 + $0x58] sm:$0xff]  }
 0x8a4   : > { %v1658_v29 = vpop.xlane.xlu1 %1657  ;;  %v1425_v54 = vpop.xlane.xlu0 %1424 }
 0x8a5   : > { %5768 = vrcp.f32 %v1658_v29  ;;  %v7162_v29 = vld [vmem:[#allocation6] sm:$0xff] }
 0x8a6   : > { %5770 = vrcp.f32 %v1425_v54  ;;  %v7164_v54 = vld [vmem:[#allocation6 + $0x8] sm:$0xff] }
 0x8a8   : > { %v1655_v11 = vpop.xlane.xlu0 %1654 }
 0x8a9   : > { %5772 = vrcp.f32 %v1655_v11  ;;  %v855_v11 = vld [vmem:[#allocation9] sm:$0xff] }
 0x8ab   : > { %v5767_v40 = vpop.eup %5766 }
 0x8ac   : > { %v1528_v34 = vmul.f32 %v5767_v40, %v7062_v13  ;;  %v2114_v40 = vadd.f32 %v855_v11, %v7162_v29  ;;  %v872_v11 = vld [vmem:[#allocation9 + $0x88] sm:$0xff] }
 0x8ae   : > { %1532 = vrot.lane.b32.xlu0 %v1528_v34, %s6336_s15 }
 0x8af   : > { %v5769_v41 = vpop.eup %5768 }
 0x8b0   : > { %v5771_v55 = vpop.eup %5770  ;;  %v1760_v56 = vmul.f32 %v5769_v41, %v7094_v63  ;;  %v7170_v41 = vld [vmem:[#allocation6 + $0x18] sm:$0xff] }
 0x8b1   : > { %v1529_v14 = vmul.f32 %v5771_v55, %v7064_v23  ;;  %v857_v55 = vld [vmem:[#allocation9 + $0x10] sm:$0xff] }
 0x8b2   : > { %1765 = vrot.lane.b32.xlu0 %v1760_v56, %s6337_s20  ;;  %v858_v56 = vld [vmem:[#allocation9 + $0x18] sm:$0xff] }
 0x8b3   : > { %v5773_v57 = vpop.eup %5772  ;;  %1534 = vrot.lane.b32.xlu1 %v1529_v14, %s6336_s15 }
 0x8b4   : > { %v1759_v59 = vmul.f32 %v5773_v57, %v7092_v58  ;;  %v7173_v57 = vld [vmem:[#allocation6 + $0x20] sm:$0xff] }
 0x8b7   : > { %1763 = vrot.lane.b32.xlu1 %v1759_v59, %s6337_s20  ;;  %v7175_v59 = vld [vmem:[#allocation6 + $0x28] sm:$0xff] }
 0x909   : > { %v1886_v13 = vpop.xlane.xlu0 %1885 }
 0x90d   : > { %v1889_v60 = vpop.xlane.xlu1 %1888  ;;  %v1199_v62 = vpop.xlane.xlu0 %1198 }
 0x90e   : > { %5774 = vrcp.f32 %v1199_v62  ;;  %v859_v62 = vld [vmem:[#allocation9 + $0x20] sm:$0xff] }
 0x911   : > { %v1202_v0 = vpop.xlane.xlu1 %1201 }
 0x912   : > { %5776 = vrcp.f32 %v1202_v0  ;;  %v860_v0 = vld [vmem:[#allocation9 + $0x28] sm:$0xff] }
 0x913   : > { %5778 = vrcp.f32 %v1886_v13 }
 0x914   : > { %5780 = vrcp.f32 %v1889_v60  ;;  %v2117_v60 = vadd.f32 %v858_v56, %v7170_v41 }
 0x918   : > { %v5775_v2 = vpop.eup %5774 }
 0x919   : > { %v1300_v63 = vmul.f32 %v5775_v2, %v7012_v26  ;;  %v2118_v2 = vadd.f32 %v859_v62, %v7173_v57  ;;  %v873_v62 = vld [vmem:[#allocation9 + $0x90] sm:$0xff] }
 0x91b   : > { %1302 = vst.msk [vmem:[#allocation2] sm:$0xff] %vm1092_vm3, %v1300_v63  ;;  %v2119_v63 = vadd.f32 %v860_v0, %v7175_v59  ;;  %v874_v0 = vld [vmem:[#allocation9 + $0x98] sm:$0xff] }
 0x91c   : > { %v5777_v23 = vpop.eup %5776 }
 0x91d   : > { %v1301_v4 = vmul.f32 %v5777_v23, %v7014_v31  ;;  %v5734_v31 = vld [vmem:[%s6859_s26 + $0x30] sm:$0xff]   ;;  %v5779_v10 = vpop.eup %5778 }
 0x91e   : > { %5131 = vmatpush3.bf16.msra.mxu1 %v5734_v31  ;;  %v5781_v25 = vpop.eup %5780  ;;  %v7185_v31 = vld [vmem:[#allocation6 + $0x40] sm:$0xff] }
 0x91f   : > { %1303 = vst.msk [vmem:[#allocation2 + $0x8] sm:$0xff] %vm1092_vm3, %v1301_v4  ;;  %5132 = vmatprep.subr.bf16.mxu1 %v8197_v3  ;;  %v7181_v4 = vld [vmem:[#allocation6 + $0x30] sm:$0xff] }
 0x920   : > { %v1533_v58 = vpop.permute.xlu0 %1532 }
 0x921   : > { %1539 = vst.msk [vmem:[#allocation2] sm:$0xff] %vm1538_vm5, %v1533_v58  ;;  %v7183_v58 = vld [vmem:[#allocation6 + $0x38] sm:$0xff] }
 0x922   : > { %5133 = vmatpush3.bf16.msra.mxu1 %v5735_v9  ;;  %v7187_v9 = vld [vmem:[#allocation6 + $0x48] sm:$0xff] }
 0x923   : > { %5146 = vmatprep.subr.bf16.mxu1 %v5736_v20 }
 0x924   : > { %v1766_v5 = vpop.permute.xlu0 %1765 }
 0x925   : > { %v1535_v8 = vpop.permute.xlu1 %1534 }
 0x926   : > { %1540 = vst.msk [vmem:[#allocation2 + $0x8] sm:$0xff] %vm1538_vm5, %v1535_v8  ;;  %v861_v8 = vld [vmem:[#allocation9 + $0x30] sm:$0xff] }
 0x927   : > { %1771 = vst.msk [vmem:[#allocation2 + $0x8] sm:$0xff] %vm1769_vm6, %v1766_v5  ;;  %v2214_v5 = vpack.c.bf16 %v2119_v63, %v2118_v2  ;;  %v7228_v2 = vld [vmem:[#allocation6 + $0xa0] sm:$0xff]  ;;  %v7230_v63 = vld [vmem:[#allocation6 + $0xa8] sm:$0xff] }
 0x929   : > { %v1764_v26 = vpop.permute.xlu1 %1763 }
 0x92a   : > { %1770 = vst.msk [vmem:[#allocation2] sm:$0xff] %vm1769_vm6, %v1764_v26  ;;  %v862_v26 = vld [vmem:[#allocation9 + $0x38] sm:$0xff] }
 0x950   : > { %v1934_v12 = vpop.f32.mrb[32].mxu1 }
 0x951   : > { %v1990_v15 = vmul.f32 %v5779_v10, %v1934_v12  ;;  %v5122_v16 = vpop.f32.mrb[33].mxu1  ;;  %v863_v10 = vld [vmem:[#allocation9 + $0x40] sm:$0xff]  ;;  %v864_v12 = vld [vmem:[#allocation9 + $0x48] sm:$0xff] }
 0x952   : > { %v1937_v21 = vpop.f32.mrb[34].mxu1  ;;  %v2121_v16 = vadd.f32 %v862_v26, %v7183_v58 }
 0x953   : > { %v5123_v24 = vpop.f32.mrb[35].mxu1  ;;  %1994 = vrot.lane.b32.xlu1 %v1990_v15, %s6338_s12  ;;  %v2120_v15 = vadd.f32 %v861_v8, %v7181_v4  ;;  %v2122_v21 = vadd.f32 %v863_v10, %v7185_v31 }
 0x954   : > { %v1982_v27 = vpop.f32.mrb[36].mxu0  ;;  %v2123_v24 = vadd.f32 %v864_v12, %v7187_v9 }
 0x955   : > { %v1991_v28 = vmul.f32 %v5781_v25, %v1982_v27  ;;  %v5128_v30 = vpop.f32.mrb[37].mxu0  ;;  %v2215_v25 = vpack.c.bf16 %v2121_v16, %v2120_v15  ;;  %v7196_v27 = vld [vmem:[#allocation6 + $0x50] sm:$0xff] }
 0x956   : > { %v1985_v32 = vpop.f32.mrb[38].mxu0  ;;  %v2216_v30 = vpack.c.bf16 %v2123_v24, %v2122_v21  ;;  %v7238_v16 = vld [vmem:[#allocation6 + $0xb0] sm:$0xff]  ;;  %v7240_v21 = vld [vmem:[#allocation6 + $0xb8] sm:$0xff] }
 0x957   : > { %1996 = vrot.lane.b32.xlu0 %v1991_v28, %s6338_s12  ;;  %v5129_v33 = vpop.f32.mrb[39].mxu0  ;;  %v7198_v28 = vld [vmem:[#allocation6 + $0x58] sm:$0xff]  ;;  %v865_v32 = vld [vmem:[#allocation9 + $0x50] sm:$0xff] }
 0x958   : > { %v866_v33 = vld [vmem:[#allocation9 + $0x58] sm:$0xff] }
 0x959   : > { %v2125_v61 = vadd.f32 %v866_v33, %v7198_v28  ;;  %v7244_v33 = vld [vmem:[#allocation6 + $0xc8] sm:$0xff] }
 0x9c5   : > { %v1995_v35 = vpop.permute.xlu1 %1994 }
 0x9c6   : > { %2001 = vst.msk [vmem:[#allocation2] sm:$0xff] %vm2000_vm7, %v1995_v35  ;;  %v7200_v35 = vld [vmem:[#allocation6 + $0x60] sm:$0xff] }
 0x9c9   : > { %v1997_v51 = vpop.permute.xlu0 %1996 }
 0x9ca   : > { %2002 = vst.msk [vmem:[#allocation2 + $0x8] sm:$0xff] %vm2000_vm7, %v1997_v51  ;;  %v7202_v51 = vld [vmem:[#allocation6 + $0x68] sm:$0xff] }
 0x9cd   : > { %v2003_v36 = vld [vmem:[#allocation2] sm:$0xff] }
 0x9d1   : > { %v2004_v37 = vld [vmem:[#allocation2 + $0x8] sm:$0xff] }
 0x9d2   : > { %v2005_v48 = vpack.c.bf16 %v2004_v37, %v2003_v36  ;;  %v867_v36 = vld [vmem:[#allocation9 + $0x60] sm:$0xff]  ;;  %v868_v37 = vld [vmem:[#allocation9 + $0x68] sm:$0xff] }
 0x9d4   : > { %5135 = vmatmul.mubr.msk.bf16.vlgmr.msra.gmra.mrb[36].mxu1 %vm913_vm2, %v2005_v48  ;;  %v2124_v48 = vadd.f32 %v865_v32, %v7196_v27  ;;  %v7242_v32 = vld [vmem:[#allocation6 + $0xc0] sm:$0xff] }
 0x9d5   : > { %5147 = vmatpush3.bf16.msra.mxu1 %v5736_v20  ;;  %v7216_v20 = vld [vmem:[#allocation6 + $0x88] sm:$0xff] }
 0x9d6   : > { %5148 = vmatprep.subr.bf16.mxu1 %v5737_v53 }
 0x9d9   : > { %5149 = vmatpush3.bf16.msra.mxu1 %v5737_v53  ;;  %v871_v53 = vld [vmem:[#allocation9 + $0x80] sm:$0xff] }
 0x9da   : > { %5218 = vmatprep.subr.bf16.mxu1 %v8197_v3 }
 0xaa7   : > { %v2064_v39 = vpop.f32.mrb[36].mxu1 }
 0xaa8   : > { %v2065_v1 = vadd.f32 %v2064_v39, %v2014_v38  ;;  %v5136_v43 = vpop.f32.mrb[37].mxu1  ;;  %v2127_v39 = vadd.f32 %v868_v37, %v7202_v51  ;;  %v880_v37 = vld [vmem:[#allocation9 + $0xc8] sm:$0xff] }
 0xaa9   : > { %v2067_v44 = vpop.f32.mrb[38].mxu1  ;;  %v7210_v43 = vld [vmem:[#allocation6 + $0x70] sm:$0xff] }
 0xaaa   : > { %v2068_v45 = vadd.f32 %v2067_v44, %v2014_v38  ;;  %v5137_v46 = vpop.f32.mrb[39].mxu1  ;;  %v7151_v47 = vadd.f32 %v2065_v1, %v6894_v6  ;;  %v856_v6 = vld [vmem:[#allocation9 + $0x8] sm:$0xff]  ;;  %v2126_v38 = vadd.f32 %v867_v36, %v7200_v35  ;;  %v2217_v1 = vpack.c.bf16 %v2125_v61, %v2124_v48  ;;  %v879_v36 = vld [vmem:[#allocation9 + $0xc0] sm:$0xff] }
 0xaab   : > { %v2115_v34 = vadd.f32 %v856_v6, %v7164_v54  ;;  %v7212_v44 = vld [vmem:[#allocation6 + $0x78] sm:$0xff]  ;;  %v869_v46 = vld [vmem:[#allocation9 + $0x70] sm:$0xff] }
 0xaac   : > { %v2073_v49 = vsel %vm913_vm2, %v7151_v47, 0.0  ;;  %v7156_v50 = vadd.f32 %v2068_v45, %v6896_v7  ;;  %v7168_v7 = vld [vmem:[#allocation6 + $0x10] sm:$0xff]  ;;  %v2218_v45 = vpack.c.bf16 %v2127_v39, %v2126_v38  ;;  %v2128_v6 = vadd.f32 %v869_v46, %v7210_v43  ;;  %v7254_v46 = vld [vmem:[#allocation6 + $0xd8] sm:$0xff] }
 0xaad   : > { %2074 = vadd.xlane.f32.xlu1 %v2073_v49  ;;  %v2116_v14 = vadd.f32 %v857_v55, %v7168_v7  ;;  %v2212_v13 = vpack.c.bf16 %v2115_v34, %v2114_v40  ;;  %v870_v49 = vld [vmem:[#allocation9 + $0x78] sm:$0xff]  ;;  %v2131_v55 = vadd.f32 %v872_v11, %v7216_v20  ;;  %v2138_v38 = vadd.f32 %v879_v36, %v7242_v32 }
 0xaae   : > { %v2076_v52 = vsel %vm913_vm2, %v7156_v50, 0.0  ;;  %v2129_v40 = vadd.f32 %v870_v49, %v7212_v44  ;;  %v2139_v39 = vadd.f32 %v880_v37, %v7244_v33  ;;  %v882_v11 = vld [vmem:[#allocation9 + $0xd8] sm:$0xff] }
 0xaaf   : > { %2077 = vadd.xlane.f32.xlu0 %v2076_v52  ;;  %5150 = vmatprep.mubr.msk.bf16.mxu1 %vm913_vm2, %v2212_v13  ;;  %v2213_v23 = vpack.c.bf16 %v2117_v60, %v2116_v14  ;;  %v7214_v52 = vld [vmem:[#allocation6 + $0x80] sm:$0xff]  ;;  %v7224_v14 = vld [vmem:[#allocation6 + $0x90] sm:$0xff]  ;;  %v7226_v13 = vld [vmem:[#allocation6 + $0x98] sm:$0xff] }
 0xab0   : > { %v2130_v34 = vadd.f32 %v871_v53, %v7214_v52  ;;  %v2219_v56 = vpack.c.bf16 %v2129_v40, %v2128_v6  ;;  %v2132_v8 = vadd.f32 %v873_v62, %v7224_v14  ;;  %v2133_v26 = vadd.f32 %v874_v0, %v7226_v13  ;;  %v881_v53 = vld [vmem:[#allocation9 + $0xd0] sm:$0xff]  ;;  %v7258_v40 = vld [vmem:[#allocation6 + $0xe8] sm:$0xff] }
 0xab1   : > { %5151 = vmatmul.mubr.msk.bf16.vlgmr.msra.gmra.mrb[40].mxu1 %vm913_vm2, %v2213_v23  ;;  %v875_v23 = vld [vmem:[#allocation9 + $0xa0] sm:$0xff]  ;;  %v2224_v49 = vpack.c.bf16 %v2139_v39, %v2138_v38  ;;  %v7256_v6 = vld [vmem:[#allocation6 + $0xe0] sm:$0xff] }
 0xab2   : > { %5154 = vmatprep.mubr.msk.bf16.mxu1 %vm913_vm2, %v2214_v5  ;;  %v2220_v60 = vpack.c.bf16 %v2131_v55, %v2130_v34  ;;  %v876_v5 = vld [vmem:[#allocation9 + $0xa8] sm:$0xff]  ;;  %v2134_v10 = vadd.f32 %v875_v23, %v7228_v2  ;;  %v2221_v15 = vpack.c.bf16 %v2133_v26, %v2132_v8  ;;  %v883_v34 = vld [vmem:[#allocation9 + $0xe0] sm:$0xff] }
 0xab3   : > { %v2135_v12 = vadd.f32 %v876_v5, %v7230_v63  ;;  %v884_v55 = vld [vmem:[#allocation9 + $0xe8] sm:$0xff]  ;;  %v2142_v62 = vadd.f32 %v883_v34, %v7256_v6  ;;  %v7266_v5 = vld [vmem:[#allocation6 + $0xf0] sm:$0xff]  ;;  %v2235_v34 = vsub.s32 5, %v6922_v18 }
 0xab4   : > { %v2143_v0 = vadd.f32 %v884_v55, %v7258_v40  ;;  %v7268_v26 = vld [vmem:[#allocation6 + $0xf8] sm:$0xff] }
 0xab5   : > { %v2222_v24 = vpack.c.bf16 %v2135_v12, %v2134_v10  ;;  %v885_v10 = vld [vmem:[#allocation9 + $0xf0] sm:$0xff]  ;;  %v886_v12 = vld [vmem:[#allocation9 + $0xf8] sm:$0xff]  ;;  %v7298_v55 = vld [vmem:[%s6869_s4] sm:$0xff] }
 0xab6   : > { %v2226_v8 = vpack.c.bf16 %v2143_v0, %v2142_v62 }
 0xab9   : > { %5155 = vmatmul.mubr.msk.bf16.gmra.mrb[44].mxu1 %vm913_vm2, %v2215_v25  ;;  %v877_v25 = vld [vmem:[#allocation9 + $0xb0] sm:$0xff] }
 0xaba   : > { %5158 = vmatprep.mubr.msk.bf16.mxu1 %vm913_vm2, %v2216_v30  ;;  %v878_v30 = vld [vmem:[#allocation9 + $0xb8] sm:$0xff]  ;;  %v2136_v48 = vadd.f32 %v877_v25, %v7238_v16 }
 0xabb   : > { %v2137_v61 = vadd.f32 %v878_v30, %v7240_v21 }
 0xac1   : > { %5159 = vmatmul.mubr.msk.bf16.gmra.mrb[48].mxu1 %vm913_vm2, %v2217_v1  ;;  %v2223_v1 = vpack.c.bf16 %v2137_v61, %v2136_v48 }
 0xac2   : > { %5162 = vmatprep.mubr.msk.bf16.mxu1 %vm913_vm2, %v2218_v45  ;;  %v7252_v45 = vld [vmem:[#allocation6 + $0xd0] sm:$0xff] }
 0xac9   : > { %5163 = vmatmul.mubr.msk.bf16.gmra.mrb[52].mxu1 %vm913_vm2, %v2219_v56  ;;  %v2140_v56 = vadd.f32 %v881_v53, %v7252_v45 }
 0xaca   : > { %5166 = vmatprep.mubr.msk.bf16.mxu1 %vm913_vm2, %v2220_v60  ;;  %v2141_v60 = vadd.f32 %v882_v11, %v7254_v46  ;;  %v5738_v11 = vld [vmem:[%s6859_s26 + $0x40] sm:$0xff]  }
 0xacb   : > { %5139 = vmatpush3.bf16.msra.mxu0 %v5738_v11 }
 0xacc   : > { %v2225_v23 = vpack.c.bf16 %v2141_v60, %v2140_v56  ;;  %5140 = vmatprep.subr.bf16.mxu0 %v8197_v3  ;;  %v7301_v56 = vrot.slane %v7298_v55, %v2235_v34 }
 0xad1   : > { %5167 = vmatmul.mubr.msk.bf16.gmra.mrb[56].mxu1 %vm913_vm2, %v2221_v15  ;;  %v2144_v15 = vadd.f32 %v885_v10, %v7266_v5 }
 0xad2   : > { %5170 = vmatprep.mubr.msk.bf16.mxu1 %vm913_vm2, %v2222_v24  ;;  %v2145_v24 = vadd.f32 %v886_v12, %v7268_v26 }
 0xad4   : > { %v2227_v25 = vpack.c.bf16 %v2145_v24, %v2144_v15 }
 0xad9   : > { %5171 = vmatmul.mubr.msk.bf16.gmra.mrb[60].mxu1 %vm913_vm2, %v2223_v1 }
 0xada   : > { %5174 = vmatprep.mubr.msk.bf16.mxu1 %vm913_vm2, %v2224_v49 }
 0xae1   : > { %5175 = vmatmul.mubr.msk.bf16.gmra.mrb[64].mxu1 %vm913_vm2, %v2225_v23 }
 0xae2   : > { %5178 = vmatprep.mubr.msk.bf16.mxu1 %vm913_vm2, %v2226_v8 }
 0xae9   : > { %5179 = vmatmul.mubr.msk.bf16.gmra.mrb[68].mxu1 %vm913_vm2, %v2227_v25 }
 0xaea   : > { %5234 = vmatprep.mubr.msk.bf16.mxu1 %vm6332_vm1, %v8197_v3 }
 0xb3a   : > { %v2075_v30 = vpop.xlane.xlu1 %2074 }
 0xb3b   : > { %v2080_v36 = vmul.f32 0.03125, %v2075_v30 }
 0xb3c   : > { %v2078_v37 = vpop.xlane.xlu0 %2077 }
 0xb3d   : > { %v7278_v48 = vsub.f32 %v7151_v47, %v2080_v36  ;;  %v2081_v61 = vmul.f32 0.03125, %v2078_v37  ;;  %v5739_v47 = vld [vmem:[%s6859_s26 + $0x48] sm:$0xff]  }
 0xb3e   : > { %5141 = vmatpush3.bf16.msra.mxu0 %v5739_v47 }
 0xb3f   : > { %v7281_v38 = vsub.f32 %v7156_v50, %v2081_v61  ;;  %v2084_v39 = vmul.f32 %v7278_v48, %v7278_v48  ;;  %v7293_v50 = vld [vmem:[%s6859_s26 + $0x60] sm:$0xff]  }
 0xb40   : > { %5182 = vmatprep.subr.bf16.mxu0 %v7293_v50 }
 0xb41   : > { %v2086_v1 = vsel %vm913_vm2, %v2084_v39, 0.0  ;;  %v2085_v49 = vmul.f32 %v7281_v38, %v7281_v38 }
 0xb42   : > { %2087 = vadd.xlane.f32.xlu0 %v2086_v1 }
 0xb43   : > { %v2089_v53 = vsel %vm913_vm2, %v2085_v49, 0.0 }
 0xb44   : > { %2090 = vadd.xlane.f32.xlu1 %v2089_v53 }
 0xb84   : > { %v5152_v60 = vpop.f32.mrb[40].mxu1 }
 0xb85   : > { %v2340_v62 = vadd.f32 %v5152_v60, %v7301_v56  ;;  %v2331_v0 = vpop.f32.mrb[41].mxu1 }
 0xb86   : > { %v2332_v23 = vadd.f32 %v2331_v0, %v7301_v56  ;;  %v5153_v8 = vpop.f32.mrb[42].mxu1 }
 0xb87   : > { %v2343_v10 = vadd.f32 %v5153_v8, %v7301_v56  ;;  %v2334_v12 = vpop.f32.mrb[43].mxu1 }
 0xb88   : > { %v2335_v15 = vadd.f32 %v2334_v12, %v7301_v56 }
 0xb89   : > { %v7307_v24 = vpack.c.bf16 %v2343_v10, %v2340_v62 }
 0xb8a   : > { %v7309_v25 = vpack.c.bf16 %v2335_v15, %v2332_v23 }
 0xb8b   : > { %8273 = vst [vmem:[#allocation36_spill] sm:$0xff] %v7307_v24  ;;  %v2749_v34 = vsel %vm1092_vm3, %v7307_v24, 0 }
 0xb8c   : > { %8274 = vst [vmem:[#allocation37_spill] sm:$0xff] %v7309_v25  ;;  %v2746_v30 = vsel %vm1092_vm3, %v7309_v25, 0  ;;  %v5156_v36 = vpop.f32.mrb[44].mxu1 }
 0xb8d   : > { %5219 = vmatpush3.bf16.xpose.msra.mxu1 %v2746_v30  ;;  %v2356_v37 = vadd.f32 %v5156_v36, %v7301_v56  ;;  %v2347_v61 = vpop.f32.mrb[45].mxu1 }
 0xb8e   : > { %5220 = vmatprep.subr.bf16.mxu1 %v8197_v3  ;;  %v2348_v39 = vadd.f32 %v2347_v61, %v7301_v56  ;;  %v5157_v1 = vpop.f32.mrb[46].mxu1 }
 0xb8f   : > { %v2359_v49 = vadd.f32 %v5157_v1, %v7301_v56  ;;  %v2350_v53 = vpop.f32.mrb[47].mxu1 }
 0xb90   : > { %v2351_v11 = vadd.f32 %v2350_v53, %v7301_v56 }
 0xb91   : > { %v7318_v47 = vpack.c.bf16 %v2359_v49, %v2356_v37 }
 0xb92   : > { %v7322_v60 = vpack.c.bf16 %v2351_v11, %v2348_v39 }
 0xb93   : > { %8275 = vst [vmem:[#allocation38_spill] sm:$0xff] %v7318_v47 }
 0xb94   : > { %8276 = vst [vmem:[#allocation39_spill] sm:$0xff] %v7322_v60  ;;  %v5160_v62 = vpop.f32.mrb[48].mxu1  ;;  %v2752_v37 = vsel %vm1092_vm3, %v7322_v60, 0 }
 0xb95   : > { %5221 = vmatpush3.bf16.xpose.msra.mxu1 %v2749_v34  ;;  %v2372_v0 = vadd.f32 %v5160_v62, %v7301_v56  ;;  %v2363_v23 = vpop.f32.mrb[49].mxu1 }
 0xb96   : > { %5222 = vmatprep.subr.bf16.mxu1 %v8197_v3  ;;  %v2364_v8 = vadd.f32 %v2363_v23, %v7301_v56  ;;  %v5161_v10 = vpop.f32.mrb[50].mxu1 }
 0xb97   : > { %v2375_v12 = vadd.f32 %v5161_v10, %v7301_v56  ;;  %v2366_v15 = vpop.f32.mrb[51].mxu1 }
 0xb98   : > { %v2367_v30 = vadd.f32 %v2366_v15, %v7301_v56 }
 0xb99   : > { %v7329_v36 = vpack.c.bf16 %v2375_v12, %v2372_v0 }
 0xb9a   : > { %v7333_v61 = vpack.c.bf16 %v2367_v30, %v2364_v8  ;;  %v2755_v8 = vsel %vm1092_vm3, %v7318_v47, 0  ;;  %v8280_v47 = vmov 0.0  }
 0xb9b   : > { %8277 = vst [vmem:[#allocation40_spill] sm:$0xff] %v7329_v36 }
 0xb9c   : > { %8278 = vst [vmem:[#allocation41_spill] sm:$0xff] %v7333_v61  ;;  %v5164_v39 = vpop.f32.mrb[52].mxu1 }
 0xb9d   : > { %5223 = vmatpush3.bf16.xpose.msra.mxu1 %v2752_v37  ;;  %v2388_v1 = vadd.f32 %v5164_v39, %v7301_v56  ;;  %v2379_v49 = vpop.f32.mrb[53].mxu1 }
 0xb9e   : > { %5224 = vmatprep.subr.bf16.mxu1 %v8197_v3  ;;  %v2380_v53 = vadd.f32 %v2379_v49, %v7301_v56  ;;  %v5165_v11 = vpop.f32.mrb[54].mxu1 }
 0xb9f   : > { %v2391_v34 = vadd.f32 %v5165_v11, %v7301_v56  ;;  %v2382_v62 = vpop.f32.mrb[55].mxu1 }
 0xba0   : > { %v2383_v0 = vadd.f32 %v2382_v62, %v7301_v56 }
 0xba1   : > { %v7340_v23 = vpack.c.bf16 %v2391_v34, %v2388_v1 }
 0xba2   : > { %v7344_v10 = vpack.c.bf16 %v2383_v0, %v2380_v53  ;;  %v2758_v53 = vsel %vm1092_vm3, %v7333_v61, 0 }
 0xba3   : > { %v2767_v60 = vsel %vm1092_vm3, %v7340_v23, 0 }
 0xba4   : > { %8279 = vst [vmem:[#allocation42_spill] sm:$0xff] %v7344_v10  ;;  %v5168_v12 = vpop.f32.mrb[56].mxu1 }
 0xba5   : > { %5225 = vmatpush3.bf16.xpose.msra.mxu1 %v2755_v8  ;;  %v2404_v15 = vadd.f32 %v5168_v12, %v7301_v56  ;;  %v2395_v30 = vpop.f32.mrb[57].mxu1 }
 0xba6   : > { %5226 = vmatprep.subr.bf16.mxu1 %v8197_v3  ;;  %v2396_v37 = vadd.f32 %v2395_v30, %v7301_v56  ;;  %v5169_v39 = vpop.f32.mrb[58].mxu1 }
 0xba7   : > { %v2407_v49 = vadd.f32 %v5169_v39, %v7301_v56  ;;  %v2398_v11 = vpop.f32.mrb[59].mxu1 }
 0xba8   : > { %v2399_v1 = vadd.f32 %v2398_v11, %v7301_v56 }
 0xba9   : > { %v7351_v34 = vpack.c.bf16 %v2407_v49, %v2404_v15 }
 0xbaa   : > { %v7355_v62 = vpack.c.bf16 %v2399_v1, %v2396_v37  ;;  %v2761_v37 = vsel %vm1092_vm3, %v7329_v36, 0  ;;  %v888_v36 = vld [vmem:[%s6877_s22] sm:$0x7] }
 0xbac   : > { %v5172_v0 = vpop.f32.mrb[60].mxu1 }
 0xbad   : > { %5227 = vmatpush3.bf16.xpose.msra.mxu1 %v2758_v53  ;;  %v2420_v8 = vadd.f32 %v5172_v0, %v7301_v56  ;;  %v2411_v12 = vpop.f32.mrb[61].mxu1 }
 0xbae   : > { %5228 = vmatprep.subr.bf16.mxu1 %v8197_v3  ;;  %v2412_v30 = vadd.f32 %v2411_v12, %v7301_v56  ;;  %v5173_v39 = vpop.f32.mrb[62].mxu1 }
 0xbaf   : > { %v2423_v17 = vadd.f32 %v5173_v39, %v7301_v56  ;;  %v2414_v11 = vpop.f32.mrb[63].mxu1 }
 0xbb0   : > { %v2415_v15 = vadd.f32 %v2414_v11, %v7301_v56 }
 0xbb1   : > { %v7362_v49 = vpack.c.bf16 %v2423_v17, %v2420_v8 }
 0xbb2   : > { %v7366_v1 = vpack.c.bf16 %v2415_v15, %v2412_v30 }
 0xbb4   : > { %v5176_v19 = vpop.f32.mrb[64].mxu1 }
 0xbb5   : > { %5229 = vmatpush3.bf16.xpose.msra.mxu1 %v2761_v37  ;;  %v2436_v12 = vadd.f32 %v5176_v19, %v7301_v56  ;;  %v2427_v39 = vpop.f32.mrb[65].mxu1  ;;  %v2764_v19 = vsel %vm1092_vm3, %v7344_v10, 0 }
 0xbb6   : > { %5230 = vmatprep.subr.bf16.mxu1 %v8280_v47  ;;  %v2428_v17 = vadd.f32 %v2427_v39, %v7301_v56  ;;  %v5177_v8 = vpop.f32.mrb[66].mxu1 }
 0xbb7   : > { %v2439_v30 = vadd.f32 %v5177_v8, %v7301_v56 }
 0xbbd   : > { %5231 = vmatpush3.bf16.xpose.msra.mxu1 %v2764_v19 }
 0xbbe   : > { %5232 = vmatprep.subr.bf16.mxu1 %v8280_v47 }
 0xbc5   : > { %5233 = vmatpush3.bf16.xpose.msra.mxu1 %v2767_v60 }
 0xbc6   : > { %5258 = vmatprep.subr.bf16.mxu1 %v8280_v47 }
 0xbcf   : > { %v2088_v42 = vpop.xlane.xlu0 %2087 }
 0xbd0   : > { %v2092_v53 = vmul.f32 0.03125, %v2088_v42  ;;  %v2430_v42 = vpop.f32.mrb[67].mxu1 }
 0xbd1   : > { %v2091_v0 = vpop.xlane.xlu1 %2090  ;;  %v2431_v15 = vadd.f32 %v2430_v42, %v7301_v56  ;;  %v889_v42 = vld [vmem:[%s6879_s13] sm:$0x7] }
 0xbd2   : > { %v2094_v3 = vadd.f32 1e-05, %v2092_v53  ;;  %v2093_v61 = vmul.f32 0.03125, %v2091_v0  ;;  %v7373_v53 = vpack.c.bf16 %v2439_v30, %v2436_v12  ;;  %v5180_v0 = vpop.f32.mrb[68].mxu1  ;;  %v2103_v30 = vrot.slane %v888_v36, %v6933_v22 }
 0xbd3   : > { %v7377_v37 = vpack.c.bf16 %v2431_v15, %v2428_v17  ;;  %v2109_v19 = vrot.slane %v889_v42, %v6933_v22  ;;  %v5827_v42 = vld [vmem:[#allocation8] sm:$0xff] }
 0xbd4   : > { %5782 = vrsqrt.f32 %v2094_v3  ;;  %v2095_v11 = vadd.f32 1e-05, %v2093_v61  ;;  %v2452_v3 = vadd.f32 %v5180_v0, %v7301_v56  ;;  %v2443_v61 = vpop.f32.mrb[69].mxu1 }
 0xbd5   : > { %v2444_v39 = vadd.f32 %v2443_v61, %v7301_v56  ;;  %v5181_v8 = vpop.f32.mrb[70].mxu1 }
 0xbd6   : > { %5784 = vrsqrt.f32 %v2095_v11  ;;  %v2455_v12 = vadd.f32 %v5181_v8, %v7301_v56  ;;  %v2446_v11 = vpop.f32.mrb[71].mxu1 }
 0xbd7   : > { %v2447_v17 = vadd.f32 %v2446_v11, %v7301_v56 }
 0xbd8   : > { %v7387_v10 = vpack.c.bf16 %v2455_v12, %v2452_v3  ;;  %v5828_v12 = vld [vmem:[#allocation8 + $0x8] sm:$0xff] }
 0xbd9   : > { %v7393_v61 = vpack.c.bf16 %v2447_v17, %v2444_v39  ;;  %v2458_v39 = vpack.c.bf16 %v7164_v54, %v7162_v29  ;;  %v2813_v29 = vsel %vm1092_vm3, %v7355_v62, 0  ;;  %v2461_v54 = vpack.c.bf16 %v7183_v58, %v7181_v4 }
 0xbda   : > { %v2465_v4 = vpack.c.bf16 %v7212_v44, %v7210_v43  ;;  %v2466_v58 = vpack.c.bf16 %v7216_v20, %v7214_v52  ;;  %v2828_v43 = vsel %vm1092_vm3, %v7373_v53, 0  ;;  %v2471_v44 = vpack.c.bf16 %v7254_v46, %v7252_v45 }
 0xbdb   : > { %v2472_v52 = vpack.c.bf16 %v7258_v40, %v7256_v6  ;;  %v2831_v20 = vsel %vm1092_vm3, %v7393_v61, 0 }
 0xbde   : > { %v5783_v15 = vpop.eup %5782 }
 0xbdf   : > { %v2098_v0 = vmul.f32 %v5783_v15, %v7278_v48  ;;  %v5741_v15 = vld [vmem:[%s6859_s26 + $0x68] sm:$0xff]  }
 0xbe0   : > { %v5785_v24 = vpop.eup %5784 }
 0xbe1   : > { %v2104_v8 = vmul.f32 %v2103_v30, %v2098_v0  ;;  %v2099_v25 = vmul.f32 %v5785_v24, %v7281_v38  ;;  %v2459_v38 = vpack.c.bf16 %v7170_v41, %v7168_v7  ;;  %v2460_v24 = vpack.c.bf16 %v7175_v59, %v7173_v57 }
 0xbe2   : > { %v2816_v7 = vsel %vm1092_vm3, %v7351_v34, 0  ;;  %v2463_v41 = vpack.c.bf16 %v7198_v28, %v7196_v27  ;;  %v2464_v57 = vpack.c.bf16 %v7202_v51, %v7200_v35  ;;  %v2819_v59 = vsel %vm1092_vm3, %v7366_v1, 0 }
 0xbe3   : > { %v2105_v36 = vmul.f32 %v2103_v30, %v2099_v25  ;;  %v7396_v56 = vadd.f32 %v2109_v19, %v2104_v8  ;;  %v2468_v27 = vpack.c.bf16 %v7230_v63, %v7228_v2  ;;  %v2825_v28 = vsel %vm1092_vm3, %v7377_v37, 0 }
 0xbe4   : > { %v2469_v35 = vpack.c.bf16 %v7240_v21, %v7238_v16  ;;  %v2470_v51 = vpack.c.bf16 %v7244_v33, %v7242_v32  ;;  %v2154_v2 = vsub.s32 4, %v6922_v18  ;;  %v2481_v33 = vsub.s32 6, %v6922_v18 }
 0xbe5   : > { %v7399_v3 = vadd.f32 %v2109_v19, %v2105_v36  ;;  %v2112_v48 = vadd.f32 %v5827_v42, %v7396_v56 }
 0xbe6   : > { %v2155_v63 = vrot.slane %v7298_v55, %v2154_v2 }
 0xbe7   : > { %v2113_v11 = vadd.f32 %v5828_v12, %v7399_v3 }
 0xbe9   : > { %v2146_v17 = vpack.c.bf16 %v2113_v11, %v2112_v48 }
 0xbeb   : > { %5143 = vmatmul.mubr.msk.bf16.vlgmr.msra.gmra.mrb[40].mxu0 %vm913_vm2, %v2146_v17 }
 0xbec   : > { %5183 = vmatpush3.bf16.msra.mxu0 %v7293_v50  ;;  %5186 = vmatprep.mubr.msk.bf16.mxu0 %vm913_vm2, %v2458_v39  ;;  %v2462_v50 = vpack.c.bf16 %v7187_v9, %v7185_v31  ;;  %v2822_v31 = vsel %vm1092_vm3, %v7362_v49, 0  ;;  %v2467_v9 = vpack.c.bf16 %v7226_v13, %v7224_v14  ;;  %v2473_v14 = vpack.c.bf16 %v7268_v26, %v7266_v5 }
 0xbed   : > { %5184 = vmatprep.subr.bf16.mxu0 %v5741_v15  ;;  %v2834_v13 = vsel %vm1092_vm3, %v7387_v10, 0  ;;  %v7491_v26 = vrot.slane %v7298_v55, %v2481_v33 }
 0xbf0   : > { %5185 = vmatpush3.bf16.msra.mxu0 %v5741_v15 }
 0xbf1   : > { %5238 = vmatprep.subr.bf16.mxu0 %v8280_v47 }
 0xbf3   : > { %5187 = vmatmul.mubr.msk.bf16.vlgmr.msra.gmra.mrb[44].mxu0 %vm913_vm2, %v2459_v38 }
 0xbf4   : > { %5190 = vmatprep.mubr.msk.bf16.mxu0 %vm913_vm2, %v2460_v24 }
 0xbf9   : > { %5239 = vmatpush3.bf16.xpose.msra.mxu0 %v2813_v29 }
 0xbfa   : > { %5240 = vmatprep.subr.bf16.mxu0 %v8280_v47 }
 0xbfb   : > { %5191 = vmatmul.mubr.msk.bf16.gmra.mrb[48].mxu0 %vm913_vm2, %v2461_v54 }
 0xbfc   : > { %5194 = vmatprep.mubr.msk.bf16.mxu0 %vm913_vm2, %v2462_v50 }
 0xc01   : > { %5241 = vmatpush3.bf16.xpose.msra.mxu0 %v2816_v7 }
 0xc02   : > { %5242 = vmatprep.subr.bf16.mxu0 %v8280_v47 }
 0xc03   : > { %5195 = vmatmul.mubr.msk.bf16.gmra.mrb[52].mxu0 %vm913_vm2, %v2463_v41 }
 0xc04   : > { %5198 = vmatprep.mubr.msk.bf16.mxu0 %vm913_vm2, %v2464_v57 }
 0xc09   : > { %5243 = vmatpush3.bf16.xpose.msra.mxu0 %v2819_v59 }
 0xc0a   : > { %5244 = vmatprep.subr.bf16.mxu0 %v8280_v47 }
 0xc0b   : > { %5199 = vmatmul.mubr.msk.bf16.gmra.mrb[56].mxu0 %vm913_vm2, %v2465_v4 }
 0xc0c   : > { %5202 = vmatprep.mubr.msk.bf16.mxu0 %vm913_vm2, %v2466_v58 }
 0xc11   : > { %5245 = vmatpush3.bf16.xpose.msra.mxu0 %v2822_v31 }
 0xc12   : > { %5246 = vmatprep.subr.bf16.mxu0 %v8280_v47 }
 0xc13   : > { %5203 = vmatmul.mubr.msk.bf16.gmra.mrb[60].mxu0 %vm913_vm2, %v2467_v9 }
 0xc14   : > { %5206 = vmatprep.mubr.msk.bf16.mxu0 %vm913_vm2, %v2468_v27 }
 0xc19   : > { %5247 = vmatpush3.bf16.xpose.msra.mxu0 %v2825_v28 }
 0xc1a   : > { %5248 = vmatprep.subr.bf16.mxu0 %v8280_v47 }
 0xc1b   : > { %5207 = vmatmul.mubr.msk.bf16.gmra.mrb[64].mxu0 %vm913_vm2, %v2469_v35 }
 0xc1c   : > { %5210 = vmatprep.mubr.msk.bf16.mxu0 %vm913_vm2, %v2470_v51 }
 0xc21   : > { %5249 = vmatpush3.bf16.xpose.msra.mxu0 %v2828_v43 }
 0xc22   : > { %5250 = vmatprep.subr.bf16.mxu0 %v8280_v47 }
 0xc23   : > { %5211 = vmatmul.mubr.msk.bf16.gmra.mrb[68].mxu0 %vm913_vm2, %v2471_v44 }
 0xc24   : > { %5214 = vmatprep.mubr.msk.bf16.mxu0 %vm913_vm2, %v2472_v52 }
 0xc29   : > { %5251 = vmatpush3.bf16.xpose.msra.mxu0 %v2831_v20 }
 0xc2a   : > { %5252 = vmatprep.subr.bf16.mxu0 %v8280_v47 }
 0xc2b   : > { %5215 = vmatmul.mubr.msk.bf16.gmra.mrb[72].mxu0 %vm913_vm2, %v2473_v14 }
 0xc2c   : > { %5254 = vmatprep.mubr.msk.bf16.mxu0 %vm6332_vm1, %v8280_v47 }
 0xc31   : > { %5253 = vmatpush3.bf16.xpose.msra.mxu0 %v2834_v13 }
 0xc32   : > { %5278 = vmatprep.subr.bf16.mxu0 %v8280_v47 }
 0xcbe   : > { %v2205_v16 = vpop.f32.mrb[40].mxu0 }
 0xcbf   : > { %v2206_v21 = vadd.f32 %v2205_v16, %v2155_v63  ;;  %v5144_v32 = vpop.f32.mrb[41].mxu0 }
 0xcc0   : > { %v2208_v45 = vpop.f32.mrb[42].mxu0 }
 0xcc1   : > { %v7484_v46 = vpack.c.bf16 %v2206_v21, %v2206_v21  ;;  %v2209_v6 = vadd.f32 %v2208_v45, %v2155_v63  ;;  %v5145_v40 = vpop.f32.mrb[43].mxu0 }
 0xcc3   : > { %v7486_v5 = vpack.c.bf16 %v2209_v6, %v2209_v6  ;;  %5235 = vmatmul.mubr.msk.bf16.vlgmr.msra.gmra.mrb[72].mxu1 %vm1092_vm3, %v7484_v46 }
 0xcc4   : > { %5274 = vmatprep.mubr.msk.bf16.mxu1 %vm6332_vm1, %v8280_v47 }
 0xcc5   : > { %5255 = vmatmul.mubr.msk.bf16.vlgmr.msra.gmra.mrb[76].mxu0 %vm1092_vm3, %v7486_v5 }
 0xcc6   : > { %v5188_v25 = vpop.f32.mrb[44].mxu0  ;;  %5294 = vmatprep.mubr.msk.bf16.mxu0 %vm6332_vm1, %v8280_v47 }
 0xcc7   : > { %v2586_v60 = vadd.f32 %v5188_v25, %v7491_v26  ;;  %v2577_v30 = vpop.f32.mrb[45].mxu0 }
 0xcc8   : > { %v2578_v19 = vadd.f32 %v2577_v30, %v7491_v26  ;;  %v5189_v0 = vpop.f32.mrb[46].mxu0 }
 0xcc9   : > { %v2589_v8 = vadd.f32 %v5189_v0, %v7491_v26  ;;  %v2580_v55 = vpop.f32.mrb[47].mxu0 }
 0xcca   : > { %v2581_v36 = vadd.f32 %v2580_v55, %v7491_v26 }
 0xccb   : > { %v7503_v42 = vpack.c.bf16 %v2589_v8, %v2586_v60 }
 0xccc   : > { %v7505_v48 = vpack.c.bf16 %v2581_v36, %v2578_v19 }
 0xcce   : > { %v5192_v12 = vpop.f32.mrb[48].mxu0  ;;  %5259 = vmatpush3.bf16.msra.mxu1 %v7505_v48 }
 0xccf   : > { %v2602_v11 = vadd.f32 %v5192_v12, %v7491_v26  ;;  %v2593_v39 = vpop.f32.mrb[49].mxu0  ;;  %5260 = vmatprep.subr.bf16.mxu1 %v8280_v47 }
 0xcd0   : > { %v2594_v17 = vadd.f32 %v2593_v39, %v7491_v26  ;;  %v5193_v15 = vpop.f32.mrb[50].mxu0 }
 0xcd1   : > { %v2605_v38 = vadd.f32 %v5193_v15, %v7491_v26  ;;  %v2596_v24 = vpop.f32.mrb[51].mxu0 }
 0xcd2   : > { %v2597_v29 = vadd.f32 %v2596_v24, %v7491_v26  ;;  %5261 = vmatpush3.bf16.msra.mxu1 %v7503_v42 }
 0xcd3   : > { %v7514_v54 = vpack.c.bf16 %v2605_v38, %v2602_v11  ;;  %5262 = vmatprep.subr.bf16.mxu1 %v8280_v47 }
 0xcd4   : > { %v7517_v50 = vpack.c.bf16 %v2597_v29, %v2594_v17 }
 0xcd6   : > { %v5196_v7 = vpop.f32.mrb[52].mxu0  ;;  %5263 = vmatpush3.bf16.msra.mxu1 %v7517_v50 }
 0xcd7   : > { %v2618_v41 = vadd.f32 %v5196_v7, %v7491_v26  ;;  %v2609_v57 = vpop.f32.mrb[53].mxu0  ;;  %5264 = vmatprep.subr.bf16.mxu1 %v8280_v47 }
 0xcd8   : > { %v2610_v59 = vadd.f32 %v2609_v57, %v7491_v26  ;;  %v5197_v4 = vpop.f32.mrb[54].mxu0 }
 0xcd9   : > { %v2621_v58 = vadd.f32 %v5197_v4, %v7491_v26  ;;  %v2612_v31 = vpop.f32.mrb[55].mxu0 }
 0xcda   : > { %v2613_v9 = vadd.f32 %v2612_v31, %v7491_v26  ;;  %5265 = vmatpush3.bf16.msra.mxu1 %v7514_v54 }
 0xcdb   : > { %v7526_v27 = vpack.c.bf16 %v2621_v58, %v2618_v41  ;;  %5266 = vmatprep.subr.bf16.mxu1 %v8280_v47 }
 0xcdc   : > { %v7529_v28 = vpack.c.bf16 %v2613_v9, %v2610_v59 }
 0xcde   : > { %v5200_v35 = vpop.f32.mrb[56].mxu0  ;;  %5267 = vmatpush3.bf16.msra.mxu1 %v7529_v28 }
 0xcdf   : > { %v2634_v51 = vadd.f32 %v5200_v35, %v7491_v26  ;;  %v2625_v43 = vpop.f32.mrb[57].mxu0  ;;  %5268 = vmatprep.subr.bf16.mxu1 %v8280_v47 }
 0xce0   : > { %v2626_v44 = vadd.f32 %v2625_v43, %v7491_v26  ;;  %v5201_v52 = vpop.f32.mrb[58].mxu0 }
 0xce1   : > { %v2637_v20 = vadd.f32 %v5201_v52, %v7491_v26  ;;  %v2628_v14 = vpop.f32.mrb[59].mxu0 }
 0xce2   : > { %v2629_v13 = vadd.f32 %v2628_v14, %v7491_v26  ;;  %5269 = vmatpush3.bf16.msra.mxu1 %v7526_v27 }
 0xce3   : > { %v7538_v2 = vpack.c.bf16 %v2637_v20, %v2634_v51  ;;  %5270 = vmatprep.subr.bf16.mxu1 %v8280_v47 }
 0xce4   : > { %v7541_v63 = vpack.c.bf16 %v2629_v13, %v2626_v44 }
 0xce6   : > { %v5204_v16 = vpop.f32.mrb[60].mxu0  ;;  %5271 = vmatpush3.bf16.msra.mxu1 %v7541_v63 }
 0xce7   : > { %v2650_v21 = vadd.f32 %v5204_v16, %v7491_v26  ;;  %v2641_v32 = vpop.f32.mrb[61].mxu0  ;;  %5272 = vmatprep.subr.bf16.mxu1 %v8280_v47 }
 0xce8   : > { %v2642_v33 = vadd.f32 %v2641_v32, %v7491_v26  ;;  %v5205_v45 = vpop.f32.mrb[62].mxu0 }
 0xce9   : > { %v2653_v6 = vadd.f32 %v5205_v45, %v7491_v26  ;;  %v2644_v40 = vpop.f32.mrb[63].mxu0 }
 0xcea   : > { %v2645_v25 = vadd.f32 %v2644_v40, %v7491_v26  ;;  %5273 = vmatpush3.bf16.msra.mxu1 %v7538_v2 }
 0xceb   : > { %v7550_v60 = vpack.c.bf16 %v2653_v6, %v2650_v21  ;;  %5298 = vmatprep.subr.bf16.mxu1 %v8280_v47  ;;  %v8281_v21 = vlaneseq }
 0xcec   : > { %v7553_v30 = vpack.c.bf16 %v2645_v25, %v2642_v33 }
 0xced   : > { %v2705_v32 = vand.u32 127, %v8281_v21 }
 0xcee   : > { %v5208_v19 = vpop.f32.mrb[64].mxu0  ;;  %5279 = vmatpush3.bf16.msra.mxu0 %v7553_v30 }
 0xcef   : > { %v2666_v0 = vadd.f32 %v5208_v19, %v7491_v26  ;;  %v2657_v8 = vpop.f32.mrb[65].mxu0  ;;  %5280 = vmatprep.subr.bf16.mxu0 %v8280_v47  ;;  %vm2706_vm8 = vcmp.lt.s32.totalorder %v2705_v32, 16 }
 0xcf0   : > { %v2658_v55 = vadd.f32 %v2657_v8, %v7491_v26  ;;  %v5209_v36 = vpop.f32.mrb[66].mxu0 }
 0xcf1   : > { %v2669_v12 = vadd.f32 %v5209_v36, %v7491_v26  ;;  %v2660_v11 = vpop.f32.mrb[67].mxu0 }
 0xcf2   : > { %v2661_v39 = vadd.f32 %v2660_v11, %v7491_v26  ;;  %5281 = vmatpush3.bf16.msra.mxu0 %v7550_v60  ;;  %v8282_v11 = vld [vmem:[#allocation37_spill] sm:$0xff] }
 0xcf3   : > { %v7562_v17 = vpack.c.bf16 %v2669_v12, %v2666_v0  ;;  %5282 = vmatprep.subr.bf16.mxu0 %v8280_v47 }
 0xcf4   : > { %v7565_v15 = vpack.c.bf16 %v2661_v39, %v2658_v55  ;;  %v8283_v39 = vld [vmem:[#allocation36_spill] sm:$0xff] }
 0xcf6   : > { %v5212_v38 = vpop.f32.mrb[68].mxu0  ;;  %5283 = vmatpush3.bf16.msra.mxu0 %v7565_v15 }
 0xcf7   : > { %v2682_v24 = vadd.f32 %v5212_v38, %v7491_v26  ;;  %v2673_v29 = vpop.f32.mrb[69].mxu0  ;;  %5284 = vmatprep.subr.bf16.mxu0 %v8280_v47  ;;  %v8284_v38 = vld [vmem:[#allocation39_spill] sm:$0xff] }
 0xcf8   : > { %v2674_v7 = vadd.f32 %v2673_v29, %v7491_v26  ;;  %v5213_v41 = vpop.f32.mrb[70].mxu0  ;;  %v8286_v29 = vld [vmem:[#allocation41_spill] sm:$0xff] }
 0xcf9   : > { %v2685_v57 = vadd.f32 %v5213_v41, %v7491_v26  ;;  %v2676_v59 = vpop.f32.mrb[71].mxu0  ;;  %v8288_v41 = vld [vmem:[#allocation42_spill] sm:$0xff] }
 0xcfa   : > { %v2677_v4 = vadd.f32 %v2676_v59, %v7491_v26  ;;  %5285 = vmatpush3.bf16.msra.mxu0 %v7562_v17 }
 0xcfb   : > { %v7574_v58 = vpack.c.bf16 %v2685_v57, %v2682_v24  ;;  %5286 = vmatprep.subr.bf16.mxu0 %v8280_v47  ;;  %v8285_v24 = vld [vmem:[#allocation38_spill] sm:$0xff] }
 0xcfc   : > { %v7577_v31 = vpack.c.bf16 %v2677_v4, %v2674_v7  ;;  %v8287_v7 = vld [vmem:[#allocation40_spill] sm:$0xff] }
 0xcfe   : > { %v5216_v9 = vpop.f32.mrb[72].mxu0  ;;  %5287 = vmatpush3.bf16.msra.mxu0 %v7577_v31 }
 0xcff   : > { %v2698_v35 = vadd.f32 %v5216_v9, %v7491_v26  ;;  %v2689_v51 = vpop.f32.mrb[73].mxu0  ;;  %5288 = vmatprep.subr.bf16.mxu0 %v8280_v47 }
 0xd00   : > { %v2690_v43 = vadd.f32 %v2689_v51, %v7491_v26  ;;  %v5217_v44 = vpop.f32.mrb[74].mxu0 }
 0xd01   : > { %v2701_v52 = vadd.f32 %v5217_v44, %v7491_v26  ;;  %v2692_v20 = vpop.f32.mrb[75].mxu0 }
 0xd02   : > { %v2693_v14 = vadd.f32 %v2692_v20, %v7491_v26  ;;  %5289 = vmatpush3.bf16.msra.mxu0 %v7574_v58  ;;  %v6339_v26 = vmov -1e+30  }
 0xd03   : > { %v7586_v13 = vpack.c.bf16 %v2701_v52, %v2698_v35  ;;  %5290 = vmatprep.subr.bf16.mxu0 %v8280_v47  ;;  %v7596_v33 = vsel %vm2706_vm8, 0.0, %v6339_v26 }
 0xd04   : > { %v7589_v16 = vpack.c.bf16 %v2693_v14, %v2690_v43 }
 0xd06   : > { %5291 = vmatpush3.bf16.msra.mxu0 %v7589_v16 }
 0xd07   : > { %5292 = vmatprep.subr.bf16.mxu0 %v8280_v47 }
 0xd0a   : > { %5293 = vmatpush3.bf16.msra.mxu0 %v7586_v13 }
 0xd0b   : > { %5318 = vmatprep.subr.bf16.mxu0 %v8280_v47 }
 0xd96   : > { %v2803_v45 = vpop.f32.mrb[72].mxu1 }
 0xd97   : > { %v2804_v6 = vadd.f32 %v2803_v45, %v7596_v33  ;;  %v5236_v40 = vpop.f32.mrb[73].mxu1 }
 0xd98   : > { %v2806_v25 = vpop.f32.mrb[74].mxu1  ;;  %v2870_v19 = vpop.f32.mrb[76].mxu0 }
 0xd99   : > { %v2871_v0 = vadd.f32 %v2870_v19, %v7596_v33  ;;  %2876 = vmax.xlane.f32.xlu0 %v2804_v6  ;;  %v5237_v8 = vpop.f32.mrb[75].mxu1  ;;  %v5256_v55 = vpop.f32.mrb[77].mxu0 }
 0xd9a   : > { %v2873_v36 = vpop.f32.mrb[78].mxu0 }
 0xd9b   : > { %2878 = vmax.xlane.f32.xlu1 %v2871_v0  ;;  %v5257_v12 = vpop.f32.mrb[79].mxu0 }
 0xdac   : > { %3083 = vrot.lane.b32.xlu1 %v7355_v62, %s6333_s11 }
 0xdaf   : > { %2989 = vrot.lane.b32.xlu0 %v8282_v11, %s6333_s11 }
 0xdb0   : > { %2991 = vrot.lane.b32.xlu1 %v8283_v39, %s6333_s11 }
 0xdb3   : > { %3085 = vrot.lane.b32.xlu0 %v7351_v34, %s6333_s11 }
 0xdb4   : > { %2993 = vrot.lane.b32.xlu1 %v8284_v38, %s6333_s11 }
 0xdb7   : > { %3087 = vrot.lane.b32.xlu0 %v7366_v1, %s6333_s11 }
 0xdb8   : > { %2995 = vrot.lane.b32.xlu1 %v8285_v24, %s6333_s11 }
 0xdbb   : > { %3089 = vrot.lane.b32.xlu0 %v7362_v49, %s6333_s11 }
 0xdbc   : > { %2997 = vrot.lane.b32.xlu1 %v8286_v29, %s6333_s11 }
 0xdbf   : > { %3091 = vrot.lane.b32.xlu0 %v7377_v37, %s6333_s11 }
 0xdc0   : > { %2999 = vrot.lane.b32.xlu1 %v8287_v7, %s6333_s11 }
 0xdc3   : > { %3093 = vrot.lane.b32.xlu0 %v7373_v53, %s6333_s11 }
 0xdc4   : > { %3001 = vrot.lane.b32.xlu1 %v8288_v41, %s6333_s11 }
 0xdc7   : > { %3095 = vrot.lane.b32.xlu0 %v7393_v61, %s6333_s11 }
 0xdc8   : > { %3003 = vrot.lane.b32.xlu1 %v7340_v23, %s6333_s11 }
 0xdcb   : > { %3097 = vrot.lane.b32.xlu0 %v7387_v10, %s6333_s11 }
 0xdcc   : > { %2979 = vrot.lane.b32.xlu1 %v7484_v46, %s6333_s11 }
 0xdcf   : > { %3073 = vrot.lane.b32.xlu0 %v7486_v5, %s6333_s11 }
 0xdd0   : > { %3190 = vrot.lane.b32.xlu1 %v7505_v48, %s6333_s11 }
 0xdd3   : > { %3262 = vrot.lane.b32.xlu0 %v7553_v30, %s6333_s11 }
 0xdd4   : > { %3192 = vrot.lane.b32.xlu1 %v7503_v42, %s6333_s11 }
 0xdd7   : > { %3264 = vrot.lane.b32.xlu0 %v7550_v60, %s6333_s11 }
 0xdd8   : > { %3266 = vrot.lane.b32.xlu1 %v7565_v15, %s6333_s11 }
 0xddb   : > { %3194 = vrot.lane.b32.xlu0 %v7517_v50, %s6333_s11 }
 0xddc   : > { %3196 = vrot.lane.b32.xlu1 %v7514_v54, %s6333_s11 }
 0xddf   : > { %3268 = vrot.lane.b32.xlu0 %v7562_v17, %s6333_s11 }
 0xde0   : > { %3198 = vrot.lane.b32.xlu1 %v7529_v28, %s6333_s11 }
 0xde3   : > { %3270 = vrot.lane.b32.xlu0 %v7577_v31, %s6333_s11 }
 0xde4   : > { %3200 = vrot.lane.b32.xlu1 %v7526_v27, %s6333_s11 }
 0xde7   : > { %3272 = vrot.lane.b32.xlu0 %v7574_v58, %s6333_s11 }
 0xde8   : > { %3202 = vrot.lane.b32.xlu1 %v7541_v63, %s6333_s11 }
 0xdeb   : > { %3274 = vrot.lane.b32.xlu0 %v7589_v16, %s6333_s11 }
 0xdec   : > { %3204 = vrot.lane.b32.xlu1 %v7538_v2, %s6333_s11 }
 0xdef   : > { %3276 = vrot.lane.b32.xlu0 %v7586_v13, %s6333_s11 }
 0xe26   : > { %v2877_v57 = vpop.xlane.xlu0 %2876 }
 0xe27   : > { %v2880_v59 = vsub.f32 %v2804_v6, %v2877_v57 }
 0xe28   : > { %v2879_v4 = vpop.xlane.xlu1 %2878 }
 0xe29   : > { %v2882_v9 = vmul.f32 1.442695, %v2880_v59  ;;  %v2881_v35 = vsub.f32 %v2871_v0, %v2879_v4 }
 0xe2a   : > { %v2990_v52 = vpop.permute.xlu0 %2989 }
 0xe2b   : > { %5786 = vpow2.f32 %v2882_v9  ;;  %v2884_v51 = vmul.f32 1.442695, %v2881_v35  ;;  %v3009_v21 = vsel %vm1092_vm3, %v2990_v52, 0 }
 0xe2c   : > { %v3084_v43 = vpop.permute.xlu1 %3083 }
 0xe2d   : > { %5788 = vpow2.f32 %v2884_v51  ;;  %v3103_v26 = vsel %vm1092_vm3, %v3084_v43, 0 }
 0xe2e   : > { %v3086_v6 = vpop.permute.xlu0 %3085 }
 0xe2f   : > { %v3106_v19 = vsel %vm1092_vm3, %v3086_v6, 0 }
 0xe30   : > { %v2992_v45 = vpop.permute.xlu1 %2991 }
 0xe31   : > { %v3012_v40 = vsel %vm1092_vm3, %v2992_v45, 0 }
 0xe32   : > { %v3088_v0 = vpop.permute.xlu0 %3087 }
 0xe33   : > { %v3109_v12 = vsel %vm1092_vm3, %v3088_v0, 0 }
 0xe34   : > { %v2994_v25 = vpop.permute.xlu1 %2993 }
 0xe35   : > { %v7668_v44 = vpop.eup %5786  ;;  %v3015_v55 = vsel %vm1092_vm3, %v2994_v25, 0 }
 0xe36   : > { %v2890_v20 = vpack.c.bf16 %v7668_v44, %v7668_v44  ;;  %v3090_v36 = vpop.permute.xlu0 %3089 }
 0xe37   : > { %v7672_v14 = vpop.eup %5788  ;;  %v3112_v9 = vsel %vm1092_vm3, %v3090_v36, 0 }
 0xe38   : > { %5275 = vmatmul.mubr.bf16.vlgmr.msra.gmra.mrb[76].mxu1 %v2890_v20  ;;  %v2891_v32 = vpack.c.bf16 %v7672_v14, %v7672_v14  ;;  %v2996_v8 = vpop.permute.xlu1 %2995 }
 0xe39   : > { %5299 = vmatpush3.bf16.xpose.msra.mxu1 %v3009_v21  ;;  %5314 = vmatprep.mubr.msk.bf16.mxu1 %vm6332_vm1, %v8280_v47  ;;  %v3018_v4 = vsel %vm1092_vm3, %v2996_v8, 0 }
 0xe3a   : > { %5295 = vmatmul.mubr.bf16.vlgmr.msra.gmra.mrb[80].mxu0 %v2891_v32  ;;  %5300 = vmatprep.subr.bf16.mxu1 %v8280_v47  ;;  %v3092_v59 = vpop.permute.xlu0 %3091 }
 0xe3b   : > { %5319 = vmatpush3.bf16.xpose.msra.mxu0 %v3103_v26  ;;  %5334 = vmatprep.mubr.msk.bf16.mxu0 %vm6332_vm1, %v8280_v47  ;;  %v3115_v20 = vsel %vm1092_vm3, %v3092_v59, 0 }
 0xe3c   : > { %5320 = vmatprep.subr.bf16.mxu0 %v8280_v47  ;;  %v2998_v57 = vpop.permute.xlu1 %2997 }
 0xe3d   : > { %v3021_v43 = vsel %vm1092_vm3, %v2998_v57, 0 }
 0xe3e   : > { %v3094_v51 = vpop.permute.xlu0 %3093 }
 0xe3f   : > { %v3118_v6 = vsel %vm1092_vm3, %v3094_v51, 0 }
 0xe40   : > { %v3000_v35 = vpop.permute.xlu1 %2999 }
 0xe41   : > { %5301 = vmatpush3.bf16.xpose.msra.mxu1 %v3012_v40  ;;  %v3024_v26 = vsel %vm1092_vm3, %v3000_v35, 0 }
 0xe42   : > { %5302 = vmatprep.subr.bf16.mxu1 %v8280_v47  ;;  %v3096_v21 = vpop.permute.xlu0 %3095 }
 0xe43   : > { %5321 = vmatpush3.bf16.xpose.msra.mxu0 %v3106_v19  ;;  %v3121_v0 = vsel %vm1092_vm3, %v3096_v21, 0 }
 0xe44   : > { %5322 = vmatprep.subr.bf16.mxu0 %v8280_v47  ;;  %v3002_v52 = vpop.permute.xlu1 %3001 }
 0xe45   : > { %v3027_v19 = vsel %vm1092_vm3, %v3002_v52, 0 }
 0xe46   : > { %v3098_v45 = vpop.permute.xlu0 %3097 }
 0xe47   : > { %v3124_v57 = vsel %vm1092_vm3, %v3098_v45, 0 }
 0xe48   : > { %v3004_v32 = vpop.permute.xlu1 %3003 }
 0xe49   : > { %5303 = vmatpush3.bf16.xpose.msra.mxu1 %v3015_v55  ;;  %v3030_v36 = vsel %vm1092_vm3, %v3004_v32, 0 }
 0xe4a   : > { %5304 = vmatprep.subr.bf16.mxu1 %v8280_v47  ;;  %v3074_v25 = vpop.permute.xlu0 %3073 }
 0xe4b   : > { %5323 = vmatpush3.bf16.xpose.msra.mxu0 %v3109_v12 }
 0xe4c   : > { %5324 = vmatprep.subr.bf16.mxu0 %v8280_v47  ;;  %v2980_v40 = vpop.permute.xlu1 %2979 }
 0xe4e   : > { %v3263_v55 = vpop.permute.xlu0 %3262 }
 0xe50   : > { %v3191_v8 = vpop.permute.xlu1 %3190 }
 0xe51   : > { %5305 = vmatpush3.bf16.xpose.msra.mxu1 %v3018_v4 }
 0xe52   : > { %5306 = vmatprep.subr.bf16.mxu1 %v8280_v47  ;;  %v3265_v59 = vpop.permute.xlu0 %3264 }
 0xe53   : > { %5325 = vmatpush3.bf16.xpose.msra.mxu0 %v3112_v9 }
 0xe54   : > { %5326 = vmatprep.subr.bf16.mxu0 %v8280_v47  ;;  %v3193_v12 = vpop.permute.xlu1 %3192 }
 0xe56   : > { %v3195_v9 = vpop.permute.xlu0 %3194 }
 0xe58   : > { %v3267_v4 = vpop.permute.xlu1 %3266 }
 0xe59   : > { %5307 = vmatpush3.bf16.xpose.msra.mxu1 %v3021_v43 }
 0xe5a   : > { %5308 = vmatprep.subr.bf16.mxu1 %v8280_v47  ;;  %v3269_v51 = vpop.permute.xlu0 %3268 }
 0xe5b   : > { %5327 = vmatpush3.bf16.xpose.msra.mxu0 %v3115_v20 }
 0xe5c   : > { %5328 = vmatprep.subr.bf16.mxu0 %v8280_v47  ;;  %v3197_v35 = vpop.permute.xlu1 %3196 }
 0xe5e   : > { %v3271_v52 = vpop.permute.xlu0 %3270 }
 0xe60   : > { %v3199_v43 = vpop.permute.xlu1 %3198 }
 0xe61   : > { %5309 = vmatpush3.bf16.xpose.msra.mxu1 %v3024_v26 }
 0xe62   : > { %5310 = vmatprep.subr.bf16.mxu1 %v8280_v47  ;;  %v3273_v21 = vpop.permute.xlu0 %3272 }
 0xe63   : > { %5329 = vmatpush3.bf16.xpose.msra.mxu0 %v3118_v6 }
 0xe64   : > { %5330 = vmatprep.subr.bf16.mxu0 %v8280_v47  ;;  %v3201_v20 = vpop.permute.xlu1 %3200 }
 0xe66   : > { %v3275_v26 = vpop.permute.xlu0 %3274 }
 0xe68   : > { %v3203_v32 = vpop.permute.xlu1 %3202 }
 0xe69   : > { %5311 = vmatpush3.bf16.xpose.msra.mxu1 %v3027_v19 }
 0xe6a   : > { %5312 = vmatprep.subr.bf16.mxu1 %v8280_v47  ;;  %v3277_v6 = vpop.permute.xlu0 %3276 }
 0xe6b   : > { %5331 = vmatpush3.bf16.xpose.msra.mxu0 %v3121_v0 }
 0xe6c   : > { %5332 = vmatprep.subr.bf16.mxu0 %v8280_v47  ;;  %v3205_v45 = vpop.permute.xlu1 %3204 }
 0xe71   : > { %5313 = vmatpush3.bf16.xpose.msra.mxu1 %v3030_v36 }
 0xe72   : > { %5338 = vmatprep.subr.bf16.mxu1 %v8280_v47 }
 0xe73   : > { %5333 = vmatpush3.bf16.xpose.msra.mxu0 %v3124_v57 }
 0xe74   : > { %5358 = vmatprep.subr.bf16.mxu0 %v8280_v47 }
 0xe78   : > { %5315 = vmatmul.mubr.msk.bf16.vlgmr.msra.gmra.mrb[80].mxu1 %vm1092_vm3, %v2980_v40 }
 0xe79   : > { %5339 = vmatpush3.bf16.msra.mxu1 %v3191_v8  ;;  %5354 = vmatprep.mubr.msk.bf16.mxu1 %vm6332_vm1, %v8280_v47 }
 0xe7a   : > { %5335 = vmatmul.mubr.msk.bf16.vlgmr.msra.gmra.mrb[84].mxu0 %vm1092_vm3, %v3074_v25  ;;  %5340 = vmatprep.subr.bf16.mxu1 %v8280_v47 }
 0xe7b   : > { %5359 = vmatpush3.bf16.msra.mxu0 %v3263_v55  ;;  %5374 = vmatprep.mubr.msk.bf16.mxu0 %vm6332_vm1, %v8280_v47 }
 0xe7c   : > { %5360 = vmatprep.subr.bf16.mxu0 %v8280_v47 }
 0xe7d   : > { %5341 = vmatpush3.bf16.msra.mxu1 %v3193_v12 }
 0xe7e   : > { %5342 = vmatprep.subr.bf16.mxu1 %v8280_v47 }
 0xe7f   : > { %5361 = vmatpush3.bf16.msra.mxu0 %v3265_v59 }
 0xe80   : > { %5362 = vmatprep.subr.bf16.mxu0 %v8280_v47 }
 0xe81   : > { %5343 = vmatpush3.bf16.msra.mxu1 %v3195_v9 }
 0xe82   : > { %5344 = vmatprep.subr.bf16.mxu1 %v8280_v47 }
 0xe83   : > { %5363 = vmatpush3.bf16.msra.mxu0 %v3267_v4 }
 0xe84   : > { %5364 = vmatprep.subr.bf16.mxu0 %v8280_v47 }
 0xe85   : > { %5345 = vmatpush3.bf16.msra.mxu1 %v3197_v35 }
 0xe86   : > { %5346 = vmatprep.subr.bf16.mxu1 %v8280_v47 }
 0xe87   : > { %5365 = vmatpush3.bf16.msra.mxu0 %v3269_v51 }
 0xe88   : > { %5366 = vmatprep.subr.bf16.mxu0 %v8280_v47 }
 0xe89   : > { %5347 = vmatpush3.bf16.msra.mxu1 %v3199_v43 }
 0xe8a   : > { %5348 = vmatprep.subr.bf16.mxu1 %v8280_v47 }
 0xe8b   : > { %5367 = vmatpush3.bf16.msra.mxu0 %v3271_v52 }
 0xe8c   : > { %5368 = vmatprep.subr.bf16.mxu0 %v8280_v47 }
 0xe8d   : > { %5349 = vmatpush3.bf16.msra.mxu1 %v3201_v20 }
 0xe8e   : > { %5350 = vmatprep.subr.bf16.mxu1 %v8280_v47 }
 0xe8f   : > { %5369 = vmatpush3.bf16.msra.mxu0 %v3273_v21 }
 0xe90   : > { %5370 = vmatprep.subr.bf16.mxu0 %v8280_v47 }
 0xe91   : > { %5351 = vmatpush3.bf16.msra.mxu1 %v3203_v32 }
 0xe92   : > { %5352 = vmatprep.subr.bf16.mxu1 %v8280_v47 }
 0xe93   : > { %5371 = vmatpush3.bf16.msra.mxu0 %v3275_v26 }
 0xe94   : > { %5372 = vmatprep.subr.bf16.mxu0 %v8280_v47 }
 0xe95   : > { %5353 = vmatpush3.bf16.msra.mxu1 %v3205_v45 }
 0xe96   : > { %5378 = vmatprep.subr.bf16.mxu1 %v8280_v47 }
 0xe97   : > { %5373 = vmatpush3.bf16.msra.mxu0 %v3277_v6 }
 0xe98   : > { %5398 = vmatprep.subr.bf16.mxu0 %v8280_v47 }
 0xf0b   : > { %v7734_v40 = vpop.f32.mrb[76].mxu1 }
 0xf0c   : > { %v5276_v25 = vpop.f32.mrb[77].mxu1 }
 0xf0d   : > { %v2929_v19 = vpop.f32.mrb[78].mxu1  ;;  %v7736_v0 = vpop.f32.mrb[80].mxu0 }
 0xf0e   : > { %v5277_v8 = vpop.f32.mrb[79].mxu1  ;;  %v5296_v55 = vpop.f32.mrb[81].mxu0 }
 0xf0f   : > { %v2969_v36 = vpop.f32.mrb[82].mxu0 }
 0xf10   : > { %v5297_v12 = vpop.f32.mrb[83].mxu0 }
 0xf4b   : > { %v3066_v57 = vpop.f32.mrb[80].mxu1 }
 0xf4c   : > { %v3067_v59 = vadd.f32 %v3066_v57, %v7596_v33  ;;  %v5316_v4 = vpop.f32.mrb[81].mxu1 }
 0xf4d   : > { %v3069_v9 = vpop.f32.mrb[82].mxu1  ;;  %v3160_v35 = vpop.f32.mrb[84].mxu0 }
 0xf4e   : > { %v3161_v51 = vadd.f32 %v3160_v35, %v7596_v33  ;;  %v5336_v43 = vpop.f32.mrb[85].mxu0  ;;  %3166 = vmax.xlane.f32.xlu1 %v3067_v59  ;;  %v5317_v52 = vpop.f32.mrb[83].mxu1 }
 0xf4f   : > { %v3163_v20 = vpop.f32.mrb[86].mxu0 }
 0xf50   : > { %v5337_v21 = vpop.f32.mrb[87].mxu0  ;;  %3168 = vmax.xlane.f32.xlu0 %v3161_v51 }
 0xf5f   : > { %3342 = vrot.lane.b32.xlu1 %v8282_v11, %s6334_s21 }
 0xf63   : > { %3344 = vrot.lane.b32.xlu1 %v8283_v39, %s6334_s21 }
 0xf66   : > { %3427 = vrot.lane.b32.xlu0 %v7355_v62, %s6334_s21 }
 0xf67   : > { %3346 = vrot.lane.b32.xlu1 %v8284_v38, %s6334_s21 }
 0xf6a   : > { %3429 = vrot.lane.b32.xlu0 %v7351_v34, %s6334_s21 }
 0xf6b   : > { %3348 = vrot.lane.b32.xlu1 %v8285_v24, %s6334_s21 }
 0xf6e   : > { %3431 = vrot.lane.b32.xlu0 %v7366_v1, %s6334_s21 }
 0xf6f   : > { %3350 = vrot.lane.b32.xlu1 %v8286_v29, %s6334_s21 }
 0xf72   : > { %3433 = vrot.lane.b32.xlu0 %v7362_v49, %s6334_s21 }
 0xf73   : > { %3352 = vrot.lane.b32.xlu1 %v8287_v7, %s6334_s21 }
 0xf76   : > { %3435 = vrot.lane.b32.xlu0 %v7377_v37, %s6334_s21 }
 0xf77   : > { %3354 = vrot.lane.b32.xlu1 %v8288_v41, %s6334_s21 }
 0xf7a   : > { %3437 = vrot.lane.b32.xlu0 %v7373_v53, %s6334_s21 }
 0xf7b   : > { %3356 = vrot.lane.b32.xlu1 %v7340_v23, %s6334_s21 }
 0xf7e   : > { %3439 = vrot.lane.b32.xlu0 %v7393_v61, %s6334_s21 }
 0xf7f   : > { %3340 = vrot.lane.b32.xlu1 %v7484_v46, %s6334_s21 }
 0xf82   : > { %3441 = vrot.lane.b32.xlu0 %v7387_v10, %s6334_s21 }
 0xf83   : > { %3526 = vrot.lane.b32.xlu1 %v7505_v48, %s6334_s21 }
 0xf86   : > { %3425 = vrot.lane.b32.xlu0 %v7486_v5, %s6334_s21 }
 0xf87   : > { %3528 = vrot.lane.b32.xlu1 %v7503_v42, %s6334_s21 }
 0xf8a   : > { %3590 = vrot.lane.b32.xlu0 %v7553_v30, %s6334_s21 }
 0xf8b   : > { %3594 = vrot.lane.b32.xlu1 %v7565_v15, %s6334_s21 }
 0xf8e   : > { %3592 = vrot.lane.b32.xlu0 %v7550_v60, %s6334_s21 }
 0xf8f   : > { %3532 = vrot.lane.b32.xlu1 %v7514_v54, %s6334_s21 }
 0xf92   : > { %3530 = vrot.lane.b32.xlu0 %v7517_v50, %s6334_s21 }
 0xf93   : > { %3534 = vrot.lane.b32.xlu1 %v7529_v28, %s6334_s21 }
 0xf96   : > { %3596 = vrot.lane.b32.xlu0 %v7562_v17, %s6334_s21 }
 0xf97   : > { %3536 = vrot.lane.b32.xlu1 %v7526_v27, %s6334_s21 }
 0xf9a   : > { %3598 = vrot.lane.b32.xlu0 %v7577_v31, %s6334_s21 }
 0xf9b   : > { %3538 = vrot.lane.b32.xlu1 %v7541_v63, %s6334_s21 }
 0xf9e   : > { %3600 = vrot.lane.b32.xlu0 %v7574_v58, %s6334_s21 }
 0xf9f   : > { %3540 = vrot.lane.b32.xlu1 %v7538_v2, %s6334_s21 }
 0xfa2   : > { %3602 = vrot.lane.b32.xlu0 %v7589_v16, %s6334_s21 }
 0xfa6   : > { %3604 = vrot.lane.b32.xlu0 %v7586_v13, %s6334_s21 }
 0xfdb   : > { %v3167_v32 = vpop.xlane.xlu1 %3166 }
 0xfdc   : > { %v3170_v26 = vsub.f32 %v3067_v59, %v3167_v32 }
 0xfdd   : > { %v3169_v45 = vpop.xlane.xlu0 %3168 }
 0xfde   : > { %v3172_v6 = vmul.f32 1.442695, %v3170_v26  ;;  %v3171_v25 = vsub.f32 %v3161_v51, %v3169_v45 }
 0xfdf   : > { %v3343_v8 = vpop.permute.xlu1 %3342 }
 0xfe0   : > { %5790 = vpow2.f32 %v3172_v6  ;;  %v3174_v19 = vmul.f32 1.442695, %v3171_v25  ;;  %v3362_v4 = vsel %vm1092_vm3, %v3343_v8, 0 }
 0xfe1   : > { %v3428_v36 = vpop.permute.xlu0 %3427 }
 0xfe2   : > { %5792 = vpow2.f32 %v3174_v19  ;;  %v3447_v9 = vsel %vm1092_vm3, %v3428_v36, 0 }
 0xfe3   : > { %v3345_v35 = vpop.permute.xlu1 %3344 }
 0xfe4   : > { %v3365_v43 = vsel %vm1092_vm3, %v3345_v35, 0 }
 0xfe5   : > { %v3430_v51 = vpop.permute.xlu0 %3429 }
 0xfe6   : > { %v3450_v20 = vsel %vm1092_vm3, %v3430_v51, 0 }
 0xfe7   : > { %v3347_v52 = vpop.permute.xlu1 %3346 }
 0xfe8   : > { %v3368_v26 = vsel %vm1092_vm3, %v3347_v52, 0 }
 0xfe9   : > { %v3432_v21 = vpop.permute.xlu0 %3431 }
 0xfea   : > { %v7808_v55 = vpop.eup %5790  ;;  %v3453_v6 = vsel %vm1092_vm3, %v3432_v21, 0 }
 0xfeb   : > { %v3180_v12 = vpack.c.bf16 %v7808_v55, %v7808_v55  ;;  %v3349_v32 = vpop.permute.xlu1 %3348 }
 0xfec   : > { %v7812_v57 = vpop.eup %5792  ;;  %v3371_v8 = vsel %vm1092_vm3, %v3349_v32, 0 }
 0xfed   : > { %5355 = vmatmul.mubr.bf16.vlgmr.msra.gmra.mrb[84].mxu1 %v3180_v12  ;;  %v3181_v59 = vpack.c.bf16 %v7812_v57, %v7812_v57  ;;  %v3434_v45 = vpop.permute.xlu0 %3433 }
 0xfee   : > { %5379 = vmatpush3.bf16.xpose.msra.mxu1 %v3362_v4  ;;  %5394 = vmatprep.mubr.msk.bf16.mxu1 %vm6332_vm1, %v8280_v47  ;;  %v3456_v36 = vsel %vm1092_vm3, %v3434_v45, 0 }
 0xfef   : > { %5375 = vmatmul.mubr.bf16.vlgmr.msra.gmra.mrb[88].mxu0 %v3181_v59  ;;  %5380 = vmatprep.subr.bf16.mxu1 %v8280_v47  ;;  %v3351_v25 = vpop.permute.xlu1 %3350 }
 0xff0   : > { %5399 = vmatpush3.bf16.xpose.msra.mxu0 %v3447_v9  ;;  %5414 = vmatprep.mubr.msk.bf16.mxu0 %vm6332_vm1, %v8280_v47  ;;  %v3374_v59 = vsel %vm1092_vm3, %v3351_v25, 0 }
 0xff1   : > { %5400 = vmatprep.subr.bf16.mxu0 %v8280_v47  ;;  %v3436_v19 = vpop.permute.xlu0 %3435 }
 0xff2   : > { %v3459_v35 = vsel %vm1092_vm3, %v3436_v19, 0 }
 0xff3   : > { %v3353_v12 = vpop.permute.xlu1 %3352 }
 0xff4   : > { %v3377_v52 = vsel %vm1092_vm3, %v3353_v12, 0 }
 0xff5   : > { %v3438_v4 = vpop.permute.xlu0 %3437 }
 0xff6   : > { %5381 = vmatpush3.bf16.xpose.msra.mxu1 %v3365_v43  ;;  %v3462_v21 = vsel %vm1092_vm3, %v3438_v4, 0 }
 0xff7   : > { %5382 = vmatprep.subr.bf16.mxu1 %v8280_v47  ;;  %v3355_v9 = vpop.permute.xlu1 %3354 }
 0xff8   : > { %5401 = vmatpush3.bf16.xpose.msra.mxu0 %v3450_v20  ;;  %v3380_v45 = vsel %vm1092_vm3, %v3355_v9, 0 }
 0xff9   : > { %5402 = vmatprep.subr.bf16.mxu0 %v8280_v47  ;;  %v3440_v51 = vpop.permute.xlu0 %3439 }
 0xffb   : > { %v3357_v43 = vpop.permute.xlu1 %3356 }
 0xffd   : > { %v3442_v20 = vpop.permute.xlu0 %3441 }
 0xffe   : > { %5383 = vmatpush3.bf16.xpose.msra.mxu1 %v3368_v26  ;;  %v3468_v12 = vsel %vm1092_vm3, %v3442_v20, 0 }
 0xfff   : > { %5384 = vmatprep.subr.bf16.mxu1 %v8280_v47  ;;  %v3341_v32 = vpop.permute.xlu1 %3340 }
0x1000   : > { %5403 = vmatpush3.bf16.xpose.msra.mxu0 %v3453_v6  ;;  %v3465_v6 = vsel %vm1092_vm3, %v3440_v51, 0 }
0x1001   : > { %5404 = vmatprep.subr.bf16.mxu0 %v8280_v47  ;;  %v3426_v26 = vpop.permute.xlu0 %3425 }
0x1003   : > { %v3527_v25 = vpop.permute.xlu1 %3526 }
0x1005   : > { %v3591_v19 = vpop.permute.xlu0 %3590 }
0x1006   : > { %5385 = vmatpush3.bf16.xpose.msra.mxu1 %v3371_v8  ;;  %v3383_v8 = vsel %vm1092_vm3, %v3357_v43, 0 }
0x1007   : > { %5386 = vmatprep.subr.bf16.mxu1 %v8280_v47 }
0x1008   : > { %5405 = vmatpush3.bf16.xpose.msra.mxu0 %v3456_v36  ;;  %v3529_v36 = vpop.permute.xlu1 %3528 }
0x1009   : > { %5406 = vmatprep.subr.bf16.mxu0 %v8280_v47  ;;  %v3593_v4 = vpop.permute.xlu0 %3592 }
0x100d   : > { %v3531_v9 = vpop.permute.xlu0 %3530 }
0x100e   : > { %5387 = vmatpush3.bf16.xpose.msra.mxu1 %v3374_v59  ;;  %v3595_v59 = vpop.permute.xlu1 %3594 }
0x100f   : > { %5388 = vmatprep.subr.bf16.mxu1 %v8280_v47 }
0x1010   : > { %5407 = vmatpush3.bf16.xpose.msra.mxu0 %v3459_v35 }
0x1011   : > { %5408 = vmatprep.subr.bf16.mxu0 %v8280_v47  ;;  %v3597_v51 = vpop.permute.xlu0 %3596 }
0x1012   : > { %v3533_v35 = vpop.permute.xlu1 %3532 }
0x1016   : > { %5389 = vmatpush3.bf16.xpose.msra.mxu1 %v3377_v52  ;;  %v3535_v43 = vpop.permute.xlu1 %3534  ;;  %v3599_v52 = vpop.permute.xlu0 %3598 }
0x1017   : > { %5390 = vmatprep.subr.bf16.mxu1 %v8280_v47 }
0x1018   : > { %5409 = vmatpush3.bf16.xpose.msra.mxu0 %v3462_v21 }
0x1019   : > { %5410 = vmatprep.subr.bf16.mxu0 %v8280_v47 }
0x101a   : > { %v3537_v20 = vpop.permute.xlu1 %3536  ;;  %v3601_v21 = vpop.permute.xlu0 %3600 }
0x101e   : > { %5391 = vmatpush3.bf16.xpose.msra.mxu1 %v3380_v45 }
0x101f   : > { %5392 = vmatprep.subr.bf16.mxu1 %v8280_v47 }
0x1020   : > { %5411 = vmatpush3.bf16.xpose.msra.mxu0 %v3465_v6 }
0x1021   : > { %5412 = vmatprep.subr.bf16.mxu0 %v8280_v47 }
0x1026   : > { %5393 = vmatpush3.bf16.xpose.msra.mxu1 %v3383_v8 }
0x1027   : > { %5418 = vmatprep.subr.bf16.mxu1 %v8280_v47 }
0x1028   : > { %5413 = vmatpush3.bf16.xpose.msra.mxu0 %v3468_v12 }
0x1029   : > { %5438 = vmatprep.subr.bf16.mxu0 %v8280_v47 }
0x102d   : > { %5395 = vmatmul.mubr.msk.bf16.vlgmr.msra.gmra.mrb[88].mxu1 %vm1092_vm3, %v3341_v32  ;;  %v3539_v32 = vpop.permute.xlu1 %3538 }
0x102e   : > { %5419 = vmatpush3.bf16.msra.mxu1 %v3527_v25  ;;  %5434 = vmatprep.mubr.msk.bf16.mxu1 %vm6332_vm1, %v8280_v47 }
0x102f   : > { %5415 = vmatmul.mubr.msk.bf16.vlgmr.msra.gmra.mrb[92].mxu0 %vm1092_vm3, %v3426_v26  ;;  %5420 = vmatprep.subr.bf16.mxu1 %v8280_v47  ;;  %v3603_v26 = vpop.permute.xlu0 %3602 }
0x1030   : > { %5439 = vmatpush3.bf16.msra.mxu0 %v3591_v19  ;;  %5454 = vmatprep.mubr.msk.bf16.mxu0 %vm6332_vm1, %v8280_v47 }
0x1031   : > { %5440 = vmatprep.subr.bf16.mxu0 %v8280_v47  ;;  %v3541_v45 = vpop.permute.xlu1 %3540 }
0x1032   : > { %5421 = vmatpush3.bf16.msra.mxu1 %v3529_v36 }
0x1033   : > { %5422 = vmatprep.subr.bf16.mxu1 %v8280_v47  ;;  %v3605_v6 = vpop.permute.xlu0 %3604 }
0x1034   : > { %5441 = vmatpush3.bf16.msra.mxu0 %v3593_v4 }
0x1035   : > { %5442 = vmatprep.subr.bf16.mxu0 %v8280_v47 }
0x1036   : > { %5423 = vmatpush3.bf16.msra.mxu1 %v3531_v9 }
0x1037   : > { %5424 = vmatprep.subr.bf16.mxu1 %v8280_v47 }
0x1038   : > { %5443 = vmatpush3.bf16.msra.mxu0 %v3595_v59 }
0x1039   : > { %5444 = vmatprep.subr.bf16.mxu0 %v8280_v47 }
0x103a   : > { %5425 = vmatpush3.bf16.msra.mxu1 %v3533_v35 }
0x103b   : > { %5426 = vmatprep.subr.bf16.mxu1 %v8280_v47 }
0x103c   : > { %5445 = vmatpush3.bf16.msra.mxu0 %v3597_v51 }
0x103d   : > { %5446 = vmatprep.subr.bf16.mxu0 %v8280_v47 }
0x103e   : > { %5427 = vmatpush3.bf16.msra.mxu1 %v3535_v43 }
0x103f   : > { %5428 = vmatprep.subr.bf16.mxu1 %v8280_v47 }
0x1040   : > { %5447 = vmatpush3.bf16.msra.mxu0 %v3599_v52 }
0x1041   : > { %5448 = vmatprep.subr.bf16.mxu0 %v8280_v47 }
0x1042   : > { %5429 = vmatpush3.bf16.msra.mxu1 %v3537_v20 }
0x1043   : > { %5430 = vmatprep.subr.bf16.mxu1 %v8280_v47 }
0x1044   : > { %5449 = vmatpush3.bf16.msra.mxu0 %v3601_v21 }
0x1045   : > { %5450 = vmatprep.subr.bf16.mxu0 %v8280_v47 }
0x1046   : > { %5431 = vmatpush3.bf16.msra.mxu1 %v3539_v32 }
0x1047   : > { %5432 = vmatprep.subr.bf16.mxu1 %v8280_v47 }
0x1048   : > { %5451 = vmatpush3.bf16.msra.mxu0 %v3603_v26 }
0x1049   : > { %5452 = vmatprep.subr.bf16.mxu0 %v8280_v47 }
0x104a   : > { %5433 = vmatpush3.bf16.msra.mxu1 %v3541_v45 }
0x104b   : > { %5458 = vmatprep.subr.bf16.mxu1 %v8280_v47 }
0x104c   : > { %5453 = vmatpush3.bf16.msra.mxu0 %v3605_v6 }
0x104d   : > { %5478 = vmatprep.subr.bf16.mxu0 %v8280_v47 }
0x10c0   : > { %v7874_v25 = vpop.f32.mrb[84].mxu1 }
0x10c1   : > { %v5356_v19 = vpop.f32.mrb[85].mxu1 }
0x10c2   : > { %v3251_v8 = vpop.f32.mrb[86].mxu1  ;;  %v7876_v36 = vpop.f32.mrb[88].mxu0 }
0x10c3   : > { %v5357_v12 = vpop.f32.mrb[87].mxu1  ;;  %v5376_v4 = vpop.f32.mrb[89].mxu0 }
0x10c4   : > { %v3323_v59 = vpop.f32.mrb[90].mxu0 }
0x10c5   : > { %v5377_v9 = vpop.f32.mrb[91].mxu0 }
0x1100   : > { %v3419_v35 = vpop.f32.mrb[88].mxu1 }
0x1101   : > { %v3420_v51 = vadd.f32 %v3419_v35, %v7596_v33  ;;  %v5396_v43 = vpop.f32.mrb[89].mxu1 }
0x1102   : > { %v3422_v52 = vpop.f32.mrb[90].mxu1  ;;  %v3504_v20 = vpop.f32.mrb[92].mxu0 }
0x1103   : > { %v3505_v21 = vadd.f32 %v3504_v20, %v7596_v33  ;;  %v5416_v32 = vpop.f32.mrb[93].mxu0  ;;  %3510 = vmax.xlane.f32.xlu1 %v3420_v51  ;;  %v5397_v26 = vpop.f32.mrb[91].mxu1 }
0x1104   : > { %v3507_v45 = vpop.f32.mrb[94].mxu0 }
0x1105   : > { %3512 = vmax.xlane.f32.xlu0 %v3505_v21  ;;  %v5417_v6 = vpop.f32.mrb[95].mxu0 }
0x1114   : > { %3670 = vrot.lane.b32.xlu1 %v8282_v11, %s6335_s5 }
0x1118   : > { %3672 = vrot.lane.b32.xlu1 %v8283_v39, %s6335_s5 }
0x111b   : > { %3755 = vrot.lane.b32.xlu0 %v7355_v62, %s6335_s5 }
0x111c   : > { %3674 = vrot.lane.b32.xlu1 %v8284_v38, %s6335_s5 }
0x111f   : > { %3757 = vrot.lane.b32.xlu0 %v7351_v34, %s6335_s5 }
0x1120   : > { %3676 = vrot.lane.b32.xlu1 %v8285_v24, %s6335_s5 }
0x1123   : > { %3759 = vrot.lane.b32.xlu0 %v7366_v1, %s6335_s5 }
0x1124   : > { %3678 = vrot.lane.b32.xlu1 %v8286_v29, %s6335_s5 }
0x1127   : > { %3761 = vrot.lane.b32.xlu0 %v7362_v49, %s6335_s5 }
0x1128   : > { %3680 = vrot.lane.b32.xlu1 %v8287_v7, %s6335_s5 }
0x112b   : > { %3763 = vrot.lane.b32.xlu0 %v7377_v37, %s6335_s5 }
0x112c   : > { %3682 = vrot.lane.b32.xlu1 %v8288_v41, %s6335_s5 }
0x112f   : > { %3765 = vrot.lane.b32.xlu0 %v7373_v53, %s6335_s5 }
0x1130   : > { %3684 = vrot.lane.b32.xlu1 %v7340_v23, %s6335_s5 }
0x1133   : > { %3767 = vrot.lane.b32.xlu0 %v7393_v61, %s6335_s5 }
0x1134   : > { %3668 = vrot.lane.b32.xlu1 %v7484_v46, %s6335_s5 }
0x1137   : > { %3769 = vrot.lane.b32.xlu0 %v7387_v10, %s6335_s5 }
0x1138   : > { %3918 = vrot.lane.b32.xlu1 %v7553_v30, %s6335_s5 }
0x113b   : > { %3753 = vrot.lane.b32.xlu0 %v7486_v5, %s6335_s5 }
0x113c   : > { %3856 = vrot.lane.b32.xlu1 %v7503_v42, %s6335_s5 }
0x113f   : > { %3854 = vrot.lane.b32.xlu0 %v7505_v48, %s6335_s5 }
0x1140   : > { %3858 = vrot.lane.b32.xlu1 %v7517_v50, %s6335_s5 }
0x1143   : > { %3920 = vrot.lane.b32.xlu0 %v7550_v60, %s6335_s5 }
0x1144   : > { %3860 = vrot.lane.b32.xlu1 %v7514_v54, %s6335_s5 }
0x1147   : > { %3922 = vrot.lane.b32.xlu0 %v7565_v15, %s6335_s5 }
0x1148   : > { %3862 = vrot.lane.b32.xlu1 %v7529_v28, %s6335_s5 }
0x114b   : > { %3924 = vrot.lane.b32.xlu0 %v7562_v17, %s6335_s5 }
0x114c   : > { %3864 = vrot.lane.b32.xlu1 %v7526_v27, %s6335_s5 }
0x114f   : > { %3926 = vrot.lane.b32.xlu0 %v7577_v31, %s6335_s5 }
0x1150   : > { %3866 = vrot.lane.b32.xlu1 %v7541_v63, %s6335_s5 }
0x1153   : > { %3928 = vrot.lane.b32.xlu0 %v7574_v58, %s6335_s5 }
0x1157   : > { %3930 = vrot.lane.b32.xlu0 %v7589_v16, %s6335_s5 }
0x1190   : > { %v3511_v23 = vpop.xlane.xlu1 %3510 }
0x1191   : > { %v3514_v10 = vsub.f32 %v3420_v51, %v3511_v23 }
0x1192   : > { %v3513_v34 = vpop.xlane.xlu0 %3512 }
0x1193   : > { %v3516_v62 = vmul.f32 1.442695, %v3514_v10  ;;  %v3515_v49 = vsub.f32 %v3505_v21, %v3513_v34 }
0x1194   : > { %v3671_v37 = vpop.permute.xlu1 %3670 }
0x1195   : > { %5794 = vpow2.f32 %v3516_v62  ;;  %v3518_v1 = vmul.f32 1.442695, %v3515_v49  ;;  %v3690_v42 = vsel %vm1092_vm3, %v3671_v37, 0 }
0x1196   : > { %v3756_v5 = vpop.permute.xlu0 %3755 }
0x1197   : > { %5796 = vpow2.f32 %v3518_v1  ;;  %v3775_v54 = vsel %vm1092_vm3, %v3756_v5, 0 }
0x1198   : > { %v3673_v50 = vpop.permute.xlu1 %3672 }
0x1199   : > { %v3693_v28 = vsel %vm1092_vm3, %v3673_v50, 0 }
0x119a   : > { %v3758_v27 = vpop.permute.xlu0 %3757 }
0x119b   : > { %v3778_v63 = vsel %vm1092_vm3, %v3758_v27, 0 }
0x119c   : > { %v3675_v60 = vpop.permute.xlu1 %3674 }
0x119d   : > { %v3696_v17 = vsel %vm1092_vm3, %v3675_v60, 0 }
0x119e   : > { %v3760_v30 = vpop.permute.xlu0 %3759 }
0x119f   : > { %v7944_v53 = vpop.eup %5794  ;;  %v3781_v58 = vsel %vm1092_vm3, %v3760_v30, 0 }
0x11a0   : > { %v3524_v61 = vpack.c.bf16 %v7944_v53, %v7944_v53  ;;  %v3677_v15 = vpop.permute.xlu1 %3676 }
0x11a1   : > { %v7948_v46 = vpop.eup %5796  ;;  %v3699_v11 = vsel %vm1092_vm3, %v3677_v15, 0 }
0x11a2   : > { %5435 = vmatmul.mubr.bf16.vlgmr.msra.gmra.mrb[92].mxu1 %v3524_v61  ;;  %v3525_v48 = vpack.c.bf16 %v7948_v46, %v7948_v46  ;;  %v3762_v31 = vpop.permute.xlu0 %3761 }
0x11a3   : > { %5459 = vmatpush3.bf16.xpose.msra.mxu1 %v3690_v42  ;;  %5474 = vmatprep.mubr.msk.bf16.mxu1 %vm6332_vm1, %v8280_v47  ;;  %v3784_v38 = vsel %vm1092_vm3, %v3762_v31, 0 }
0x11a4   : > { %5455 = vmatmul.mubr.bf16.vlgmr.msra.gmra.mrb[96].mxu0 %v3525_v48  ;;  %5460 = vmatprep.subr.bf16.mxu1 %v8280_v47  ;;  %v3679_v16 = vpop.permute.xlu1 %3678 }
0x11a5   : > { %5479 = vmatpush3.bf16.xpose.msra.mxu0 %v3775_v54  ;;  %5494 = vmatprep.mubr.msk.bf16.mxu0 %vm6332_vm1, %v8280_v47  ;;  %v3702_v7 = vsel %vm1092_vm3, %v3679_v16, 0 }
0x11a6   : > { %5480 = vmatprep.subr.bf16.mxu0 %v8280_v47  ;;  %v3764_v39 = vpop.permute.xlu0 %3763 }
0x11a7   : > { %v3787_v41 = vsel %vm1092_vm3, %v3764_v39, 0 }
0x11a8   : > { %v3681_v24 = vpop.permute.xlu1 %3680 }
0x11a9   : > { %v3705_v12 = vsel %vm1092_vm3, %v3681_v24, 0 }
0x11aa   : > { %v3766_v29 = vpop.permute.xlu0 %3765 }
0x11ab   : > { %5461 = vmatpush3.bf16.xpose.msra.mxu1 %v3693_v28  ;;  %v3790_v59 = vsel %vm1092_vm3, %v3766_v29, 0 }
0x11ac   : > { %5462 = vmatprep.subr.bf16.mxu1 %v8280_v47  ;;  %v3683_v19 = vpop.permute.xlu1 %3682 }
0x11ad   : > { %5481 = vmatpush3.bf16.xpose.msra.mxu0 %v3778_v63  ;;  %v3708_v51 = vsel %vm1092_vm3, %v3683_v19, 0 }
0x11ae   : > { %5482 = vmatprep.subr.bf16.mxu0 %v8280_v47  ;;  %v3768_v8 = vpop.permute.xlu0 %3767 }
0x11af   : > { %v3793_v52 = vsel %vm1092_vm3, %v3768_v8, 0 }
0x11b0   : > { %v3685_v4 = vpop.permute.xlu1 %3684 }
0x11b1   : > { %v3711_v32 = vsel %vm1092_vm3, %v3685_v4, 0 }
0x11b2   : > { %v3770_v9 = vpop.permute.xlu0 %3769 }
0x11b3   : > { %5463 = vmatpush3.bf16.xpose.msra.mxu1 %v3696_v17  ;;  %v3796_v26 = vsel %vm1092_vm3, %v3770_v9, 0 }
0x11b4   : > { %5464 = vmatprep.subr.bf16.mxu1 %v8280_v47  ;;  %v3669_v35 = vpop.permute.xlu1 %3668 }
0x11b5   : > { %5483 = vmatpush3.bf16.xpose.msra.mxu0 %v3781_v58 }
0x11b6   : > { %5484 = vmatprep.subr.bf16.mxu0 %v8280_v47  ;;  %v3754_v43 = vpop.permute.xlu0 %3753 }
0x11b8   : > { %v3919_v20 = vpop.permute.xlu1 %3918 }
0x11ba   : > { %v3855_v21 = vpop.permute.xlu0 %3854 }
0x11bb   : > { %5465 = vmatpush3.bf16.xpose.msra.mxu1 %v3699_v11 }
0x11bc   : > { %5466 = vmatprep.subr.bf16.mxu1 %v8280_v47  ;;  %v3857_v45 = vpop.permute.xlu1 %3856 }
0x11bd   : > { %5485 = vmatpush3.bf16.xpose.msra.mxu0 %v3784_v38 }
0x11be   : > { %5486 = vmatprep.subr.bf16.mxu0 %v8280_v47  ;;  %v3921_v6 = vpop.permute.xlu0 %3920 }
0x11c0   : > { %v3859_v23 = vpop.permute.xlu1 %3858 }
0x11c2   : > { %v3923_v10 = vpop.permute.xlu0 %3922 }
0x11c3   : > { %5467 = vmatpush3.bf16.xpose.msra.mxu1 %v3702_v7 }
0x11c4   : > { %5468 = vmatprep.subr.bf16.mxu1 %v8280_v47  ;;  %v3861_v34 = vpop.permute.xlu1 %3860 }
0x11c5   : > { %5487 = vmatpush3.bf16.xpose.msra.mxu0 %v3787_v41 }
0x11c6   : > { %5488 = vmatprep.subr.bf16.mxu0 %v8280_v47  ;;  %v3925_v62 = vpop.permute.xlu0 %3924 }
0x11c8   : > { %v3863_v49 = vpop.permute.xlu1 %3862 }
0x11ca   : > { %v3927_v1 = vpop.permute.xlu0 %3926 }
0x11cb   : > { %5469 = vmatpush3.bf16.xpose.msra.mxu1 %v3705_v12 }
0x11cc   : > { %5470 = vmatprep.subr.bf16.mxu1 %v8280_v47  ;;  %v3865_v37 = vpop.permute.xlu1 %3864 }
0x11cd   : > { %5489 = vmatpush3.bf16.xpose.msra.mxu0 %v3790_v59 }
0x11ce   : > { %5490 = vmatprep.subr.bf16.mxu0 %v8280_v47  ;;  %v3929_v61 = vpop.permute.xlu0 %3928 }
0x11d0   : > { %v3867_v5 = vpop.permute.xlu1 %3866 }
0x11d2   : > { %v3931_v42 = vpop.permute.xlu0 %3930 }
0x11d3   : > { %5471 = vmatpush3.bf16.xpose.msra.mxu1 %v3708_v51 }
0x11d4   : > { %5472 = vmatprep.subr.bf16.mxu1 %v8280_v47 }
0x11d5   : > { %5491 = vmatpush3.bf16.xpose.msra.mxu0 %v3793_v52 }
0x11d6   : > { %5492 = vmatprep.subr.bf16.mxu0 %v8280_v47 }
0x11db   : > { %5473 = vmatpush3.bf16.xpose.msra.mxu1 %v3711_v32 }
0x11dc   : > { %5498 = vmatprep.subr.bf16.mxu1 %v8280_v47 }
0x11dd   : > { %5493 = vmatpush3.bf16.xpose.msra.mxu0 %v3796_v26 }
0x11de   : > { %5518 = vmatprep.subr.bf16.mxu0 %v8280_v47 }
0x11e2   : > { %5475 = vmatmul.mubr.msk.bf16.vlgmr.msra.gmra.mrb[96].mxu1 %vm1092_vm3, %v3669_v35 }
0x11e3   : > { %5499 = vmatpush3.bf16.msra.mxu1 %v3855_v21  ;;  %5514 = vmatprep.mubr.msk.bf16.mxu1 %vm6332_vm1, %v8280_v47 }
0x11e4   : > { %5495 = vmatmul.mubr.msk.bf16.vlgmr.msra.gmra.mrb[100].mxu0 %vm1092_vm3, %v3754_v43  ;;  %5500 = vmatprep.subr.bf16.mxu1 %v8280_v47 }
0x11e5   : > { %5519 = vmatpush3.bf16.msra.mxu0 %v3919_v20  ;;  %5534 = vmatprep.mubr.msk.bf16.mxu0 %vm6332_vm1, %v8280_v47 }
0x11e6   : > { %5520 = vmatprep.subr.bf16.mxu0 %v8280_v47 }
0x11e7   : > { %5501 = vmatpush3.bf16.msra.mxu1 %v3857_v45 }
0x11e8   : > { %5502 = vmatprep.subr.bf16.mxu1 %v8280_v47 }
0x11e9   : > { %5521 = vmatpush3.bf16.msra.mxu0 %v3921_v6 }
0x11ea   : > { %5522 = vmatprep.subr.bf16.mxu0 %v8280_v47 }
0x11eb   : > { %5503 = vmatpush3.bf16.msra.mxu1 %v3859_v23 }
0x11ec   : > { %5504 = vmatprep.subr.bf16.mxu1 %v8280_v47 }
0x11ed   : > { %5523 = vmatpush3.bf16.msra.mxu0 %v3923_v10 }
0x11ee   : > { %5524 = vmatprep.subr.bf16.mxu0 %v8280_v47 }
0x11ef   : > { %5505 = vmatpush3.bf16.msra.mxu1 %v3861_v34 }
0x11f0   : > { %5506 = vmatprep.subr.bf16.mxu1 %v8280_v47 }
0x11f1   : > { %5525 = vmatpush3.bf16.msra.mxu0 %v3925_v62 }
0x11f2   : > { %5526 = vmatprep.subr.bf16.mxu0 %v8280_v47 }
0x11f3   : > { %5507 = vmatpush3.bf16.msra.mxu1 %v3863_v49 }
0x11f4   : > { %5508 = vmatprep.subr.bf16.mxu1 %v8280_v47 }
0x11f5   : > { %5527 = vmatpush3.bf16.msra.mxu0 %v3927_v1 }
0x11f6   : > { %5528 = vmatprep.subr.bf16.mxu0 %v8280_v47 }
0x11f7   : > { %5509 = vmatpush3.bf16.msra.mxu1 %v3865_v37 }
0x11f8   : > { %5510 = vmatprep.subr.bf16.mxu1 %v8280_v47 }
0x11f9   : > { %5529 = vmatpush3.bf16.msra.mxu0 %v3929_v61  ;;  %v5743_v61 = vld [vmem:[%s6859_s26 + $0x78] sm:$0xff]  }
0x11fa   : > { %5530 = vmatprep.subr.bf16.mxu0 %v8280_v47 }
0x11fb   : > { %5511 = vmatpush3.bf16.msra.mxu1 %v3867_v5 }
0x11fc   : > { %5512 = vmatprep.subr.bf16.mxu1 %v8280_v47 }
0x11fd   : > { %5531 = vmatpush3.bf16.msra.mxu0 %v3931_v42 }
0x11fe   : > { %5532 = vmatprep.subr.bf16.mxu0 %v8280_v47 }
0x1275   : > { %v8008_v48 = vpop.f32.mrb[92].mxu1 }
0x1276   : > { %v5436_v54 = vpop.f32.mrb[93].mxu1 }
0x1277   : > { %v3587_v50 = vpop.f32.mrb[94].mxu1  ;;  %v8010_v27 = vpop.f32.mrb[96].mxu0 }
0x1278   : > { %v5437_v28 = vpop.f32.mrb[95].mxu1  ;;  %v5456_v63 = vpop.f32.mrb[97].mxu0 }
0x1279   : > { %v3651_v60 = vpop.f32.mrb[98].mxu0 }
0x127a   : > { %v5457_v30 = vpop.f32.mrb[99].mxu0 }
0x12b5   : > { %v3747_v17 = vpop.f32.mrb[96].mxu1 }
0x12b6   : > { %v3748_v15 = vadd.f32 %v3747_v17, %v7596_v33  ;;  %v5476_v58 = vpop.f32.mrb[97].mxu1 }
0x12b7   : > { %v3750_v31 = vpop.f32.mrb[98].mxu1  ;;  %v3832_v16 = vpop.f32.mrb[100].mxu0 }
0x12b8   : > { %v3833_v11 = vadd.f32 %v3832_v16, %v7596_v33  ;;  %v5496_v39 = vpop.f32.mrb[101].mxu0  ;;  %3838 = vmax.xlane.f32.xlu1 %v3748_v15  ;;  %v5477_v38 = vpop.f32.mrb[99].mxu1 }
0x12b9   : > { %v3835_v24 = vpop.f32.mrb[102].mxu0  ;;  %v4006_v39 = vsub.s32 7, %v6922_v18  ;;  %v5829_v38 = vld [vmem:[%s6869_s4] sm:$0xff] }
0x12ba   : > { %3840 = vmax.xlane.f32.xlu0 %v3833_v11  ;;  %v5497_v29 = vpop.f32.mrb[103].mxu0 }
0x12bb   : > { %v4007_v24 = vrot.slane %v5829_v38, %v4006_v39 }
0x12c9   : > { %3868 = vrot.lane.b32.xlu1 %v7538_v2, %s6335_s5 }
0x12d0   : > { %3932 = vrot.lane.b32.xlu0 %v7586_v13, %s6335_s5 }
0x12ed   : > { %3176 = vadd.xlane.f32.xlu1 %v7808_v55 }
0x12ef   : > { %3178 = vadd.xlane.f32.xlu0 %v7812_v57 }
0x12f1   : > { %3522 = vadd.xlane.f32.xlu1 %v7948_v46 }
0x12f3   : > { %3520 = vadd.xlane.f32.xlu0 %v7944_v53 }
0x1345   : > { %v3839_v33 = vpop.xlane.xlu1 %3838 }
0x1346   : > { %v3842_v7 = vsub.f32 %v3748_v15, %v3839_v33 }
0x1347   : > { %v3841_v41 = vpop.xlane.xlu0 %3840 }
0x1348   : > { %v3844_v19 = vmul.f32 1.442695, %v3842_v7  ;;  %v3843_v8 = vsub.f32 %v3833_v11, %v3841_v41 }
0x1349   : > { %v3869_v12 = vpop.permute.xlu1 %3868 }
0x134a   : > { %5798 = vpow2.f32 %v3844_v19  ;;  %v3846_v4 = vmul.f32 1.442695, %v3843_v8  ;;  %5513 = vmatpush3.bf16.msra.mxu1 %v3869_v12 }
0x134b   : > { %v3933_v2 = vpop.permute.xlu0 %3932  ;;  %5538 = vmatprep.subr.bf16.mxu1 %v8280_v47 }
0x134c   : > { %5800 = vpow2.f32 %v3846_v4  ;;  %5533 = vmatpush3.bf16.msra.mxu0 %v3933_v2 }
0x134d   : > { %5546 = vmatprep.subr.bf16.mxu0 %v8280_v47 }
0x1354   : > { %v5799_v13 = vpop.eup %5798 }
0x1355   : > { %3848 = vadd.xlane.f32.xlu0 %v5799_v13  ;;  %v3852_v55 = vpack.c.bf16 %v5799_v13, %v5799_v13 }
0x1356   : > { %v5801_v57 = vpop.eup %5800 }
0x1357   : > { %3850 = vadd.xlane.f32.xlu1 %v5801_v57  ;;  %5515 = vmatmul.mubr.bf16.vlgmr.msra.gmra.mrb[100].mxu1 %v3852_v55  ;;  %v3853_v53 = vpack.c.bf16 %v5801_v57, %v5801_v57 }
0x1358   : > { %5542 = vmatprep.mubr.msk.bf16.mxu1 %vm6332_vm1, %v8280_v47 }
0x1359   : > { %5535 = vmatmul.mubr.bf16.vlgmr.msra.gmra.mrb[104].mxu0 %v3853_v53  ;;  %2886 = vadd.xlane.f32.xlu0 %v7668_v44 }
0x135a   : > { %5550 = vmatprep.mubr.msk.bf16.mxu0 %vm6332_vm1, %v8280_v47 }
0x135b   : > { %2888 = vadd.xlane.f32.xlu1 %v7672_v14 }
0x137a   : > { %v3177_v46 = vpop.xlane.xlu1 %3176 }
0x137b   : > { %5802 = vrcp.f32 %v3177_v46 }
0x137c   : > { %v3179_v59 = vpop.xlane.xlu0 %3178 }
0x137d   : > { %5804 = vrcp.f32 %v3179_v59 }
0x137e   : > { %v3523_v9 = vpop.xlane.xlu1 %3522 }
0x137f   : > { %5806 = vrcp.f32 %v3523_v9 }
0x1380   : > { %v3521_v35 = vpop.xlane.xlu0 %3520 }
0x1381   : > { %5808 = vrcp.f32 %v3521_v35 }
0x1385   : > { %v5803_v51 = vpop.eup %5802 }
0x1386   : > { %v3328_v43 = vmul.f32 %v5803_v51, %v7874_v25  ;;  %v5744_v51 = vld [vmem:[%s6871_s6] sm:$0xff]  }
0x1387   : > { %v5805_v52 = vpop.eup %5804  ;;  %5547 = vmatpush3.bf16.msra.mxu0 %v5744_v51  ;;  %v8290_v51 = vld [vmem:[#allocation35_spill] sm:$0xff] }
0x1388   : > { %3332 = vrot.lane.b32.xlu0 %v3328_v43, %s6336_s15  ;;  %v3329_v44 = vmul.f32 %v5805_v52, %v7876_v36  ;;  %5548 = vmatprep.subr.bf16.mxu0 %v8280_v47  ;;  %v5745_v43 = vld [vmem:[%s6871_s6 + $0x8] sm:$0xff]  }
0x1389   : > { %v5807_v20 = vpop.eup %5806  ;;  %v5746_v52 = vld [vmem:[%s6874_s23] sm:$0xff]  }
0x138a   : > { %3334 = vrot.lane.b32.xlu1 %v3329_v44, %s6336_s15  ;;  %v3657_v14 = vmul.f32 %v5807_v20, %v8010_v27  ;;  %v5747_v44 = vld [vmem:[%s6874_s23 + $0x8] sm:$0xff]  }
0x138b   : > { %v5809_v21 = vpop.eup %5808  ;;  %5549 = vmatpush3.bf16.msra.mxu0 %v5745_v43 }
0x138c   : > { %3662 = vrot.lane.b32.xlu0 %v3657_v14, %s6337_s20  ;;  %v3656_v32 = vmul.f32 %v5809_v21, %v8008_v48 }
0x138e   : > { %3660 = vrot.lane.b32.xlu1 %v3656_v32, %s6337_s20 }
0x13e2   : > { %v3849_v26 = vpop.xlane.xlu0 %3848 }
0x13e4   : > { %v3851_v45 = vpop.xlane.xlu1 %3850 }
0x13e6   : > { %v2887_v25 = vpop.xlane.xlu0 %2886 }
0x13e7   : > { %5810 = vrcp.f32 %v2887_v25  ;;  %v8073_v25 = vld [vmem:[%s6877_s22] sm:$0x7] }
0x13e8   : > { %v2889_v6 = vpop.xlane.xlu1 %2888  ;;  %v4290_v43 = vrot.slane %v8073_v25, %v8290_v51 }
0x13e9   : > { %5812 = vrcp.f32 %v2889_v6  ;;  %v8289_v6 = vld [vmem:[#allocation34_spill] sm:$0xff] }
0x13ea   : > { %5814 = vrcp.f32 %v3849_v26 }
0x13eb   : > { %5816 = vrcp.f32 %v3851_v45 }
0x13f1   : > { %v5811_v23 = vpop.eup %5810 }
0x13f2   : > { %v2974_v36 = vmul.f32 %v5811_v23, %v7734_v40  ;;  %v5742_v40 = vld [vmem:[%s6859_s26 + $0x70] sm:$0xff]   ;;  %v4095_v23 = vrot.slane %v8073_v25, %v8289_v6 }
0x13f3   : > { %v5813_v10 = vpop.eup %5812  ;;  %5539 = vmatpush3.bf16.msra.mxu1 %v5742_v40 }
0x13f4   : > { %2976 = vst.msk [vmem:[#allocation2] sm:$0xff] %vm1092_vm3, %v2974_v36  ;;  %v2975_v34 = vmul.f32 %v5813_v10, %v7736_v0  ;;  %5540 = vmatprep.subr.bf16.mxu1 %v8280_v47  ;;  %v5815_v0 = vpop.eup %5814 }
0x13f5   : > { %v5817_v54 = vpop.eup %5816 }
0x13f6   : > { %2977 = vst.msk [vmem:[#allocation2 + $0x8] sm:$0xff] %vm1092_vm3, %v2975_v34 }
0x13f7   : > { %5541 = vmatpush3.bf16.msra.mxu1 %v5743_v61 }
0x13f8   : > { %5554 = vmatprep.subr.bf16.mxu1 %v8280_v47 }
0x13fa   : > { %v3333_v62 = vpop.permute.xlu0 %3332 }
0x13fb   : > { %3338 = vst.msk [vmem:[#allocation2] sm:$0xff] %vm1538_vm5, %v3333_v62  ;;  %v5831_v62 = vld [vmem:[%s6879_s13] sm:$0x7] }
0x13fc   : > { %v3335_v49 = vpop.permute.xlu1 %3334 }
0x13fd   : > { %3339 = vst.msk [vmem:[#allocation2 + $0x8] sm:$0xff] %vm1538_vm5, %v3335_v49  ;;  %v4101_v49 = vrot.slane %v5831_v62, %v8289_v6 }
0x13fe   : > { %v3663_v1 = vpop.permute.xlu0 %3662 }
0x13ff   : > { %3667 = vst.msk [vmem:[#allocation2 + $0x8] sm:$0xff] %vm1769_vm6, %v3663_v1 }
0x1400   : > { %v3661_v37 = vpop.permute.xlu1 %3660 }
0x1401   : > { %3666 = vst.msk [vmem:[#allocation2] sm:$0xff] %vm1769_vm6, %v3661_v37 }
0x142a   : > { %v3912_v5 = vpop.f32.mrb[100].mxu1 }
0x142b   : > { %v3984_v42 = vmul.f32 %v5815_v0, %v3912_v5  ;;  %v5516_v48 = vpop.f32.mrb[101].mxu1 }
0x142c   : > { %v3915_v50 = vpop.f32.mrb[102].mxu1  ;;  %v3976_v27 = vpop.f32.mrb[104].mxu0  ;;  %v5749_v48 = vld [vmem:[%s6874_s23 + $0x18] sm:$0xff]  }
0x142d   : > { %v3985_v28 = vmul.f32 %v5817_v54, %v3976_v27  ;;  %v5536_v63 = vpop.f32.mrb[105].mxu0  ;;  %3988 = vrot.lane.b32.xlu1 %v3984_v42, %s6338_s12  ;;  %v5517_v60 = vpop.f32.mrb[103].mxu1  ;;  %v5748_v42 = vld [vmem:[%s6874_s23 + $0x10] sm:$0xff]   ;;  %v4754_v54 = vld [vmem:[%s694_s18] ss:$0 sm:$0xff] }
0x142e   : > { %v3979_v30 = vpop.f32.mrb[106].mxu0 }
0x142f   : > { %v5537_v17 = vpop.f32.mrb[107].mxu0  ;;  %3990 = vrot.lane.b32.xlu0 %v3985_v28, %s6338_s12 }
0x149f   : > { %v3989_v15 = vpop.permute.xlu1 %3988 }
0x14a0   : > { %3994 = vst.msk [vmem:[#allocation2] sm:$0xff] %vm2000_vm7, %v3989_v15 }
0x14a1   : > { %v3991_v58 = vpop.permute.xlu0 %3990 }
0x14a2   : > { %3995 = vst.msk [vmem:[#allocation2 + $0x8] sm:$0xff] %vm2000_vm7, %v3991_v58 }
0x14a7   : > { %v3996_v31 = vld [vmem:[#allocation2] sm:$0xff] }
0x14a9   : > { %v3997_v16 = vld [vmem:[#allocation2 + $0x8] sm:$0xff] }
0x14aa   : > { %v3998_v11 = vpack.c.bf16 %v3997_v16, %v3996_v31  ;;  %v4758_v31 = vld [vmem:[%s711_s28] ss:$0 sm:$0xff] }
0x14ac   : > { %5543 = vmatmul.mubr.msk.bf16.vlgmr.msra.gmra.mrb[104].mxu1 %vm913_vm2, %v3998_v11 }
0x14ad   : > { %5562 = vmatprep.mubr.msk.bf16.mxu1 %vm6332_vm1, %v8280_v47  ;;  %5555 = vmatpush3.bf16.msra.mxu1 %v5746_v52 }
0x14ae   : > { %5556 = vmatprep.subr.bf16.mxu1 %v8280_v47 }
0x14b1   : > { %5557 = vmatpush3.bf16.msra.mxu1 %v5747_v44  ;;  %v4296_v44 = vrot.slane %v5831_v62, %v8290_v51 }
0x14b2   : > { %5558 = vmatprep.subr.bf16.mxu1 %v8280_v47 }
0x14b5   : > { %5559 = vmatpush3.bf16.msra.mxu1 %v5748_v42 }
0x14b6   : > { %5560 = vmatprep.subr.bf16.mxu1 %v8280_v47 }
0x14b9   : > { %5561 = vmatpush3.bf16.msra.mxu1 %v5749_v48 }
0x157f   : > { %v4057_v29 = vpop.f32.mrb[104].mxu1 }
0x1580   : > { %v4058_v33 = vadd.f32 %v4057_v29, %v4007_v24  ;;  %v5544_v7 = vpop.f32.mrb[105].mxu1 }
0x1581   : > { %v4060_v41 = vpop.f32.mrb[106].mxu1 }
0x1582   : > { %v4064_v19 = vadd.f32 %v4058_v33, %v7396_v56  ;;  %v4061_v8 = vadd.f32 %v4060_v41, %v4007_v24  ;;  %v5545_v12 = vpop.f32.mrb[107].mxu1 }
0x1584   : > { %v4065_v4 = vadd.f32 %v4061_v8, %v7399_v3  ;;  %v4066_v2 = vsel %vm913_vm2, %v4064_v19, 0.0 }
0x1585   : > { %4067 = vadd.xlane.f32.xlu1 %v4066_v2 }
0x1586   : > { %v4069_v13 = vsel %vm913_vm2, %v4065_v4, 0.0 }
0x1587   : > { %4070 = vadd.xlane.f32.xlu0 %v4069_v13 }
0x1612   : > { %v4068_v18 = vpop.xlane.xlu1 %4067 }
0x1613   : > { %v4072_v55 = vmul.f32 0.03125, %v4068_v18 }
0x1614   : > { %v4071_v57 = vpop.xlane.xlu0 %4070 }
0x1615   : > { %v4074_v53 = vsub.f32 %v4064_v19, %v4072_v55  ;;  %v4073_v46 = vmul.f32 0.03125, %v4071_v57 }
0x1617   : > { %v4075_v56 = vsub.f32 %v4065_v4, %v4073_v46  ;;  %v4076_v59 = vmul.f32 %v4074_v53, %v4074_v53 }
0x1619   : > { %v4078_v9 = vsel %vm913_vm2, %v4076_v59, 0.0  ;;  %v4077_v3 = vmul.f32 %v4075_v56, %v4075_v56 }
0x161a   : > { %4079 = vadd.xlane.f32.xlu0 %v4078_v9 }
0x161b   : > { %v4081_v35 = vsel %vm913_vm2, %v4077_v3, 0.0 }
0x161c   : > { %4082 = vadd.xlane.f32.xlu1 %v4081_v35 }
0x16a7   : > { %v4080_v20 = vpop.xlane.xlu0 %4079 }
0x16a8   : > { %v4084_v14 = vmul.f32 0.03125, %v4080_v20 }
0x16a9   : > { %v4083_v21 = vpop.xlane.xlu1 %4082 }
0x16aa   : > { %v4086_v32 = vadd.f32 1e-05, %v4084_v14  ;;  %v4085_v26 = vmul.f32 0.03125, %v4083_v21 }
0x16ac   : > { %5818 = vrsqrt.f32 %v4086_v32  ;;  %v4087_v45 = vadd.f32 1e-05, %v4085_v26 }
0x16ae   : > { %5820 = vrsqrt.f32 %v4087_v45 }
0x16b6   : > { %v5819_v36 = vpop.eup %5818 }
0x16b7   : > { %v4090_v10 = vmul.f32 %v5819_v36, %v4074_v53 }
0x16b8   : > { %v5821_v34 = vpop.eup %5820 }
0x16b9   : > { %v4096_v1 = vmul.f32 %v4095_v23, %v4090_v10  ;;  %v4091_v37 = vmul.f32 %v5821_v34, %v4075_v56 }
0x16bb   : > { %v4097_v40 = vmul.f32 %v4095_v23, %v4091_v37  ;;  %v4102_v61 = vadd.f32 %v4101_v49, %v4096_v1 }
0x16bd   : > { %v4103_v0 = vadd.f32 %v4101_v49, %v4097_v40 }
0x16bf   : > { %v4104_v5 = vpack.c.bf16 %v4103_v0, %v4102_v61 }
0x16c1   : > { %5551 = vmatmul.mubr.msk.bf16.vlgmr.msra.gmra.mrb[108].mxu0 %vm913_vm2, %v4104_v5 }
0x1794   : > { %v4165_v50 = vpop.f32.mrb[108].mxu0 }
0x1795   : > { %v4166_v27 = vadd.f32 %v4754_v54, %v4165_v50  ;;  %v5552_v28 = vpop.f32.mrb[109].mxu0 }
0x1796   : > { %v4168_v63 = vpop.f32.mrb[110].mxu0 }
0x1797   : > { %v4169_v60 = vadd.f32 %v4754_v54, %v4168_v63  ;;  %v5553_v30 = vpop.f32.mrb[111].mxu0  ;;  %v4172_v17 = vmax.f32 %v4166_v27, 0.0 }
0x1799   : > { %v4173_v15 = vmax.f32 %v4169_v60, 0.0  ;;  %v4305_v60 = vld [vmem:[#allocation19] sm:$0x3] (!%p4764_p9) }
0x179a   : > { %v4337_v30 = vrot.slane (!%p4764_p9), %v4305_v60, %v6933_v22 }
0x179b   : > { %v4174_v58 = vpack.c.bf16 %v4173_v15, %v4172_v17 }
0x179d   : > { %5563 = vmatmul.mubr.msk.bf16.vlgmr.msra.gmra.mrb[108].mxu1 %vm4214_vm9, %v4174_v58  ;;  %v8292_v58 = vld [vmem:[#allocation34_spill] sm:$0xff] (!%p4764_p9) }
0x1870   : > { %v4252_v16 = vpop.f32.mrb[108].mxu1 }
0x1871   : > { %v4253_v11 = vadd.f32 %v4758_v31, %v4252_v16  ;;  %v5564_v47 = vpop.f32.mrb[109].mxu1 }
0x1872   : > { %v4255_v39 = vpop.f32.mrb[110].mxu1 }
0x1873   : > { %v4259_v38 = vadd.f32 %v4253_v11, %v4102_v61  ;;  %v4256_v24 = vadd.f32 %v4758_v31, %v4255_v39  ;;  %v5565_v29 = vpop.f32.mrb[111].mxu1  ;;  %v4343_v31 = vrot.slane (!%p4764_p9), %v4305_v60, %v8292_v58 }
0x1875   : > { %v4260_v33 = vadd.f32 %v4256_v24, %v4103_v0  ;;  %v4261_v7 = vsel %vm913_vm2, %v4259_v38, 0.0 }
0x1876   : > { %4262 = vadd.xlane.f32.xlu0 %v4261_v7 }
0x1877   : > { %v4264_v41 = vsel %vm913_vm2, %v4260_v33, 0.0 }
0x1878   : > { %4265 = vadd.xlane.f32.xlu1 %v4264_v41 }
0x1903   : > { %v4263_v19 = vpop.xlane.xlu0 %4262 }
0x1904   : > { %v4267_v8 = vmul.f32 0.03125, %v4263_v19 }
0x1905   : > { %v4266_v12 = vpop.xlane.xlu1 %4265 }
0x1906   : > { %v4269_v4 = vsub.f32 %v4259_v38, %v4267_v8  ;;  %v4268_v2 = vmul.f32 0.03125, %v4266_v12 }
0x1908   : > { %v4270_v13 = vsub.f32 %v4260_v33, %v4268_v2  ;;  %v4271_v18 = vmul.f32 %v4269_v4, %v4269_v4 }
0x190a   : > { %v4273_v55 = vsel %vm913_vm2, %v4271_v18, 0.0  ;;  %v4272_v57 = vmul.f32 %v4270_v13, %v4270_v13 }
0x190b   : > { %4274 = vadd.xlane.f32.xlu0 %v4273_v55 }
0x190c   : > { %v4276_v53 = vsel %vm913_vm2, %v4272_v57, 0.0 }
0x190d   : > { %4277 = vadd.xlane.f32.xlu1 %v4276_v53 }
0x1998   : > { %v4275_v46 = vpop.xlane.xlu0 %4274 }
0x1999   : > { %v4279_v56 = vmul.f32 0.03125, %v4275_v46 }
0x199a   : > { %v4278_v59 = vpop.xlane.xlu1 %4277 }
0x199b   : > { %v4281_v9 = vadd.f32 1e-05, %v4279_v56  ;;  %v4280_v3 = vmul.f32 0.03125, %v4278_v59 }
0x199d   : > { %5822 = vrsqrt.f32 %v4281_v9  ;;  %v4282_v35 = vadd.f32 1e-05, %v4280_v3 }
0x199f   : > { %5824 = vrsqrt.f32 %v4282_v35 }
0x19a7   : > { %v5823_v52 = vpop.eup %5822 }
0x19a8   : > { %v4285_v20 = vmul.f32 %v5823_v52, %v4269_v4 }
0x19a9   : > { %v5825_v14 = vpop.eup %5824 }
0x19aa   : > { %v4291_v21 = vmul.f32 %v4290_v43, %v4285_v20  ;;  %v4286_v32 = vmul.f32 %v5825_v14, %v4270_v13  ;;  %4304 = sbr.rel (%p4764_p9) target bundleno = 6900 (0x1af4), region = 132 }
0x19ac   : > { %v4297_v26 = vadd.f32 %v4296_v44, %v4291_v21  ;;  %v4292_v45 = vmul.f32 %v4290_v43, %v4286_v32 }
0x19ae   : > { %4299 = vst.msk [vmem:[#allocation20] sm:$0xff] %vm913_vm2, %v4297_v26  ;;  %v4298_v6 = vadd.f32 %v4296_v44, %v4292_v45 }
0x19b0   : > { %4300 = vst.msk [vmem:[#allocation20 + $0x8] sm:$0xff] %vm913_vm2, %v4298_v6 }
0x19b5   : > { %v4306_v23 = vld [vmem:[#allocation20] sm:$0xff] }
0x19b6   : > { %v4308_v25 = vsel %vm913_vm2, %v4306_v23, 0.0 }
0x19b7   : > { %v4307_v36 = vld [vmem:[#allocation20 + $0x8] sm:$0xff]  ;;  %4309 = vadd.xlane.f32.xlu0 %v4308_v25 }
0x19b8   : > { %v4311_v10 = vsel %vm913_vm2, %v4307_v36, 0.0 }
0x19bb   : > { %4312 = vadd.xlane.f32.xlu0 %v4311_v10 }
0x1a44   : > { %v4310_v34 = vpop.xlane.xlu0 %4309 }
0x1a45   : > { %v4314_v62 = vmul.f32 0.03125, %v4310_v34 }
0x1a47   : > { %v4316_v49 = vsub.f32 %v4306_v23, %v4314_v62 }
0x1a48   : > { %v4313_v1 = vpop.xlane.xlu0 %4312 }
0x1a49   : > { %v4315_v37 = vmul.f32 0.03125, %v4313_v1  ;;  %v4318_v40 = vmul.f32 %v4316_v49, %v4316_v49 }
0x1a4b   : > { %v4317_v61 = vsub.f32 %v4307_v36, %v4315_v37  ;;  %v4320_v0 = vsel %vm913_vm2, %v4318_v40, 0.0 }
0x1a4c   : > { %4321 = vadd.xlane.f32.xlu1 %v4320_v0 }
0x1a4d   : > { %v4319_v5 = vmul.f32 %v4317_v61, %v4317_v61 }
0x1a4f   : > { %v4323_v42 = vsel %vm913_vm2, %v4319_v5, 0.0 }
0x1a50   : > { %4324 = vadd.xlane.f32.xlu1 %v4323_v42 }
0x1ad9   : > { %v4322_v48 = vpop.xlane.xlu1 %4321 }
0x1ada   : > { %v4326_v54 = vmul.f32 0.03125, %v4322_v48 }
0x1adc   : > { %v4328_v50 = vadd.f32 1e-05, %v4326_v54 }
0x1add   : > { %v4325_v27 = vpop.xlane.xlu1 %4324 }
0x1ade   : > { %5832 = vrsqrt.f32 %v4328_v50  ;;  %v4327_v28 = vmul.f32 0.03125, %v4325_v27 }
0x1ae0   : > { %v4329_v63 = vadd.f32 1e-05, %v4327_v28 }
0x1ae2   : > { %5834 = vrsqrt.f32 %v4329_v63 }
0x1ae8   : > { %v5833_v17 = vpop.eup %5832 }
0x1ae9   : > { %v4332_v15 = vmul.f32 %v5833_v17, %v4316_v49 }
0x1aeb   : > { %v4338_v16 = vmul.f32 %v4337_v30, %v4332_v15 }
0x1aec   : > { %v5835_v11 = vpop.eup %5834 }
0x1aed   : > { %v4344_v47 = vadd.f32 %v4343_v31, %v4338_v16  ;;  %v4333_v39 = vmul.f32 %v5835_v11, %v4317_v61 }
0x1aef   : > { %4346 = vst.msk [vmem:[#allocation20] sm:$0xff] %vm913_vm2, %v4344_v47  ;;  %v4339_v38 = vmul.f32 %v4337_v30, %v4333_v39 }
0x1af1   : > { %v4345_v24 = vadd.f32 %v4343_v31, %v4339_v38 }
0x1af3   : > { %4347 = vst.msk [vmem:[#allocation20 + $0x8] sm:$0xff] %vm913_vm2, %v4345_v24 }
0x1af4 PF: > { %s8293_s26 = sld [smem:[#allocation29_spill]]  ;;  %s6340_s25 = smov [#allocation20]  }
0x1af5   : > { %s4357_s19 = sshll.u32 %s6340_s25, 4  ;;  %s4358_s19 = int_to_ptr.vmem [resolvable:$true] %s4357_s19 }
0x1af6   : > { %s6216_s24 = scalar_lea.vmem %s4358_s19, 256  ;;  %p6223_p7 = scmp.lt.s32.totalorder %s4358_s19, %s4358_s19 }
0x1af7   : > { %p6217_p11 = scmp.ne.s32.totalorder %s4358_s19, %s6216_s24  ;;  %p6224_p5 = scmp.lt.s32.totalorder %s6216_s24, %s6216_s24 }
0x1af9   : > { %p6225_p2 = por %p6224_p5, %p6223_p7 }
0x1afa   : > { %p5658_p0 = scmp.eq.s32.totalorder %s8293_s26, 1 }
0x1afc   : > { %p6218_p1 = pnand %p6217_p11, %p5658_p0 }
0x1afe   : > { %p6219_p13 = pneg %p6218_p1 }
0x1b00   : > { %p6226_p6 = pnand %p6225_p2, %p6219_p13 }
0x1b02   : > { %6229 = shalt.err (!%p6226_p6)
}
0x1b03   : > { %s8294_s18 = sld [smem:[#allocation49_spill]] }
0x1b09   : > { %s6230_s23 = scalar_lea.hbm %s8294_s18, 256 }
0x1b0a   : > { %p6231_p10 = scmp.ne.s32.totalorder %s8294_s18, %s6230_s23  ;;  %p6236_p8 = scmp.lt.u32.totalorder %s6230_s23, %s8294_s18 }
0x1b0c   : > { %p6232_p3 = pnand %p6231_p10, %p5658_p0 }
0x1b0e   : > { %p6233_p4 = pneg %p6232_p3 }
0x1b10   : > { %p6238_p12 = pnand %p6236_p8, %p6233_p4 }
0x1b12   : > { %6241 = shalt.err (!%p6238_p12)
}
0x1b13   : > { %s6341_s11 = smov 128  }
0x1b14   : > { %5603 = dma.vmem_to_hbm [thread:$0]  (%p5658_p0), %s4358_s19, 256, %s8294_s18, [#allocation5], %s6341_s11, %s6341_s11, %s6336_s15  }
0x1b15   : > { %6287 = dma.done.wait (%p5658_p0), [#allocation5], 256  }
0x1b16   : > { %6289 = vsyncadd (%p5658_p0), [#allocation5], 4294967040 }
0x1b17 PF: > { %s27_s30 = sadd.s32 1, %s6312_s30   ;;  %s8295_s25 = sld [smem:[#allocation27_spill]] }
0x1b18   : > { %p24_p9 = scmp.ge.s32.totalorder %s27_s30, 4   ;;  %s8296_s20 = sld [smem:[#allocation33_spill]] }
0x1b19   : > { %s8297_s12 = sld [smem:[#allocation32_spill]]  ;;  %s8298_s26 = smov %s6300_s27 }
0x1b1a   : > { %s8300_s28 = smov %s6308_s29  ;;  %26 = sbr.rel (!%p24_p9) target bundleno = 14 (0xe), region = 225 }
0x1b1e   : > { %s8299_s27 = smov %s8296_s20 }
0x1b1f   : > { %s8301_s29 = smov %s8297_s12 }
0x1b21   :  { %4373 = vsyncpa [#allocation4], 1 }
0x1b22   :  { %4375 = vsyncpa [#allocation4 + $0x1], 1 }
0x1b23   :  { %4376 = vsyncpa [#allocation7], 1 }
0x1b24   :  { %4377 = vsyncpa [#allocation10], 1 }
0x1b25   :  { %4378 = vsyncpa [#allocation5], 1 }
0x1b26   :  { %4380 = vsyncpa [#allocation5 + $0x1], 1 }

</bundles_post_ra>
